<compile_context>
chip_gen: v5e
topology: v5e:2x2
jax: 0.10.0
libtpu: 0.0.40
codegen_flags: <defaults>
</compile_context>

<pallas_src>
import functools

import jax
import jax.numpy as jnp
from jax import lax
from jax.experimental import pallas as pl
from jax.experimental.pallas import tpu as pltpu

_NEG = -1e30  # additive mask value; exp underflows to exactly 0.0 after row-max


def _contextual_layers_kernel(x_ref, adj_ref, w_ref, p_ref, o_ref, *,
                              n_nodes, g_pack, in_feats, h_feats):
    """G graphs per grid step, packed into one (G*N)-row supernode block.

    x_ref   : (G, N, F)        node features (any float dtype)
    adj_ref : (G, N, N)        raw adjacency (int8 / float), adj[g, dst, src]
    w_ref   : (3, fpad, H+1)   per layer [W^T | W^T a_r], rows zero padded
    p_ref   : (6, fpad)        rows 0-2: W^T a_l ; rows 3-5: bias (padded)
    o_ref   : (G, N, H)
    """
    N, G, F, H = n_nodes, g_pack, in_feats, h_feats
    GN = G * N
    fpad = w_ref.shape[1]

    # --- packed node features: (G, N, F) -> (G*N, F) ------------------------
    h = x_ref[...].astype(jnp.float32).reshape(GN, F)

    # --- block-diagonal additive softmax mask, built once, reused 3x --------
    # adj_rows[r, :] = adj[graph(r), local_row(r), :]
    adj_rows = adj_ref[...].astype(jnp.float32).reshape(GN, N)
    r_idx = lax.broadcasted_iota(jnp.int32, (GN, 1), 0)       # packed row index

    def _col_block(g):
        in_g = (r_idx >= g * N) & (r_idx < (g + 1) * N)       # row belongs to graph g
        return jnp.where(in_g & (adj_rows > 0.0), 0.0, _NEG)  # (GN, N)

    bias = jnp.concatenate([_col_block(g) for g in range(G)], axis=1)  # (GN, GN)

    # one-hot selector for the augmented "er" column (column index H);
    # avoids a separate projection matmul and an unaligned lane slice.
    er_sel = (lax.broadcasted_iota(jnp.int32, (1, H + 1), 1) == H).astype(jnp.float32)

    for l in range(3):
        in_w = F if l == 0 else H
        w_aug = w_ref[l]                       # (fpad, H+1) = [W^T | W^T a_r]
        wal_row = p_ref[l:l + 1, :]            # (1, fpad)   = W^T a_l
        b_row = p_ref[3 + l:4 + l, :]          # (1, fpad)   = bias
        if in_w < fpad:                        # static slices of resident slabs
            w_aug = w_aug[:in_w]
            wal_row = wal_row[:, :in_w]
        if H < fpad:
            b_row = b_row[:, :H]

        # z_aug[:, :H] = h @ W^T ;  z_aug[:, H] = er = (h @ W^T) @ a_r
        z_aug = jnp.dot(h, w_aug, preferred_element_type=jnp.float32)    # (GN, H+1)
        er_col = jnp.sum(z_aug * er_sel, axis=-1, keepdims=True)         # (GN, 1)
        el_row = lax.dot_general(wal_row, h, (((1,), (1,)), ((), ())),
                                 preferred_element_type=jnp.float32)     # (1, GN)

        # e[dst, src] = leaky_relu(er[dst] + el[src]) + block-diagonal mask
        e = er_col + el_row
        e = jnp.maximum(e, 0.2 * e) + bias
        m = jnp.max(e, axis=-1, keepdims=True)   # finite: every row has a self-loop
        p = jnp.exp(e - m)                       # off-edge / cross-graph -> exactly 0.0
        s = jnp.sum(p, axis=-1, keepdims=True)
        r = pl.reciprocal(s, approx=True)        # EUP vrcp (own VLIW slot) ...
        r = r * (2.0 - s * r)                    # ... + one Newton step (~1e-7 rel err)

        # aggregate un-normalised, normalise afterwards
        agg = jnp.dot(p, z_aug, preferred_element_type=jnp.float32)      # (GN, H+1)
        h = jnp.maximum(agg[:, :H] * r + b_row, 0.0)                     # F.relu
        # TODO(synk): at large N, cast p / z_aug to bf16 for the MXU on v6e/v7x
        # and tile the src axis with an online softmax; unnecessary at these sizes.

    o_ref[...] = h.reshape(G, N, H)


def pack_params(params):
    """Fold a_l / a_r into the weights and stack all per-layer parameters into
    two slabs.  Call ONCE (at module setup); reused by every forward call."""
    H, F = params["w1"].shape
    fpad = max(F, H)

    def aug_weight(w, ar):
        wt = w.astype(jnp.float32).T                               # (Fin, H)
        war = wt @ ar.astype(jnp.float32).reshape(-1, 1)           # (Fin, 1)
        wa = jnp.concatenate([wt, war], axis=1)                    # (Fin, H+1)
        return jnp.pad(wa, ((0, fpad - wa.shape[0]), (0, 0)))

    def wal_row(w, al):
        v = w.astype(jnp.float32).T @ al.astype(jnp.float32)       # (Fin,)
        return jnp.pad(v, (0, fpad - v.shape[0]))

    def pad_row(v):
        v = v.astype(jnp.float32)
        return jnp.pad(v, (0, fpad - v.shape[0]))

    w_slab = jnp.stack([aug_weight(params["w1"], params["ar1"]),
                        aug_weight(params["w2"], params["ar2"]),
                        aug_weight(params["w3"], params["ar3"])])  # (3, fpad, H+1)
    p_slab = jnp.stack([wal_row(params["w1"], params["al1"]),
                        wal_row(params["w2"], params["al2"]),
                        wal_row(params["w3"], params["al3"]),
                        pad_row(params["b1"]),
                        pad_row(params["b2"]),
                        pad_row(params["b3"])])                    # (6, fpad)
    return {"w_slab": w_slab, "p_slab": p_slab, "in_feats": F, "h_feats": H}


def contextual_layers_forward(in_feat, adj, packed, g_pack=None):
    """in_feat: (N, F) or (B, N, F);  adj: (N, N) or (B, N, N), adj[dst, src]
    nonzero on edges (self-loops required, as DGL's GATConv demands — a row
    with zero edges would silently get a uniform softmax here, NaN in DGL).
    `packed` = pack_params(params), computed once."""
    squeeze = in_feat.ndim == 2
    if squeeze:
        in_feat, adj = in_feat[None], adj[None]
    B, N, F = in_feat.shape
    w_slab, p_slab = packed["w_slab"], packed["p_slab"]
    H = w_slab.shape[-1] - 1
    fpad = w_slab.shape[1]
    assert F == packed["in_feats"] and adj.shape == (B, N, N)

    if g_pack is None:
        # pack graphs until the supernode block has ~128 rows: full vreg
        # sublane/lane tiles and full MXU rows on v5e; 256-row packs can be
        # used on v6e/v7x when B still leaves >= 2 grid steps.
        g_pack = max(1, min(128 // max(N, 1), B))
        # keep >= 2 grid steps when B allows it -> v7x's 2 TensorCores both work
        while g_pack > 1 and pl.cdiv(B, g_pack) < 2:
            g_pack //= 2

    Bp = pl.cdiv(B, g_pack) * g_pack
    if Bp != B:  # pad with dummy self-loop-only graphs; sliced off afterwards
        pad = Bp - B
        in_feat = jnp.concatenate(
            [in_feat, jnp.zeros((pad, N, F), in_feat.dtype)], axis=0)
        eye = jnp.broadcast_to(jnp.eye(N, dtype=adj.dtype), (pad, N, N))
        adj = jnp.concatenate([adj, eye], axis=0)

    kernel = functools.partial(_contextual_layers_kernel, n_nodes=N,
                               g_pack=g_pack, in_feats=F, h_feats=H)

    out = pl.pallas_call(
        kernel,
        out_shape=jax.ShapeDtypeStruct((Bp, N, H), jnp.float32),
        grid=(Bp // g_pack,),
        in_specs=[
            pl.BlockSpec((g_pack, N, F), lambda b: (b, 0, 0)),     # features
            pl.BlockSpec((g_pack, N, N), lambda b: (b, 0, 0)),     # raw adjacency (i8)
            pl.BlockSpec((3, fpad, H + 1), lambda b: (0, 0, 0)),   # weights (resident)
            pl.BlockSpec((6, fpad), lambda b: (0, 0)),             # w_al / bias (resident)
        ],
        out_specs=pl.BlockSpec((g_pack, N, H), lambda b: (b, 0, 0)),
        compiler_params=pltpu.CompilerParams(
            dimension_semantics=("parallel",)),   # shard packed steps across TCs (v7x)
    )(in_feat, adj, w_slab, p_slab)
    # TODO(synk): if a profile shows store-bound behaviour, pack G graphs along
    # the output's last axis (lane-dense G*H) and un-pack with a wrapper reshape.

    if Bp != B:
        out = out[:B]
    return out[0] if squeeze else out


# ---------------- pure-JAX reference (DGL GATConv semantics) ----------------
def _ref_gat_layer(h, adj, w, al, ar, b):
    z = h @ w.T
    el = z @ al
    er = z @ ar
    e = er[:, None] + el[None, :]
    e = jnp.where(e > 0, e, 0.2 * e)
    edge = adj > 0
    e = jnp.where(edge, e, -jnp.inf)
    alpha = jax.nn.softmax(e, axis=-1)
    alpha = jnp.where(edge, alpha, 0.0)
    return jax.nn.relu(alpha @ z + b)


def ref_forward(in_feat, adj, p):
    h = _ref_gat_layer(in_feat, adj, p["w1"], p["al1"], p["ar1"], p["b1"])
    h = _ref_gat_layer(h, adj, p["w2"], p["al2"], p["ar2"], p["b2"])
    h = _ref_gat_layer(h, adj, p["w3"], p["al3"], p["ar3"], p["b3"])
    return h


if __name__ == "__main__":
    B, N, in_feats, h_feats = 8, 32, 16, 32

    key = jax.random.PRNGKey(0)
    keys = jax.random.split(key, 16)

    params = {
        "w1": 0.2 * jax.random.normal(keys[0], (h_feats, in_feats), jnp.float32),
        "al1": 0.2 * jax.random.normal(keys[1], (h_feats,), jnp.float32),
        "ar1": 0.2 * jax.random.normal(keys[2], (h_feats,), jnp.float32),
        "b1": 0.05 * jax.random.normal(keys[3], (h_feats,), jnp.float32),
        "w2": 0.2 * jax.random.normal(keys[4], (h_feats, h_feats), jnp.float32),
        "al2": 0.2 * jax.random.normal(keys[5], (h_feats,), jnp.float32),
        "ar2": 0.2 * jax.random.normal(keys[6], (h_feats,), jnp.float32),
        "b2": 0.05 * jax.random.normal(keys[7], (h_feats,), jnp.float32),
        "w3": 0.2 * jax.random.normal(keys[8], (h_feats, h_feats), jnp.float32),
        "al3": 0.2 * jax.random.normal(keys[9], (h_feats,), jnp.float32),
        "ar3": 0.2 * jax.random.normal(keys[10], (h_feats,), jnp.float32),
        "b3": 0.05 * jax.random.normal(keys[11], (h_feats,), jnp.float32),
    }

    # batch of B graphs: node features + dense int8 adjacency with self-loops
    x = jax.random.normal(keys[12], (B, N, in_feats), jnp.float32)
    adj = (jax.random.uniform(keys[13], (B, N, N)) < 0.3)
    adj = jnp.logical_or(adj, jnp.eye(N, dtype=bool)[None]).astype(jnp.int8)
    assert bool(jnp.all(adj.sum(axis=-1) > 0)), "every node needs >= 1 in-edge"

    packed = pack_params(params)   # hoisted: computed once, reused by all calls

    # batched path: g_pack=4 -> 128-row supernode blocks, grid of 2 parallel steps
    out = jax.block_until_ready(contextual_layers_forward(x, adj, packed))
    ref = jax.vmap(lambda xi, ai: ref_forward(xi, ai, params))(x, adj)
    assert out.shape == (B, N, h_feats)
    assert jnp.allclose(out, ref, atol=2e-4, rtol=2e-4), "batched mismatch vs. reference"

    # single-graph path (matches the PyTorch module's forward(g, in_feat))
    out1 = jax.block_until_ready(contextual_layers_forward(x[0], adj[0], packed))
    assert out1.shape == (N, h_feats)
    assert jnp.allclose(out1, ref[0], atol=2e-4, rtol=2e-4), "single-graph mismatch"

    # batch not divisible by the pack size (exercises the dummy-graph padding)
    out_odd = jax.block_until_ready(
        contextual_layers_forward(x[:3], adj[:3], packed, g_pack=2))
    assert jnp.allclose(out_odd, ref[:3], atol=2e-4, rtol=2e-4), "padded-batch mismatch"

    print("KERNEL_OK")
</pallas_src>

<mosaic_0001>
module attributes {stable_mosaic.version = 11 : i64} {
  func.func @_contextual_layers_kernel(%arg0: i32, %arg1: memref<4x32x16xf32, #tpu.memory_space<vmem>>, %arg2: memref<4x32x32xi8, #tpu.memory_space<vmem>>, %arg3: memref<3x32x33xf32, #tpu.memory_space<vmem>>, %arg4: memref<6x32xf32, #tpu.memory_space<vmem>>, %arg5: memref<4x32x32xf32, #tpu.memory_space<vmem>>) attributes {dimension_semantics = [#tpu.dimension_semantics<parallel>], iteration_bounds = array<i64: 2>, scalar_prefetch = 0 : i64, scratch_operands = 0 : i64, tpu.core_type = #tpu.core_type<tc>, window_params = [{transform_indices = @transform_0, window_bounds = array<i64: 4, 32, 16>}, {transform_indices = @transform_1, window_bounds = array<i64: 4, 32, 32>}, {pipeline_mode = #tpu.pipeline_mode<synchronous>, transform_indices = @transform_2, window_bounds = array<i64: 3, 32, 33>}, {pipeline_mode = #tpu.pipeline_mode<synchronous>, transform_indices = @transform_3, window_bounds = array<i64: 6, 32>}, {transform_indices = @transform_4, window_bounds = array<i64: 4, 32, 32>}]} {
    %c0 = arith.constant 0 : index
    %c0_0 = arith.constant 0 : index
    %c0_1 = arith.constant 0 : index
    %0 = vector.load %arg1[%c0, %c0_0, %c0_1] : memref<4x32x16xf32, #tpu.memory_space<vmem>>, vector<4x32x16xf32>
    %1 = vector.shape_cast %0 : vector<4x32x16xf32> to vector<128x16xf32>
    %c0_2 = arith.constant 0 : index
    %c0_3 = arith.constant 0 : index
    %c0_4 = arith.constant 0 : index
    %2 = vector.load %arg2[%c0_2, %c0_3, %c0_4] : memref<4x32x32xi8, #tpu.memory_space<vmem>>, vector<4x32x32xi8>
    %3 = arith.sitofp %2 : vector<4x32x32xi8> to vector<4x32x32xf32>
    %4 = vector.shape_cast %3 : vector<4x32x32xf32> to vector<128x32xf32>
    %5 = tpu.iota {dimensions = array<i32: 0>} : vector<128x1xi32>
    %c0_i32 = arith.constant 0 : i32
    %6 = vector.broadcast %c0_i32 : i32 to vector<128x1xi32>
    %7 = arith.cmpi sge, %5, %6 : vector<128x1xi32>
    %c32_i32 = arith.constant 32 : i32
    %8 = vector.broadcast %c32_i32 : i32 to vector<128x1xi32>
    %9 = arith.cmpi slt, %5, %8 : vector<128x1xi32>
    %10 = arith.andi %7, %9 : vector<128x1xi1>
    %cst = arith.constant 0.000000e+00 : f32
    %11 = vector.broadcast %cst : f32 to vector<128x32xf32>
    %12 = arith.cmpf ogt, %4, %11 : vector<128x32xf32>
    %13 = vector.broadcast %10 : vector<128x1xi1> to vector<128x32xi1>
    %14 = arith.andi %13, %12 : vector<128x32xi1>
    %cst_5 = arith.constant 0.000000e+00 : f32
    %cst_6 = arith.constant -1.000000e+30 : f32
    %15 = vector.broadcast %cst_5 : f32 to vector<128x32xf32>
    %16 = vector.broadcast %cst_6 : f32 to vector<128x32xf32>
    %17 = arith.select %14, %15, %16 : vector<128x32xi1>, vector<128x32xf32>
    %c32_i32_7 = arith.constant 32 : i32
    %18 = vector.broadcast %c32_i32_7 : i32 to vector<128x1xi32>
    %19 = arith.cmpi sge, %5, %18 : vector<128x1xi32>
    %c64_i32 = arith.constant 64 : i32
    %20 = vector.broadcast %c64_i32 : i32 to vector<128x1xi32>
    %21 = arith.cmpi slt, %5, %20 : vector<128x1xi32>
    %22 = arith.andi %19, %21 : vector<128x1xi1>
    %cst_8 = arith.constant 0.000000e+00 : f32
    %23 = vector.broadcast %cst_8 : f32 to vector<128x32xf32>
    %24 = arith.cmpf ogt, %4, %23 : vector<128x32xf32>
    %25 = vector.broadcast %22 : vector<128x1xi1> to vector<128x32xi1>
    %26 = arith.andi %25, %24 : vector<128x32xi1>
    %cst_9 = arith.constant 0.000000e+00 : f32
    %cst_10 = arith.constant -1.000000e+30 : f32
    %27 = vector.broadcast %cst_9 : f32 to vector<128x32xf32>
    %28 = vector.broadcast %cst_10 : f32 to vector<128x32xf32>
    %29 = arith.select %26, %27, %28 : vector<128x32xi1>, vector<128x32xf32>
    %c64_i32_11 = arith.constant 64 : i32
    %30 = vector.broadcast %c64_i32_11 : i32 to vector<128x1xi32>
    %31 = arith.cmpi sge, %5, %30 : vector<128x1xi32>
    %c96_i32 = arith.constant 96 : i32
    %32 = vector.broadcast %c96_i32 : i32 to vector<128x1xi32>
    %33 = arith.cmpi slt, %5, %32 : vector<128x1xi32>
    %34 = arith.andi %31, %33 : vector<128x1xi1>
    %cst_12 = arith.constant 0.000000e+00 : f32
    %35 = vector.broadcast %cst_12 : f32 to vector<128x32xf32>
    %36 = arith.cmpf ogt, %4, %35 : vector<128x32xf32>
    %37 = vector.broadcast %34 : vector<128x1xi1> to vector<128x32xi1>
    %38 = arith.andi %37, %36 : vector<128x32xi1>
    %cst_13 = arith.constant 0.000000e+00 : f32
    %cst_14 = arith.constant -1.000000e+30 : f32
    %39 = vector.broadcast %cst_13 : f32 to vector<128x32xf32>
    %40 = vector.broadcast %cst_14 : f32 to vector<128x32xf32>
    %41 = arith.select %38, %39, %40 : vector<128x32xi1>, vector<128x32xf32>
    %c96_i32_15 = arith.constant 96 : i32
    %42 = vector.broadcast %c96_i32_15 : i32 to vector<128x1xi32>
    %43 = arith.cmpi sge, %5, %42 : vector<128x1xi32>
    %c128_i32 = arith.constant 128 : i32
    %44 = vector.broadcast %c128_i32 : i32 to vector<128x1xi32>
    %45 = arith.cmpi slt, %5, %44 : vector<128x1xi32>
    %46 = arith.andi %43, %45 : vector<128x1xi1>
    %cst_16 = arith.constant 0.000000e+00 : f32
    %47 = vector.broadcast %cst_16 : f32 to vector<128x32xf32>
    %48 = arith.cmpf ogt, %4, %47 : vector<128x32xf32>
    %49 = vector.broadcast %46 : vector<128x1xi1> to vector<128x32xi1>
    %50 = arith.andi %49, %48 : vector<128x32xi1>
    %cst_17 = arith.constant 0.000000e+00 : f32
    %cst_18 = arith.constant -1.000000e+30 : f32
    %51 = vector.broadcast %cst_17 : f32 to vector<128x32xf32>
    %52 = vector.broadcast %cst_18 : f32 to vector<128x32xf32>
    %53 = arith.select %50, %51, %52 : vector<128x32xi1>, vector<128x32xf32>
    %54 = tpu.concatenate %17, %29, %41, %53 in 1 : vector<128x32xf32>, vector<128x32xf32>, vector<128x32xf32>, vector<128x32xf32> -> vector<128x128xf32>
    %55 = tpu.iota {dimensions = array<i32: 1>} : vector<1x33xi32>
    %c32_i32_19 = arith.constant 32 : i32
    %56 = vector.broadcast %c32_i32_19 : i32 to vector<1x33xi32>
    %57 = arith.cmpi eq, %55, %56 : vector<1x33xi32>
    %58 = arith.extui %57 : vector<1x33xi1> to vector<1x33xi32>
    %59 = arith.sitofp %58 : vector<1x33xi32> to vector<1x33xf32>
    %c0_20 = arith.constant 0 : index
    %c0_21 = arith.constant 0 : index
    %c0_22 = arith.constant 0 : index
    %60 = vector.load %arg3[%c0_20, %c0_21, %c0_22] : memref<3x32x33xf32, #tpu.memory_space<vmem>>, vector<1x32x33xf32>
    %61 = vector.shape_cast %60 : vector<1x32x33xf32> to vector<32x33xf32>
    %c0_23 = arith.constant 0 : index
    %c0_24 = arith.constant 0 : index
    %62 = vector.load %arg4[%c0_23, %c0_24] : memref<6x32xf32, #tpu.memory_space<vmem>>, vector<1x32xf32>
    %c3 = arith.constant 3 : index
    %c0_25 = arith.constant 0 : index
    %63 = vector.load %arg4[%c3, %c0_25] : memref<6x32xf32, #tpu.memory_space<vmem>>, vector<1x32xf32>
    %64 = vector.extract_strided_slice %61 {offsets = [0, 0], sizes = [16, 33], strides = [1, 1]} : vector<32x33xf32> to vector<16x33xf32>
    %65 = vector.extract_strided_slice %62 {offsets = [0, 0], sizes = [1, 16], strides = [1, 1]} : vector<1x32xf32> to vector<1x16xf32>
    %cst_26 = arith.constant dense<0.000000e+00> : vector<128x33xf32>
    %66 = tpu.matmul %1, %64, %cst_26 {dimension_numbers = #tpu.dot_dimension_numbers<[1], [0], [0], [1], [0, 0, 1, 1], [], []>} : vector<128x16xf32>, vector<16x33xf32>, vector<128x33xf32> -> vector<128x33xf32>
    %67 = vector.broadcast %59 : vector<1x33xf32> to vector<128x33xf32>
    %68 = arith.mulf %66, %67 : vector<128x33xf32>
    %cst_27 = arith.constant dense<0.000000e+00> : vector<128xf32>
    %69 = vector.multi_reduction <add>, %68, %cst_27 [1] : vector<128x33xf32> to vector<128xf32>
    %70 = vector.shape_cast %69 : vector<128xf32> to vector<128x1xf32>
    %cst_28 = arith.constant dense<0.000000e+00> : vector<1x128xf32>
    %71 = tpu.matmul %65, %1, %cst_28 {dimension_numbers = #tpu.dot_dimension_numbers<[1], [1], [0], [0], [0, 0, 1, 0], [], []>} : vector<1x16xf32>, vector<128x16xf32>, vector<1x128xf32> -> vector<1x128xf32>
    %72 = vector.broadcast %70 : vector<128x1xf32> to vector<128x128xf32>
    %73 = vector.broadcast %71 : vector<1x128xf32> to vector<128x128xf32>
    %74 = arith.addf %72, %73 : vector<128x128xf32>
    %cst_29 = arith.constant 2.000000e-01 : f32
    %75 = vector.broadcast %cst_29 : f32 to vector<128x128xf32>
    %76 = arith.mulf %75, %74 : vector<128x128xf32>
    %77 = arith.maximumf %74, %76 : vector<128x128xf32>
    %78 = arith.addf %77, %54 : vector<128x128xf32>
    %cst_30 = arith.constant dense<0xFF800000> : vector<128xf32>
    %79 = vector.multi_reduction <maximumf>, %78, %cst_30 [1] : vector<128x128xf32> to vector<128xf32>
    %80 = vector.shape_cast %79 : vector<128xf32> to vector<128x1xf32>
    %81 = vector.broadcast %80 : vector<128x1xf32> to vector<128x128xf32>
    %82 = arith.subf %78, %81 : vector<128x128xf32>
    %83 = math.exp %82 : vector<128x128xf32>
    %cst_31 = arith.constant dense<0.000000e+00> : vector<128xf32>
    %84 = vector.multi_reduction <add>, %83, %cst_31 [1] : vector<128x128xf32> to vector<128xf32>
    %85 = vector.shape_cast %84 : vector<128xf32> to vector<128x1xf32>
    %86 = tpu.reciprocal %85 {approx = true} : vector<128x1xf32> -> vector<128x1xf32>
    %87 = arith.mulf %85, %86 : vector<128x1xf32>
    %cst_32 = arith.constant 2.000000e+00 : f32
    %88 = vector.broadcast %cst_32 : f32 to vector<128x1xf32>
    %89 = arith.subf %88, %87 : vector<128x1xf32>
    %90 = arith.mulf %86, %89 : vector<128x1xf32>
    %cst_33 = arith.constant dense<0.000000e+00> : vector<128x33xf32>
    %91 = tpu.matmul %83, %66, %cst_33 {dimension_numbers = #tpu.dot_dimension_numbers<[1], [0], [0], [1], [0, 0, 1, 1], [], []>} : vector<128x128xf32>, vector<128x33xf32>, vector<128x33xf32> -> vector<128x33xf32>
    %92 = vector.extract_strided_slice %91 {offsets = [0, 0], sizes = [128, 32], strides = [1, 1]} : vector<128x33xf32> to vector<128x32xf32>
    %93 = vector.broadcast %90 : vector<128x1xf32> to vector<128x32xf32>
    %94 = arith.mulf %92, %93 : vector<128x32xf32>
    %95 = vector.broadcast %63 : vector<1x32xf32> to vector<128x32xf32>
    %96 = arith.addf %94, %95 : vector<128x32xf32>
    %cst_34 = arith.constant 0.000000e+00 : f32
    %97 = vector.broadcast %cst_34 : f32 to vector<128x32xf32>
    %98 = arith.maximumf %96, %97 : vector<128x32xf32>
    %c1 = arith.constant 1 : index
    %c0_35 = arith.constant 0 : index
    %c0_36 = arith.constant 0 : index
    %99 = vector.load %arg3[%c1, %c0_35, %c0_36] : memref<3x32x33xf32, #tpu.memory_space<vmem>>, vector<1x32x33xf32>
    %100 = vector.shape_cast %99 : vector<1x32x33xf32> to vector<32x33xf32>
    %c1_37 = arith.constant 1 : index
    %c0_38 = arith.constant 0 : index
    %101 = vector.load %arg4[%c1_37, %c0_38] : memref<6x32xf32, #tpu.memory_space<vmem>>, vector<1x32xf32>
    %c4 = arith.constant 4 : index
    %c0_39 = arith.constant 0 : index
    %102 = vector.load %arg4[%c4, %c0_39] : memref<6x32xf32, #tpu.memory_space<vmem>>, vector<1x32xf32>
    %cst_40 = arith.constant dense<0.000000e+00> : vector<128x33xf32>
    %103 = tpu.matmul %98, %100, %cst_40 {dimension_numbers = #tpu.dot_dimension_numbers<[1], [0], [0], [1], [0, 0, 1, 1], [], []>} : vector<128x32xf32>, vector<32x33xf32>, vector<128x33xf32> -> vector<128x33xf32>
    %104 = vector.broadcast %59 : vector<1x33xf32> to vector<128x33xf32>
    %105 = arith.mulf %103, %104 : vector<128x33xf32>
    %cst_41 = arith.constant dense<0.000000e+00> : vector<128xf32>
    %106 = vector.multi_reduction <add>, %105, %cst_41 [1] : vector<128x33xf32> to vector<128xf32>
    %107 = vector.shape_cast %106 : vector<128xf32> to vector<128x1xf32>
    %cst_42 = arith.constant dense<0.000000e+00> : vector<1x128xf32>
    %108 = tpu.matmul %101, %98, %cst_42 {dimension_numbers = #tpu.dot_dimension_numbers<[1], [1], [0], [0], [0, 0, 1, 0], [], []>} : vector<1x32xf32>, vector<128x32xf32>, vector<1x128xf32> -> vector<1x128xf32>
    %109 = vector.broadcast %107 : vector<128x1xf32> to vector<128x128xf32>
    %110 = vector.broadcast %108 : vector<1x128xf32> to vector<128x128xf32>
    %111 = arith.addf %109, %110 : vector<128x128xf32>
    %cst_43 = arith.constant 2.000000e-01 : f32
    %112 = vector.broadcast %cst_43 : f32 to vector<128x128xf32>
    %113 = arith.mulf %112, %111 : vector<128x128xf32>
    %114 = arith.maximumf %111, %113 : vector<128x128xf32>
    %115 = arith.addf %114, %54 : vector<128x128xf32>
    %cst_44 = arith.constant dense<0xFF800000> : vector<128xf32>
    %116 = vector.multi_reduction <maximumf>, %115, %cst_44 [1] : vector<128x128xf32> to vector<128xf32>
    %117 = vector.shape_cast %116 : vector<128xf32> to vector<128x1xf32>
    %118 = vector.broadcast %117 : vector<128x1xf32> to vector<128x128xf32>
    %119 = arith.subf %115, %118 : vector<128x128xf32>
    %120 = math.exp %119 : vector<128x128xf32>
    %cst_45 = arith.constant dense<0.000000e+00> : vector<128xf32>
    %121 = vector.multi_reduction <add>, %120, %cst_45 [1] : vector<128x128xf32> to vector<128xf32>
    %122 = vector.shape_cast %121 : vector<128xf32> to vector<128x1xf32>
    %123 = tpu.reciprocal %122 {approx = true} : vector<128x1xf32> -> vector<128x1xf32>
    %124 = arith.mulf %122, %123 : vector<128x1xf32>
    %cst_46 = arith.constant 2.000000e+00 : f32
    %125 = vector.broadcast %cst_46 : f32 to vector<128x1xf32>
    %126 = arith.subf %125, %124 : vector<128x1xf32>
    %127 = arith.mulf %123, %126 : vector<128x1xf32>
    %cst_47 = arith.constant dense<0.000000e+00> : vector<128x33xf32>
    %128 = tpu.matmul %120, %103, %cst_47 {dimension_numbers = #tpu.dot_dimension_numbers<[1], [0], [0], [1], [0, 0, 1, 1], [], []>} : vector<128x128xf32>, vector<128x33xf32>, vector<128x33xf32> -> vector<128x33xf32>
    %129 = vector.extract_strided_slice %128 {offsets = [0, 0], sizes = [128, 32], strides = [1, 1]} : vector<128x33xf32> to vector<128x32xf32>
    %130 = vector.broadcast %127 : vector<128x1xf32> to vector<128x32xf32>
    %131 = arith.mulf %129, %130 : vector<128x32xf32>
    %132 = vector.broadcast %102 : vector<1x32xf32> to vector<128x32xf32>
    %133 = arith.addf %131, %132 : vector<128x32xf32>
    %cst_48 = arith.constant 0.000000e+00 : f32
    %134 = vector.broadcast %cst_48 : f32 to vector<128x32xf32>
    %135 = arith.maximumf %133, %134 : vector<128x32xf32>
    %c2 = arith.constant 2 : index
    %c0_49 = arith.constant 0 : index
    %c0_50 = arith.constant 0 : index
    %136 = vector.load %arg3[%c2, %c0_49, %c0_50] : memref<3x32x33xf32, #tpu.memory_space<vmem>>, vector<1x32x33xf32>
    %137 = vector.shape_cast %136 : vector<1x32x33xf32> to vector<32x33xf32>
    %c2_51 = arith.constant 2 : index
    %c0_52 = arith.constant 0 : index
    %138 = vector.load %arg4[%c2_51, %c0_52] : memref<6x32xf32, #tpu.memory_space<vmem>>, vector<1x32xf32>
    %c5 = arith.constant 5 : index
    %c0_53 = arith.constant 0 : index
    %139 = vector.load %arg4[%c5, %c0_53] : memref<6x32xf32, #tpu.memory_space<vmem>>, vector<1x32xf32>
    %cst_54 = arith.constant dense<0.000000e+00> : vector<128x33xf32>
    %140 = tpu.matmul %135, %137, %cst_54 {dimension_numbers = #tpu.dot_dimension_numbers<[1], [0], [0], [1], [0, 0, 1, 1], [], []>} : vector<128x32xf32>, vector<32x33xf32>, vector<128x33xf32> -> vector<128x33xf32>
    %141 = vector.broadcast %59 : vector<1x33xf32> to vector<128x33xf32>
    %142 = arith.mulf %140, %141 : vector<128x33xf32>
    %cst_55 = arith.constant dense<0.000000e+00> : vector<128xf32>
    %143 = vector.multi_reduction <add>, %142, %cst_55 [1] : vector<128x33xf32> to vector<128xf32>
    %144 = vector.shape_cast %143 : vector<128xf32> to vector<128x1xf32>
    %cst_56 = arith.constant dense<0.000000e+00> : vector<1x128xf32>
    %145 = tpu.matmul %138, %135, %cst_56 {dimension_numbers = #tpu.dot_dimension_numbers<[1], [1], [0], [0], [0, 0, 1, 0], [], []>} : vector<1x32xf32>, vector<128x32xf32>, vector<1x128xf32> -> vector<1x128xf32>
    %146 = vector.broadcast %144 : vector<128x1xf32> to vector<128x128xf32>
    %147 = vector.broadcast %145 : vector<1x128xf32> to vector<128x128xf32>
    %148 = arith.addf %146, %147 : vector<128x128xf32>
    %cst_57 = arith.constant 2.000000e-01 : f32
    %149 = vector.broadcast %cst_57 : f32 to vector<128x128xf32>
    %150 = arith.mulf %149, %148 : vector<128x128xf32>
    %151 = arith.maximumf %148, %150 : vector<128x128xf32>
    %152 = arith.addf %151, %54 : vector<128x128xf32>
    %cst_58 = arith.constant dense<0xFF800000> : vector<128xf32>
    %153 = vector.multi_reduction <maximumf>, %152, %cst_58 [1] : vector<128x128xf32> to vector<128xf32>
    %154 = vector.shape_cast %153 : vector<128xf32> to vector<128x1xf32>
    %155 = vector.broadcast %154 : vector<128x1xf32> to vector<128x128xf32>
    %156 = arith.subf %152, %155 : vector<128x128xf32>
    %157 = math.exp %156 : vector<128x128xf32>
    %cst_59 = arith.constant dense<0.000000e+00> : vector<128xf32>
    %158 = vector.multi_reduction <add>, %157, %cst_59 [1] : vector<128x128xf32> to vector<128xf32>
    %159 = vector.shape_cast %158 : vector<128xf32> to vector<128x1xf32>
    %160 = tpu.reciprocal %159 {approx = true} : vector<128x1xf32> -> vector<128x1xf32>
    %161 = arith.mulf %159, %160 : vector<128x1xf32>
    %cst_60 = arith.constant 2.000000e+00 : f32
    %162 = vector.broadcast %cst_60 : f32 to vector<128x1xf32>
    %163 = arith.subf %162, %161 : vector<128x1xf32>
    %164 = arith.mulf %160, %163 : vector<128x1xf32>
    %cst_61 = arith.constant dense<0.000000e+00> : vector<128x33xf32>
    %165 = tpu.matmul %157, %140, %cst_61 {dimension_numbers = #tpu.dot_dimension_numbers<[1], [0], [0], [1], [0, 0, 1, 1], [], []>} : vector<128x128xf32>, vector<128x33xf32>, vector<128x33xf32> -> vector<128x33xf32>
    %166 = vector.extract_strided_slice %165 {offsets = [0, 0], sizes = [128, 32], strides = [1, 1]} : vector<128x33xf32> to vector<128x32xf32>
    %167 = vector.broadcast %164 : vector<128x1xf32> to vector<128x32xf32>
    %168 = arith.mulf %166, %167 : vector<128x32xf32>
    %169 = vector.broadcast %139 : vector<1x32xf32> to vector<128x32xf32>
    %170 = arith.addf %168, %169 : vector<128x32xf32>
    %cst_62 = arith.constant 0.000000e+00 : f32
    %171 = vector.broadcast %cst_62 : f32 to vector<128x32xf32>
    %172 = arith.maximumf %170, %171 : vector<128x32xf32>
    %173 = vector.shape_cast %172 : vector<128x32xf32> to vector<4x32x32xf32>
    %c0_63 = arith.constant 0 : index
    %c0_64 = arith.constant 0 : index
    %c0_65 = arith.constant 0 : index
    %174 = vector.load %arg5[%c0_63, %c0_64, %c0_65] : memref<4x32x32xf32, #tpu.memory_space<vmem>>, vector<4x32x32xf32>
    tpu.vector_store %arg5[%c0_63, %c0_64, %c0_65], %173 {strides = array<i32>} : memref<4x32x32xf32, #tpu.memory_space<vmem>>, vector<4x32x32xf32>,
    return
  }
  func.func @transform_0(%arg0: i32) -> (i32, i32, i32) {
    %c0_i32 = arith.constant 0 : i32
    %c0_i32_0 = arith.constant 0 : i32
    %c0_i32_1 = arith.constant 0 : i32
    return %arg0, %c0_i32, %c0_i32_0 : i32, i32, i32
  }
  func.func @transform_1(%arg0: i32) -> (i32, i32, i32) {
    %c0_i32 = arith.constant 0 : i32
    %c0_i32_0 = arith.constant 0 : i32
    %c0_i32_1 = arith.constant 0 : i32
    return %arg0, %c0_i32, %c0_i32_0 : i32, i32, i32
  }
  func.func @transform_2(%arg0: i32) -> (i32, i32, i32) {
    %c0_i32 = arith.constant 0 : i32
    %c0_i32_0 = arith.constant 0 : i32
    %c0_i32_1 = arith.constant 0 : i32
    %c0_i32_2 = arith.constant 0 : i32
    return %c0_i32, %c0_i32_0, %c0_i32_1 : i32, i32, i32
  }
  func.func @transform_3(%arg0: i32) -> (i32, i32) {
    %c0_i32 = arith.constant 0 : i32
    %c0_i32_0 = arith.constant 0 : i32
    %c0_i32_1 = arith.constant 0 : i32
    return %c0_i32, %c0_i32_0 : i32, i32
  }
  func.func @transform_4(%arg0: i32) -> (i32, i32, i32) {
    %c0_i32 = arith.constant 0 : i32
    %c0_i32_0 = arith.constant 0 : i32
    %c0_i32_1 = arith.constant 0 : i32
    return %arg0, %c0_i32, %c0_i32_0 : i32, i32, i32
  }
}

</mosaic_0001>

<bundles_post_ra>
// kernel: tpu_custom_call.1
= control target key start
LH: loop header
LB: loop body
LE: loop exit
PB: predicated region body
PF: predicated region fallthrough
CT: control target
= control target key end

     0   :  { %9 = vsyncpa [#allocation3], 0  ;;  %s4671_s0 = inlined_call_operand.vmem [shape: f32[8,32,16], index: 0, kind: input, shape index: {}]   ;;  %s4672_s1 = inlined_call_operand.vmem [shape: s8[8,32,32], index: 1, kind: input, shape index: {}]   ;;  %s4673_s2 = inlined_call_operand.vmem [shape: f32[3,32,33], index: 2, kind: input, shape index: {}]   ;;  %s4674_s3 = inlined_call_operand.vmem [shape: f32[6,32], index: 3, kind: input, shape index: {}]   ;;  %s4675_s4 = inlined_call_operand.hbm [shape: f32[8,32,32], index: 4, kind: output, shape index: {}]  }
   0x1   :  { %11 = vsyncpa [#allocation3 + $0x1], 0  ;;  %s3277_s15 = smov 0   ;;  %s3279_s16 = smov 0  }
   0x2   :  { %s3281_s17 = smov 0   ;;  %s3283_s18 = smov 0  }
   0x3 LB: > { %s3298_s19 = sadd.s32 4294967295, %s3243_s18   ;;  %s2797_s20 = sadd.s32 4294967294, %s3243_s18   ;;  %s3243_s18 = sphi %s3283_s18, %s4697_s18   ;;  %s3239_s17 = sphi %s3281_s17, %s4696_s17   ;;  %s3235_s16 = sphi %s3279_s16, %s4695_s16   ;;  %s3231_s15 = sphi %s3277_s15, %s4694_s15  }
   0x4   : > { %s3302_s21 = sadd.s32 1, %s3243_s18   ;;  %s118_s22 = sadd.s32 1, %s3239_s17 }
   0x5   : > { %s115_s23 = ssub.s32 %s3243_s18, %s3302_s21  ;;  %p128_p0 = scmp.ne.s32.totalorder %s3239_s17, %s3235_s16 }
   0x6   : > { %p116_p1 = scmp.eq.s32.totalorder %s115_s23, 0  ;;  %p129_p2 = scmp.eq.s32.totalorder %s3298_s19, 1 }
   0x7   : > { %p134_p3 = scmp.ne.s32.totalorder %s3235_s16, %s3231_s15  ;;  %p135_p4 = scmp.eq.s32.totalorder %s2797_s20, 1 }
   0x8   : > { %s3313_s24 = scalar_select %p116_p1, %s3239_s17, %s118_s22  }
   0x9   : > { %p3315_p5 = por %p129_p2, %p128_p0  ;;  %p3319_p6 = por %p135_p4, %p134_p3 }
   0xa   : > { %p2800_p7 = scmp.ge.s32.totalorder %s3243_s18, 1  ;;  %p178_p8 = scmp.lt.s32.totalorder %s3243_s18, 3 }
   0xc   : > { %p179_p9 = pnand %p2800_p7, %p178_p8 }
   0xd   : > { %s2802_s5 = sshll.u32 (!%p179_p9), %s3298_s19, 2  ;;  %s3246_s6 = smov (!%p179_p9), 64  }
   0xe   : > { %182 = sbr.rel (%p179_p9) target bundleno = 2182 (0x886), region = 36  ;;  %p211_p10 = scmp.lt.s32.totalorder (!%p179_p9), %s2802_s5, 7 }
   0xf   : > { %s3247_s7 = smov (!%p179_p9), 32   ;;  %s3248_s12 = smov (!%p179_p9), 96  }
  0x10   : > { %s207_s9 = sand.u32 (!%p179_p9), 1, %s3235_s16   ;;  %s2923_s14 = sshll.u32 (!%p179_p9), %s3298_s19, 7 }
  0x11   : > { %s2719_s23 = scalar_lea.hbm (!%p179_p9), %s4675_s4, %s2923_s14  ;;  %s2707_s29 = scalar_lea.sflag (!%p179_p9), [#allocation3], %s207_s9 }
  0x12   : > { %s2722_s28 = sshll.u32 (!%p179_p9), %s2719_s23, 4  ;;  %s2723_s28 = int_to_ptr.hbm [resolvable:$true] %s2722_s28 }
  0x13   : > { %v1006_v0 = vld [vmem:[%s4673_s2 + $0x8] sm:$0xff]  ;;  %v1005_v1 = vld [vmem:[%s4673_s2] sm:$0xff]  ;;  %v3245_v2 = vmov -1e+30   ;;  %s4699_s5 = smov (!%p211_p10, %s2802_s5), 7  ;;  %vm1009_vm0 = vcmask 130048   ;;  %v1000_v41 = vlaneseq }
  0x14   : > { %1072 = vmatpush.msra.mxu0 %v1006_v0  ;;  %837 = vrot.lane.b32.xlu1 %v3245_v2, %s3246_s6  ;;  %s2921_s8 = sshll.u32 %s4699_s5, 5  ;;  %s2806_s13 = sshll.u32 %s4699_s5, 3  ;;  %v1007_v37 = vld [vmem:[%s4674_s3] sm:$0x1]  ;;  %v3249_v43 = vmov 0.0   ;;  %vm1139_vm8 = vcmask 269312  }
  0x15   : > { %775 = vrot.lane.b32.xlu2 %v3245_v2, %s3247_s7  ;;  %773 = vrot.lane.b32.xlu0 %v3245_v2, %s3247_s7  ;;  %s3341_s11 = scalar_lea.vmem %s4671_s0, %s2921_s8  ;;  %s3385_s22 = scalar_lea.vmem %s4672_s1, %s2806_s13  ;;  %v1001_v42 = vand.u32 127, %v1000_v41  ;;  %vm949_vm10 = vcmask 261120   ;;  %vm966_vm11 = vcmask 523264   ;;  %vm983_vm13 = vcmask 785408  }
  0x16   : > { %1073 = vmatpush.msra.mxu0 %v1005_v1  ;;  %v3344_v3 = vld [vmem:[%s3341_s11] sm:$0xff]  ;;  %v3355_v4 = vld [vmem:[%s3341_s11 + $0x8] sm:$0xff]  ;;  %v3366_v5 = vld [vmem:[%s3341_s11 + $0x10] sm:$0xff]  ;;  %s3195_s19 = sshra.s32 %s2723_s28, 4  ;;  %s3196_s19 = int_to_ptr.hbm [resolvable:$true] %s3195_s19 }
  0x17   : > { %2808 = vmatmul.msk.f32.vlgmr.msra.gmra.mxu0 %vm1009_vm0, %v3344_v3  ;;  %v3371_v6 = vld [vmem:[%s3341_s11 + $0x78] sm:$0xff]  ;;  %v3390_v8 = vld [vmem:[%s3341_s11 + $0x70] sm:$0xff]  ;;  %v3393_v9 = vld [vmem:[%s3385_s22 + $0x8] sm:$0xff]  ;;  %vm1002_vm7 = vcmp.eq.s32.totalorder %v1001_v42, 32  ;;  %s3197_s30 = scalar_lea.hbm %s3196_s19, 128  ;;  %p3202_p0 = scmp.lt.s32.totalorder %s3196_s19, %s4675_s4 }
  0x18   : > { %2824 = vmatpush.xpose.msk.msra.mxu1 %vm1009_vm0, %v3371_v6  ;;  %v3380_v7 = vld [vmem:[%s3341_s11 + $0x18] sm:$0xff]  ;;  %v248_v10 = vunpack.c.0.s8 %v3393_v9  ;;  %v3401_v11 = vld [vmem:[%s3341_s11 + $0x68] sm:$0xff]  ;;  %v228_v13 = vld [vmem:[%s3341_s11 + $0x20] sm:$0xff]  ;;  %v250_v34 = vunpack.c.2.s8 %v3393_v9  ;;  %v249_v38 = vunpack.c.1.s8 %v3393_v9  ;;  %v3497_v44 = vsel %vm1002_vm7, 1.0, %v3249_v43  ;;  %p3198_p11 = scmp.ne.s32.totalorder %s3196_s19, %s3197_s30 }
  0x19   : > { %v3410_v15 = vld [vmem:[%s3341_s11 + $0x60] sm:$0xff]  ;;  %v235_v16 = vld [vmem:[%s3341_s11 + $0x58] sm:$0xff]  ;;  %v229_v17 = vld [vmem:[%s3341_s11 + $0x28] sm:$0xff] }
  0x1a   : > { %v264_v12 = vcvt.s32.f32 %v248_v10  ;;  %v234_v18 = vld [vmem:[%s3341_s11 + $0x50] sm:$0xff]  ;;  %v3424_v19 = vld [vmem:[%s3385_s22 + $0x18] sm:$0xff]  ;;  %v233_v24 = vld [vmem:[%s3341_s11 + $0x48] sm:$0xff]  ;;  %v266_v35 = vcvt.s32.f32 %v250_v34  ;;  %v265_v39 = vcvt.s32.f32 %v249_v38  ;;  %p3199_p12 = pnand %p3198_p11, %p3315_p5 }
  0x1b   : > { %v256_v20 = vunpack.c.0.s8 %v3424_v19  ;;  %v3431_v21 = vld [vmem:[%s3385_s22 + $0x10] sm:$0xff]  ;;  %v232_v28 = vld [vmem:[%s3341_s11 + $0x40] sm:$0xff]  ;;  %v257_v30 = vunpack.c.1.s8 %v3424_v19  ;;  %v231_v32 = vld [vmem:[%s3341_s11 + $0x38] sm:$0xff] }
  0x1c   : > { %901 = vrot.lane.b32.xlu1 %v3245_v2, %s3248_s12  ;;  %2825 = vmatpush.xpose.msk.msra.mxu1 %vm1009_vm0, %v3390_v8  ;;  %vm345_vm1 = vcmp.gt.f32.partialorder %v264_v12, 0.0  ;;  %v255_v23 = vunpack.c.3.s8 %v3431_v21  ;;  %v230_v25 = vld [vmem:[%s3341_s11 + $0x30] sm:$0xff]  ;;  %vm347_vm5 = vcmp.gt.f32.partialorder %v266_v35, 0.0  ;;  %vm346_vm6 = vcmp.gt.f32.partialorder %v265_v39, 0.0  ;;  %p3200_p13 = pneg %p3199_p12 }
  0x1d   : > { %841 = vrot.lane.b32.xlu2 %v3245_v2, %s3246_s6  ;;  %843 = vrot.lane.b32.xlu0 %v3245_v2, %s3246_s6  ;;  %v521_v14 = vsel %vm345_vm1, 0.0, %v3245_v2  ;;  %v272_v22 = vcvt.s32.f32 %v256_v20  ;;  %v273_v31 = vcvt.s32.f32 %v257_v30  ;;  %v523_v36 = vsel %vm347_vm5, 0.0, %v3245_v2 }
  0x1e   : > { %v271_v26 = vcvt.s32.f32 %v255_v23  ;;  %v522_v40 = vsel %vm346_vm6, 0.0, %v3245_v2 }
  0x1f   : > { %2809 = vmatmul.msk.f32.gmra.mxu0 %vm1009_vm0, %v3355_v4  ;;  %vm353_vm2 = vcmp.gt.f32.partialorder %v272_v22, 0.0  ;;  %vm354_vm4 = vcmp.gt.f32.partialorder %v273_v31, 0.0 }
  0x20   : > { %2826 = vmatpush.xpose.msk.msra.mxu1 %vm1009_vm0, %v3401_v11  ;;  %v753_v27 = vsel %vm353_vm2, 0.0, %v3245_v2  ;;  %vm352_vm3 = vcmp.gt.f32.partialorder %v271_v26, 0.0  ;;  %v754_v33 = vsel %vm354_vm4, 0.0, %v3245_v2 }
  0x21   : > { %v640_v29 = vsel %vm352_vm3, 0.0, %v3245_v2 }
  0x24   : > { %839 = vrot.lane.b32.xlu1 %v3245_v2, %s3246_s6  ;;  %2827 = vmatpush.xpose.msk.msra.mxu1 %vm1009_vm0, %v3410_v15 }
  0x25   : > { %907 = vrot.lane.b32.xlu2 %v3245_v2, %s3248_s12  ;;  %795 = vrot.lane.b32.xlu0 %v3245_v2, %s3247_s7 }
  0x27   : > { %2810 = vmatmul.msk.f32.gmra.mxu0 %vm1009_vm0, %v3366_v5 }
  0x28   : > { %2828 = vmatpush.xpose.msk.msra.mxu1 %vm1009_vm0, %v235_v16 }
  0x2c   : > { %903 = vrot.lane.b32.xlu1 %v3245_v2, %s3248_s12  ;;  %2829 = vmatpush.xpose.msk.msra.mxu1 %vm1009_vm0, %v234_v18 }
  0x2d   : > { %923 = vrot.lane.b32.xlu2 %v3245_v2, %s3248_s12  ;;  %925 = vrot.lane.b32.xlu0 %v753_v27, %s3248_s12 }
  0x2f   : > { %2811 = vmatmul.msk.f32.gmra.mxu0 %vm1009_vm0, %v3380_v7 }
  0x30   : > { %2830 = vmatpush.xpose.msk.msra.mxu1 %vm1009_vm0, %v233_v24 }
  0x34   : > { %777 = vrot.lane.b32.xlu1 %v3245_v2, %s3247_s7  ;;  %2831 = vmatpush.xpose.msk.msra.mxu1 %vm1009_vm0, %v232_v28 }
  0x35   : > { %781 = vrot.lane.b32.xlu2 %v521_v14, %s3247_s7  ;;  %911 = vrot.lane.b32.xlu0 %v3245_v2, %s3248_s12 }
  0x37   : > { %2812 = vmatmul.msk.f32.gmra.mxu0 %vm1009_vm0, %v228_v13 }
  0x38   : > { %2832 = vmatpush.xpose.msk.msra.mxu1 %vm1009_vm0, %v231_v32 }
  0x3c   : > { %905 = vrot.lane.b32.xlu1 %v3245_v2, %s3248_s12  ;;  %2833 = vmatpush.xpose.msk.msra.mxu1 %vm1009_vm0, %v230_v25 }
  0x3d   : > { %799 = vrot.lane.b32.xlu2 %v3245_v2, %s3247_s7 }
  0x3f   : > { %2813 = vmatmul.msk.f32.gmra.mxu0 %vm1009_vm0, %v229_v17 }
  0x40   : > { %2834 = vmatpush.xpose.msk.msra.mxu1 %vm1009_vm0, %v229_v17 }
  0x44   : > { %779 = vrot.lane.b32.xlu1 %v3245_v2, %s3247_s7  ;;  %2835 = vmatpush.xpose.msk.msra.mxu1 %vm1009_vm0, %v228_v13 }
  0x45   : > { %863 = vrot.lane.b32.xlu2 %v3245_v2, %s3246_s6 }
  0x47   : > { %2814 = vmatmul.msk.f32.gmra.mxu0 %vm1009_vm0, %v230_v25 }
  0x48   : > { %2836 = vmatpush.xpose.msk.msra.mxu1 %vm1009_vm0, %v3380_v7 }
  0x4c   : > { %859 = vrot.lane.b32.xlu1 %v640_v29, %s3246_s6  ;;  %2837 = vmatpush.xpose.msk.msra.mxu1 %vm1009_vm0, %v3366_v5 }
  0x4d   : > { %927 = vrot.lane.b32.xlu2 %v754_v33, %s3248_s12 }
  0x4f   : > { %2815 = vmatmul.msk.f32.gmra.mxu0 %vm1009_vm0, %v231_v32 }
  0x50   : > { %2838 = vmatpush.xpose.msk.msra.mxu1 %vm1009_vm0, %v3355_v4 }
  0x54   : > { %845 = vrot.lane.b32.xlu1 %v3245_v2, %s3246_s6  ;;  %2839 = vmatpush.xpose.msk.msra.mxu1 %vm1009_vm0, %v3344_v3 }
  0x55   : > { %785 = vrot.lane.b32.xlu2 %v523_v36, %s3247_s7 }
  0x57   : > { %2816 = vmatmul.msk.f32.gmra.mxu0 %vm1009_vm0, %v232_v28  ;;  %2840 = vmatmul.msk.f32.vlgmr.msra.gmra.mxu1 %vm1009_vm0, %v1007_v37  ;;  %v3574_v28 = vld [vmem:[%s3385_s22] sm:$0xff] }
  0x58   : > { %v244_v30 = vunpack.c.0.s8 %v3574_v28  ;;  %v245_v39 = vunpack.c.1.s8 %v3574_v28 }
  0x5a   : > { %v260_v33 = vcvt.s32.f32 %v244_v30 }
  0x5c   : > { %909 = vrot.lane.b32.xlu1 %v3245_v2, %s3248_s12  ;;  %vm341_vm9 = vcmp.gt.f32.partialorder %v260_v33, 0.0 }
  0x5d   : > { %v405_v42 = vsel %vm341_vm9, 0.0, %v3245_v2 }
  0x5f   : > { %2817 = vmatmul.msk.f32.gmra.mxu0 %vm1009_vm0, %v233_v24 }
  0x64   : > { %797 = vrot.lane.b32.xlu1 %v3245_v2, %s3247_s7 }
  0x67   : > { %2818 = vmatmul.msk.f32.gmra.mxu0 %vm1009_vm0, %v234_v18 }
  0x6c   : > { %861 = vrot.lane.b32.xlu1 %v3245_v2, %s3246_s6 }
  0x6f   : > { %2819 = vmatmul.msk.f32.gmra.mxu0 %vm1009_vm0, %v235_v16  ;;  %v3526_v61 = vpop.permute.xlu2 %775 }
  0x74   : > { %783 = vrot.lane.b32.xlu1 %v522_v40, %s3247_s7 }
  0x77   : > { %2820 = vmatmul.msk.f32.gmra.mxu0 %vm1009_vm0, %v3410_v15  ;;  %v3535_v3 = vpop.permute.xlu2 %841 }
  0x7c   : > { %847 = vrot.lane.b32.xlu1 %v3245_v2, %s3246_s6 }
  0x7f   : > { %2821 = vmatmul.msk.f32.gmra.mxu0 %vm1009_vm0, %v3401_v11 }
  0x86   : > { %v838_v27 = vpop.permute.xlu1 %837 }
  0x87   : > { %2822 = vmatmul.msk.f32.gmra.mxu0 %vm1009_vm0, %v3390_v8  ;;  %v774_v11 = vpop.permute.xlu0 %773 }
  0x8e   : > { %v902_v37 = vpop.permute.xlu1 %901 }
  0x8f   : > { %2823 = vmatmul.msk.f32.gmra.mxu0 %vm1009_vm0, %v3371_v6  ;;  %v3542_v6 = vpop.permute.xlu2 %907  ;;  %v3554_v13 = vpop.permute.xlu0 %843 }
  0x94   : > { %v3499_v45 = vpop.f32.mrf.mxu0 }
  0x95   : > { %v1123_v46 = vmul.f32 %v3497_v44, %v3499_v45 }
  0x97   : > { %v1140_v47 = vsel %vm1139_vm8, %v1123_v46, 0.0  ;;  %v3548_v8 = vpop.permute.xlu2 %923  ;;  %v3562_v17 = vpop.permute.xlu0 %795  ;;  %v261_v46 = vcvt.s32.f32 %v245_v39 }
  0x98   : > { %1141 = vadd.xlane.f32.xlu0 %v1140_v47  ;;  %v950_v47 = vsel %vm949_vm10, %v405_v42, %v774_v11 }
  0x99   : > { %vm342_vm12 = vcmp.gt.f32.partialorder %v261_v46, 0.0 }
  0x9c   : > { %v3504_v48 = vpop.f32.mrf.mxu0 }
  0x9d   : > { %v1124_v49 = vmul.f32 %v3497_v44, %v3504_v48 }
  0x9f   : > { %v1143_v50 = vsel %vm1139_vm8, %v1124_v49, 0.0  ;;  %v3556_v14 = vpop.permute.xlu2 %781  ;;  %v3569_v25 = vpop.permute.xlu0 %925 }
  0xa0   : > { %1144 = vadd.xlane.f32.xlu2 %v1143_v50 }
  0xa4   : > { %v3509_v51 = vpop.f32.mrf.mxu0 }
  0xa5   : > { %v1125_v52 = vmul.f32 %v3497_v44, %v3509_v51 }
  0xa7   : > { %v1146_v53 = vsel %vm1139_vm8, %v1125_v52, 0.0  ;;  %v3564_v18 = vpop.permute.xlu2 %799  ;;  %v3579_v34 = vpop.permute.xlu0 %911 }
  0xa8   : > { %1147 = vadd.xlane.f32.xlu0 %v1146_v53 }
  0xac   : > { %v3514_v54 = vpop.f32.mrf.mxu0 }
  0xad   : > { %v1126_v55 = vmul.f32 %v3497_v44, %v3514_v54 }
  0xaf   : > { %v1149_v56 = vsel %vm1139_vm8, %v1126_v55, 0.0  ;;  %v3571_v26 = vpop.permute.xlu2 %863 }
  0xb0   : > { %1150 = vadd.xlane.f32.xlu2 %v1149_v56  ;;  %v840_v56 = vpop.permute.xlu1 %839 }
  0xb4   : > { %v3519_v57 = vpop.f32.mrf.mxu0 }
  0xb5   : > { %v1127_v58 = vmul.f32 %v3497_v44, %v3519_v57 }
  0xb7   : > { %v1152_v59 = vsel %vm1139_vm8, %v1127_v58, 0.0  ;;  %v3581_v35 = vpop.permute.xlu2 %927  ;;  %v967_v58 = vsel %vm966_vm11, %v950_v47, %v838_v27 }
  0xb8   : > { %1153 = vadd.xlane.f32.xlu0 %v1152_v59 }
  0xbc   : > { %v3524_v60 = vpop.f32.mrf.mxu0 }
  0xbd   : > { %v1128_v62 = vmul.f32 %v3497_v44, %v3524_v60 }
  0xbf   : > { %v1155_v63 = vsel %vm1139_vm8, %v1128_v62, 0.0  ;;  %v3595_v49 = vpop.permute.xlu2 %785 }
  0xc0   : > { %1156 = vadd.xlane.f32.xlu0 %v1155_v63  ;;  %v406_v63 = vsel %vm342_vm12, 0.0, %v3245_v2 }
  0xc4   : > { %v3531_v0 = vpop.f32.mrf.mxu0 }
  0xc5   : > { %v1129_v1 = vmul.f32 %v3497_v44, %v3531_v0 }
  0xc7   : > { %v1158_v4 = vsel %vm1139_vm8, %v1129_v1, 0.0 }
  0xc8   : > { %1159 = vadd.xlane.f32.xlu1 %v1158_v4  ;;  %913 = vrot.lane.b32.xlu2 %v3245_v2, %s3248_s12  ;;  %v3605_v4 = vsel %vm983_vm13, %v967_v58, %v902_v37  ;;  %v251_v37 = vunpack.c.3.s8 %v3393_v9 }
  0xcc   : > { %v3540_v5 = vpop.f32.mrf.mxu0 }
  0xcd   : > { %v1130_v36 = vmul.f32 %v3497_v44, %v3540_v5 }
  0xcf   : > { %v1161_v41 = vsel %vm1139_vm8, %v1130_v36, 0.0 }
  0xd4   : > { %849 = vrot.lane.b32.xlu0 %v3245_v2, %s3246_s6  ;;  %v3546_v7 = vpop.f32.mrf.mxu0  ;;  %v1208_v40 = vpop.f32.mrf.mxu1 }
  0xd5   : > { %v3590_v43 = vperm.slane %v1208_v40, 0  ;;  %v247_v40 = vunpack.c.3.s8 %v3574_v28 }
  0xd7   : > { %v263_v42 = vcvt.s32.f32 %v247_v40 }
  0xd9   : > { %vm344_vm2 = vcmp.gt.f32.partialorder %v263_v42, 0.0 }
  0xda   : > { %v408_v9 = vsel %vm344_vm2, 0.0, %v3245_v2 }
  0xdc   : > { %v3550_v10 = vpop.f32.mrf.mxu0 }
  0xe4   : > { %v3552_v12 = vpop.f32.mrf.mxu0 }
  0xec   : > { %v3558_v15 = vpop.f32.mrf.mxu0 }
  0xed   : > { %v1134_v16 = vmul.f32 %v3497_v44, %v3558_v15 }
  0xef   : > { %v1173_v20 = vsel %vm1139_vm8, %v1134_v16, 0.0  ;;  %v951_v16 = vsel %vm949_vm10, %v406_v63, %v3526_v61 }
  0xf0   : > { %1174 = vadd.xlane.f32.xlu1 %v1173_v20 }
  0xf4   : > { %v1111_v22 = vpop.f32.mrf.mxu0 }
  0xf5   : > { %v1135_v23 = vmul.f32 %v3497_v44, %v1111_v22 }
  0xf7   : > { %v1176_v24 = vsel %vm1139_vm8, %v1135_v23, 0.0 }
  0xf8   : > { %1177 = vadd.xlane.f32.xlu2 %v1176_v24  ;;  %v968_v24 = vsel %vm966_vm11, %v951_v16, %v840_v56 }
  0xfc   : > { %v1114_v29 = vpop.f32.mrf.mxu0 }
  0xfd   : > { %v1136_v31 = vmul.f32 %v3497_v44, %v1114_v29 }
  0xff   : > { %v1179_v32 = vsel %vm1139_vm8, %v1136_v31, 0.0  ;;  %v259_v31 = vunpack.c.3.s8 %v3424_v19 }
 0x100   : > { %1180 = vadd.xlane.f32.xlu2 %v1179_v32 }
 0x104   : > { %v3585_v38 = vpop.f32.mrf.mxu0 }
 0x108   : > { %1162 = vadd.xlane.f32.xlu2 %v1161_v41  ;;  %v267_v41 = vcvt.s32.f32 %v251_v37 }
 0x109   : > { %801 = vrot.lane.b32.xlu1 %v3245_v2, %s3247_s7 }
 0x10a   : > { %vm348_vm1 = vcmp.gt.f32.partialorder %v267_v41, 0.0 }
 0x10b   : > { %v1142_v50 = vpop.xlane.xlu0 %1141  ;;  %v524_v46 = vsel %vm348_vm1, 0.0, %v3245_v2 }
 0x10c   : > { %v1212_v52 = vadd.f32 %v3590_v43, %v1142_v50  ;;  %v1120_v53 = vpop.f32.mrf.mxu0 }
 0x10d   : > { %1452 = vmatpush.msra.mxu2 %v1120_v53  ;;  %2924 = vmatpush.msra.mxu3 %v1120_v53  ;;  %v1138_v55 = vmul.f32 %v3497_v44, %v1120_v53 }
 0x10e   : > { %v1228_v59 = vmul.f32 0.2, %v1212_v52 }
 0x10f   : > { %1453 = vmatpush.msra.mxu2 %v3585_v38  ;;  %2925 = vmatpush.msra.mxu3 %v3585_v38  ;;  %v1185_v62 = vsel %vm1139_vm8, %v1138_v55, 0.0 }
 0x110   : > { %1186 = vadd.xlane.f32.xlu2 %v1185_v62  ;;  %v1244_v1 = vmax.f32 %v1212_v52, %v1228_v59  ;;  %v1132_v59 = vmul.f32 %v3497_v44, %v3550_v10 }
 0x111   : > { %1454 = vmatpush.msra.mxu2 %v1114_v29  ;;  %2926 = vmatpush.msra.mxu3 %v1114_v29  ;;  %v904_v29 = vpop.permute.xlu1 %903 }
 0x112   : > { %v3608_v11 = vadd.f32 %v1244_v1, %v3605_v4  ;;  %v3620_v30 = vsel %vm983_vm13, %v968_v24, %v904_v29  ;;  %v246_v29 = vunpack.c.2.s8 %v3574_v28 }
 0x113   : > { %v1145_v20 = vpop.xlane.xlu2 %1144  ;;  %1455 = vmatpush.msra.mxu2 %v1111_v22  ;;  %2927 = vmatpush.msra.mxu3 %v1111_v22 }
 0x114   : > { %v1213_v23 = vadd.f32 %v3590_v43, %v1145_v20  ;;  %1276 = vmax.xlane.f32.xlu0 %v3608_v11 }
 0x115   : > { %1456 = vmatpush.msra.mxu2 %v3558_v15  ;;  %2928 = vmatpush.msra.mxu3 %v3558_v15  ;;  %v1131_v15 = vmul.f32 %v3497_v44, %v3546_v7 }
 0x116   : > { %v1229_v27 = vmul.f32 0.2, %v1213_v23 }
 0x117   : > { %1457 = vmatpush.msra.mxu2 %v3552_v12  ;;  %2929 = vmatpush.msra.mxu3 %v3552_v12  ;;  %v1164_v32 = vsel %vm1139_vm8, %v1131_v15, 0.0 }
 0x118   : > { %v1245_v61 = vmax.f32 %v1213_v23, %v1229_v27 }
 0x119   : > { %1458 = vmatpush.msra.mxu2 %v3550_v10  ;;  %2930 = vmatpush.msra.mxu3 %v3550_v10  ;;  %v253_v10 = vunpack.c.1.s8 %v3431_v21 }
 0x11a   : > { %v3625_v22 = vadd.f32 %v1245_v61, %v3620_v30 }
 0x11b   : > { %1459 = vmatpush.msra.mxu2 %v3546_v7  ;;  %2931 = vmatpush.msra.mxu3 %v3546_v7  ;;  %v258_v7 = vunpack.c.2.s8 %v3424_v19  ;;  %v1148_v58 = vpop.xlane.xlu0 %1147  ;;  %v269_v23 = vcvt.s32.f32 %v253_v10 }
 0x11c   : > { %1278 = vmax.xlane.f32.xlu0 %v3625_v22 }
 0x11d   : > { %1460 = vmatpush.msra.mxu2 %v3540_v5  ;;  %2932 = vmatpush.msra.mxu3 %v3540_v5  ;;  %v274_v36 = vcvt.s32.f32 %v258_v7  ;;  %vm350_vm3 = vcmp.gt.f32.partialorder %v269_v23, 0.0 }
 0x11e   : > { %v638_v27 = vsel %vm350_vm3, 0.0, %v3245_v2 }
 0x11f   : > { %1461 = vmatpush.msra.mxu2 %v3531_v0  ;;  %2933 = vmatpush.msra.mxu3 %v3531_v0  ;;  %v275_v0 = vcvt.s32.f32 %v259_v31  ;;  %vm355_vm0 = vcmp.gt.f32.partialorder %v274_v36, 0.0  ;;  %v262_v31 = vcvt.s32.f32 %v246_v29 }
 0x121   : > { %1462 = vmatpush.msra.mxu2 %v3524_v60  ;;  %2934 = vmatpush.msra.mxu3 %v3524_v60  ;;  %vm356_vm14 = vcmp.gt.f32.partialorder %v275_v0, 0.0  ;;  %v252_v60 = vunpack.c.0.s8 %v3431_v21  ;;  %vm343_vm4 = vcmp.gt.f32.partialorder %v262_v31, 0.0  ;;  %v1214_v0 = vadd.f32 %v3590_v43, %v1148_v58 }
 0x123   : > { %1463 = vmatpush.msra.mxu2 %v3519_v57  ;;  %2935 = vmatpush.msra.mxu3 %v3519_v57  ;;  %v756_v57 = vsel %vm356_vm14, 0.0, %v3245_v2  ;;  %v268_v5 = vcvt.s32.f32 %v252_v60  ;;  %v1151_v19 = vpop.xlane.xlu2 %1150 }
 0x124   : > { %1165 = vadd.xlane.f32.xlu0 %v1164_v32  ;;  %v1215_v47 = vadd.f32 %v3590_v43, %v1151_v19 }
 0x125   : > { %1464 = vmatpush.msra.mxu2 %v3514_v54  ;;  %2936 = vmatpush.msra.mxu3 %v3514_v54  ;;  %v1137_v54 = vmul.f32 %v3497_v44, %v3585_v38  ;;  %vm349_vm15 = vcmp.gt.f32.partialorder %v268_v5, 0.0  ;;  %v755_v38 = vsel %vm355_vm0, 0.0, %v3245_v2  ;;  %v1230_v5 = vmul.f32 0.2, %v1214_v0 }
 0x126   : > { %v1231_v52 = vmul.f32 0.2, %v1215_v47 }
 0x127   : > { %1465 = vmatpush.msra.mxu2 %v3509_v51  ;;  %2937 = vmatpush.msra.mxu3 %v3509_v51  ;;  %v1182_v51 = vsel %vm1139_vm8, %v1137_v54, 0.0 }
 0x128   : > { %915 = vrot.lane.b32.xlu2 %v3245_v2, %s3248_s12  ;;  %v1247_v56 = vmax.f32 %v1215_v47, %v1231_v52  ;;  %v1133_v52 = vmul.f32 %v3497_v44, %v3552_v12  ;;  %v963_v12 = vsel %vm949_vm10, -1e+30, %v3564_v18 }
 0x129   : > { %1466 = vmatpush.msra.mxu2 %v3504_v48  ;;  %2938 = vmatpush.msra.mxu3 %v3504_v48  ;;  %v778_v48 = vpop.permute.xlu1 %777 }
 0x12b   : > { %1467 = vmatpush.msra.mxu2 %v3499_v45  ;;  %2939 = vmatpush.msra.mxu3 %v3499_v45  ;;  %v637_v45 = vsel %vm349_vm15, 0.0, %v3245_v2  ;;  %v1154_v16 = vpop.xlane.xlu0 %1153 }
 0x12c   : > { %v1216_v42 = vadd.f32 %v3590_v43, %v1154_v16 }
 0x130   : > { %931 = vrot.lane.b32.xlu2 %v756_v57, %s3248_s12  ;;  %v407_v57 = vsel %vm343_vm4, 0.0, %v3245_v2 }
 0x131   : > { %v3667_v33 = vpop.permute.xlu1 %905  ;;  %v952_v28 = vsel %vm949_vm10, %v407_v57, %v778_v48 }
 0x132   : > { %v969_v36 = vsel %vm966_vm11, %v952_v28, %v3535_v3 }
 0x133   : > { %1183 = vadd.xlane.f32.xlu1 %v1182_v51  ;;  %v3700_v24 = vpop.xlane.xlu0 %1156  ;;  %v3722_v40 = vsel %vm983_vm13, %v969_v36, %v3667_v33  ;;  %v1232_v33 = vmul.f32 0.2, %v1216_v42 }
 0x138   : > { %867 = vrot.lane.b32.xlu0 %v3245_v2, %s3246_s6  ;;  %789 = vrot.lane.b32.xlu2 %v3245_v2, %s3247_s7 }
 0x139   : > { %v780_v39 = vpop.permute.xlu1 %779 }
 0x13a   : > { %v953_v53 = vsel %vm949_vm10, %v408_v9, %v780_v39 }
 0x13b   : > { %v970_v55 = vsel %vm966_vm11, %v953_v53, %v3554_v13  ;;  %v1167_v13 = vsel %vm1139_vm8, %v1132_v59, 0.0 }
 0x13c   : > { %v3690_v63 = vsel %vm983_vm13, %v970_v55, %v3542_v6 }
 0x13d   : > { %v3693_v1 = vadd.f32 %v1247_v56, %v3690_v63  ;;  %v1248_v56 = vmax.f32 %v1216_v42, %v1232_v33 }
 0x140   : > { %853 = vrot.lane.b32.xlu0 %v637_v45, %s3246_s6  ;;  %917 = vrot.lane.b32.xlu2 %v3245_v2, %s3248_s12  ;;  %v914_v45 = vpop.permute.xlu2 %913 }
 0x141   : > { %v3677_v50 = vpop.permute.xlu1 %859 }
 0x146   : > { %v3705_v61 = vpop.permute.xlu0 %849 }
 0x149   : > { %v846_v62 = vpop.permute.xlu1 %845 }
 0x14c   : > { %865 = vrot.lane.b32.xlu1 %v3245_v2, %s3246_s6 }
 0x151   : > { %v910_v20 = vpop.permute.xlu1 %909 }
 0x154   : > { %929 = vrot.lane.b32.xlu1 %v755_v38, %s3248_s12  ;;  %v1246_v38 = vmax.f32 %v1214_v0, %v1230_v5 }
 0x156   : > { %v3726_v48 = vadd.f32 %v1246_v38, %v3722_v40 }
 0x159   : > { %v798_v6 = vpop.permute.xlu1 %797 }
 0x15a   : > { %v962_v16 = vsel %vm949_vm10, -1e+30, %v798_v6 }
 0x15c   : > { %787 = vrot.lane.b32.xlu1 %v524_v46, %s3247_s7  ;;  %v954_v46 = vsel %vm949_vm10, -1e+30, %v3556_v14  ;;  %v1170_v14 = vsel %vm1139_vm8, %v1133_v52, 0.0  ;;  %v961_v52 = vsel %vm949_vm10, -1e+30, %v3562_v17 }
 0x15d   : > { %v971_v53 = vsel %vm966_vm11, %v954_v46, %v846_v62 }
 0x161   : > { %v862_v15 = vpop.permute.xlu1 %861 }
 0x162   : > { %v979_v62 = vsel %vm966_vm11, %v962_v16, %v862_v15 }
 0x163   : > { %v3758_v6 = vsel %vm983_vm13, %v979_v62, %v3569_v25  ;;  %v956_v25 = vsel %vm949_vm10, -1e+30, %v3595_v49 }
 0x164   : > { %851 = vrot.lane.b32.xlu1 %v3245_v2, %s3246_s6 }
 0x169   : > { %1282 = vmax.xlane.f32.xlu2 %v3693_v1  ;;  %v3712_v60 = vpop.permute.xlu1 %783 }
 0x16a   : > { %1168 = vadd.xlane.f32.xlu0 %v1167_v13  ;;  %v3743_v13 = vsel %vm983_vm13, %v971_v53, %v910_v20  ;;  %v980_v20 = vsel %vm966_vm11, %v963_v12, %v3571_v26 }
 0x16b   : > { %v1178_v3 = vpop.xlane.xlu2 %1177  ;;  %v3748_v23 = vadd.f32 %v1248_v56, %v3743_v13  ;;  %v3766_v18 = vsel %vm983_vm13, %v980_v20, %v3581_v35 }
 0x16c   : > { %803 = vrot.lane.b32.xlu1 %v3245_v2, %s3247_s7  ;;  %v1224_v9 = vadd.f32 %v3590_v43, %v1178_v3 }
 0x16e   : > { %v1240_v59 = vmul.f32 0.2, %v1224_v9 }
 0x171   : > { %v3728_v41 = vpop.permute.xlu1 %847 }
 0x173   : > { %v1181_v47 = vpop.xlane.xlu2 %1180 }
 0x174   : > { %v1225_v55 = vadd.f32 %v3590_v43, %v1181_v47 }
 0x176   : > { %v1241_v10 = vmul.f32 0.2, %v1225_v55 }
 0x178   : > { %v1257_v29 = vmax.f32 %v1225_v55, %v1241_v10  ;;  %v978_v55 = vsel %vm966_vm11, %v961_v52, %v3677_v50 }
 0x179   : > { %v1160_v19 = vpop.xlane.xlu1 %1159  ;;  %v3805_v16 = vsel %vm983_vm13, %v978_v55, %v3548_v8 }
 0x17a   : > { %v1218_v31 = vadd.f32 %v3590_v43, %v1160_v19  ;;  %v3772_v26 = vadd.f32 %v1257_v29, %v3766_v18 }
 0x17b   : > { %v1163_v57 = vpop.xlane.xlu2 %1162 }
 0x17c   : > { %v1234_v15 = vmul.f32 0.2, %v1218_v31 }
 0x17e   : > { %855 = vrot.lane.b32.xlu0 %v638_v27, %s3246_s6  ;;  %v1256_v27 = vmax.f32 %v1224_v9, %v1240_v59  ;;  %v1250_v5 = vmax.f32 %v1218_v31, %v1234_v15 }
 0x180   : > { %v3762_v0 = vadd.f32 %v1256_v27, %v3758_v6 }
 0x181   : > { %919 = vrot.lane.b32.xlu2 %v3245_v2, %s3248_s12  ;;  %v1175_v58 = vpop.xlane.xlu1 %1174 }
 0x182   : > { %v1223_v33 = vadd.f32 %v3590_v43, %v1175_v58 }
 0x184   : > { %v1239_v47 = vmul.f32 0.2, %v1223_v33 }
 0x186   : > { %v1255_v56 = vmax.f32 %v1223_v33, %v1239_v47  ;;  %v254_v33 = vunpack.c.2.s8 %v3431_v21 }
 0x187   : > { %v1277_v32 = vpop.xlane.xlu0 %1276 }
 0x188   : > { %v1308_v54 = vsub.f32 %v3608_v11, %v1277_v32  ;;  %v3808_v10 = vadd.f32 %v1255_v56, %v3805_v16 }
 0x189   : > { %v802_v32 = vpop.permute.xlu1 %801 }
 0x18a   : > { %v1324_v51 = vmul.f32 1.442695, %v1308_v54  ;;  %v973_v54 = vsel %vm966_vm11, %v956_v25, %v3705_v61  ;;  %v964_v61 = vsel %vm949_vm10, -1e+30, %v802_v32  ;;  %v1219_v25 = vadd.f32 %v3590_v43, %v1163_v57 }
 0x18b   : > { %v3780_v35 = vsel %vm983_vm13, %v973_v54, %v914_v45 }
 0x18c   : > { %2989 = vpow2.f32 %v1324_v51  ;;  %v3783_v28 = vadd.f32 %v1250_v5, %v3780_v35 }
 0x18f   : > { %v1279_v7 = vpop.xlane.xlu0 %1278 }
 0x190   : > { %v1309_v37 = vsub.f32 %v3625_v22, %v1279_v7  ;;  %v1187_v7 = vpop.xlane.xlu2 %1186 }
 0x191   : > { %v1227_v58 = vadd.f32 %v3590_v43, %v1187_v7 }
 0x192   : > { %v3718_v39 = vpop.eup %2989  ;;  %v1326_v11 = vmul.f32 1.442695, %v1309_v37 }
 0x193   : > { %1468 = vmatmul.f32.vlgmr.msra.gmra.mxu2 %v3718_v39  ;;  %v1243_v17 = vmul.f32 0.2, %v1227_v58 }
 0x194   : > { %2991 = vpow2.f32 %v1326_v11 }
 0x195   : > { %v1259_v29 = vmax.f32 %v1227_v58, %v1243_v17 }
 0x196   : > { %1280 = vmax.xlane.f32.xlu1 %v3726_v48 }
 0x197   : > { %v1166_v9 = vpop.xlane.xlu0 %1165 }
 0x198   : > { %v916_v38 = vpop.permute.xlu2 %915  ;;  %v1220_v50 = vadd.f32 %v3590_v43, %v1166_v9 }
 0x19a   : > { %v3731_v22 = vpop.eup %2991  ;;  %v1236_v54 = vmul.f32 0.2, %v1220_v50 }
 0x19b   : > { %1471 = vmatmul.f32.gmra.mxu2 %v3731_v22 }
 0x1a0   : > { %v932_v53 = vpop.permute.xlu2 %931 }
 0x1a6   : > { %v1184_v51 = vpop.xlane.xlu1 %1183 }
 0x1a7   : > { %v1226_v49 = vadd.f32 %v3590_v43, %v1184_v51 }
 0x1a8   : > { %1171 = vadd.xlane.f32.xlu0 %v1170_v14  ;;  %v790_v12 = vpop.permute.xlu2 %789 }
 0x1a9   : > { %v1242_v37 = vmul.f32 0.2, %v1226_v49  ;;  %v958_v8 = vsel %vm949_vm10, -1e+30, %v790_v12  ;;  %v955_v12 = vsel %vm949_vm10, -1e+30, %v3712_v60 }
 0x1aa   : > { %1284 = vmax.xlane.f32.xlu2 %v3748_v23  ;;  %v868_v14 = vpop.permute.xlu0 %867 }
 0x1ab   : > { %v1258_v3 = vmax.f32 %v1226_v49, %v1242_v37  ;;  %v1235_v49 = vmul.f32 0.2, %v1219_v25 }
 0x1af   : > { %791 = vrot.lane.b32.xlu1 %v3245_v2, %s3247_s7 }
 0x1b0   : > { %1300 = vmax.xlane.f32.xlu0 %v3762_v0  ;;  %v918_v5 = vpop.permute.xlu2 %917 }
 0x1b2   : > { %1302 = vmax.xlane.f32.xlu2 %v3772_v26  ;;  %v854_v31 = vpop.permute.xlu0 %853 }
 0x1b3   : > { %v975_v51 = vsel %vm966_vm11, %v958_v8, %v854_v31 }
 0x1b4   : > { %v3828_v37 = vsel %vm983_vm13, %v975_v51, %v918_v5 }
 0x1ba   : > { %1288 = vmax.xlane.f32.xlu2 %v3783_v28 }
 0x1be   : > { %v866_v36 = vpop.permute.xlu1 %865 }
 0x1bf   : > { %v981_v45 = vsel %vm966_vm11, %v964_v61, %v866_v36  ;;  %v1252_v61 = vmax.f32 %v1220_v50, %v1236_v54 }
 0x1c4   : > { %921 = vrot.lane.b32.xlu0 %v3245_v2, %s3248_s12  ;;  %s2801_s12 = sshll.u32 %s207_s9, 7 }
 0x1c5   : > { %s4586_s13 = scalar_lea.vmem [#allocation2], %s2801_s12 }
 0x1c6   : > { %v930_v11 = vpop.permute.xlu1 %929  ;;  %s2720_s27 = sshll.u32 %s4586_s13, 4  ;;  %s2721_s27 = int_to_ptr.vmem [resolvable:$true] %s2720_s27 }
 0x1c7   : > { %v3792_v42 = vsel %vm983_vm13, %v981_v45, %v930_v11  ;;  %v3834_v45 = vadd.f32 %v1252_v61, %v3828_v37  ;;  %v1251_v11 = vmax.f32 %v1219_v25, %v1235_v49 }
 0x1c8   : > { %v3795_v19 = vadd.f32 %v1258_v3, %v3792_v42 }
 0x1ca   : > { %1304 = vmax.xlane.f32.xlu2 %v3795_v19 }
 0x1ce   : > { %v788_v46 = vpop.permute.xlu1 %787 }
 0x1cf   : > { %v957_v7 = vsel %vm949_vm10, -1e+30, %v788_v46  ;;  %v270_v46 = vcvt.s32.f32 %v254_v33 }
 0x1d1   : > { %vm351_vm5 = vcmp.gt.f32.partialorder %v270_v46, 0.0 }
 0x1d6   : > { %v852_v59 = vpop.permute.xlu1 %851 }
 0x1d7   : > { %v974_v36 = vsel %vm966_vm11, %v957_v7, %v852_v59 }
 0x1d8   : > { %v3831_v57 = vsel %vm983_vm13, %v974_v36, %v916_v38  ;;  %v639_v38 = vsel %vm351_vm5, 0.0, %v3245_v2 }
 0x1d9   : > { %1298 = vmax.xlane.f32.xlu1 %v3808_v10  ;;  %v3838_v3 = vadd.f32 %v1251_v11, %v3831_v57 }
 0x1dc   : > { %v1283_v52 = vpop.xlane.xlu2 %1282 }
 0x1dd   : > { %v1311_v55 = vsub.f32 %v3693_v1, %v1283_v52  ;;  %v1169_v58 = vpop.xlane.xlu0 %1168 }
 0x1de   : > { %v804_v62 = vpop.permute.xlu1 %803 }
 0x1df   : > { %v965_v27 = vsel %vm949_vm10, -1e+30, %v804_v62  ;;  %v1330_v21 = vmul.f32 1.442695, %v1311_v55  ;;  %v972_v62 = vsel %vm966_vm11, %v955_v12, %v3728_v41 }
 0x1e0   : > { %v982_v20 = vsel %vm966_vm11, %v965_v27, %v868_v14  ;;  %v1217_v14 = vadd.f32 %v3590_v43, %v3700_v24  ;;  %v3861_v8 = vsel %vm983_vm13, %v972_v62, %v3579_v34 }
 0x1e1   : > { %v3817_v32 = vsel %vm983_vm13, %v982_v20, %v932_v53 }
 0x1e2   : > { %v3821_v15 = vadd.f32 %v1259_v29, %v3817_v32 }
 0x1e4   : > { %1306 = vmax.xlane.f32.xlu2 %v3821_v15  ;;  %v920_v56 = vpop.permute.xlu2 %919 }
 0x1ec   : > { %1292 = vmax.xlane.f32.xlu2 %v3834_v45 }
 0x1ee   : > { %1290 = vmax.xlane.f32.xlu0 %v3838_v3 }
 0x1f0   : > { %v856_v60 = vpop.permute.xlu0 %855 }
 0x1f2   : > { %793 = vrot.lane.b32.xlu1 %v3245_v2, %s3247_s7  ;;  %v1233_v2 = vmul.f32 0.2, %v1217_v14  ;;  %s3201_s7 = scalar_lea.hbm %s4675_s4, 256 }
 0x1f3   : > { %p3203_p1 = scmp.lt.s32.totalorder %s3201_s7, %s3197_s30 }
 0x1f4   : > { %v1249_v27 = vmax.f32 %v1217_v14, %v1233_v2 }
 0x1f5   : > { %p3204_p2 = por %p3203_p1, %p3202_p0 }
 0x1f6   : > { %v3865_v25 = vadd.f32 %v1249_v27, %v3861_v8 }
 0x1f7   : > { %p3205_p3 = pnand %p3204_p2, %p3200_p13 }
 0x1fa   : > { %857 = vrot.lane.b32.xlu1 %v639_v38, %s3246_s6 }
 0x209   : > { %v1281_v47 = vpop.xlane.xlu1 %1280 }
 0x20a   : > { %v1310_v9 = vsub.f32 %v3726_v48, %v1281_v47  ;;  %v1221_v48 = vadd.f32 %v3590_v43, %v1169_v58 }
 0x20c   : > { %v1328_v53 = vmul.f32 1.442695, %v1310_v9  ;;  %v1237_v24 = vmul.f32 0.2, %v1221_v48 }
 0x20e   : > { %2993 = vpow2.f32 %v1328_v53  ;;  %v1253_v54 = vmax.f32 %v1221_v48, %v1237_v24  ;;  %v2843_v24 = vld [vmem:[%s4673_s2 + $0x30] sm:$0xff] }
 0x20f   : > { %2995 = vpow2.f32 %v1330_v21 }
 0x214   : > { %v2994_v59 = vpop.eup %2993 }
 0x215   : > { %1474 = vmatmul.f32.gmra.mxu2 %v2994_v59  ;;  %v3853_v17 = vpop.eup %2995 }
 0x21b   : > { %v1172_v7 = vpop.xlane.xlu0 %1171 }
 0x21c   : > { %v1222_v14 = vadd.f32 %v3590_v43, %v1172_v7  ;;  %v2844_v43 = vld [vmem:[%s4673_s2 + $0x38] sm:$0xff] }
 0x21d   : > { %1477 = vmatmul.f32.gmra.mxu2 %v3853_v17  ;;  %v1285_v1 = vpop.xlane.xlu2 %1284  ;;  %1633 = vmatpush.msrb.mxu3 %v2844_v43 }
 0x21e   : > { %v1312_v50 = vsub.f32 %v3748_v23, %v1285_v1 }
 0x21f   : > { %1634 = vmatpush.msrb.mxu3 %v2843_v24 }
 0x220   : > { %v1332_v20 = vmul.f32 1.442695, %v1312_v50 }
 0x221   : > { %v792_v29 = vpop.permute.xlu1 %791 }
 0x222   : > { %2997 = vpow2.f32 %v1332_v20  ;;  %v959_v31 = vsel %vm949_vm10, -1e+30, %v792_v29  ;;  %v2842_v29 = vld [vmem:[%s4673_s2 + $0x28] sm:$0xff] }
 0x223   : > { %v976_v41 = vsel %vm966_vm11, %v959_v31, %v856_v60  ;;  %v1301_v11 = vpop.xlane.xlu0 %1300  ;;  %1635 = vmatpush.msrb.mxu3 %v2842_v29 }
 0x224   : > { %1286 = vmax.xlane.f32.xlu1 %v3865_v25  ;;  %v3870_v23 = vsel %vm983_vm13, %v976_v41, %v920_v56  ;;  %v1320_v38 = vsub.f32 %v3762_v0, %v1301_v11 }
 0x225   : > { %v3873_v51 = vadd.f32 %v1253_v54, %v3870_v23  ;;  %v1303_v5 = vpop.xlane.xlu2 %1302 }
 0x226   : > { %v1348_v47 = vmul.f32 1.442695, %v1320_v38 }
 0x227   : > { %1294 = vmax.xlane.f32.xlu2 %v3873_v51 }
 0x228   : > { %v2998_v34 = vpop.eup %2997 }
 0x229   : > { %1364 = vadd.xlane.f32.xlu0 %v2998_v34  ;;  %1480 = vmatmul.f32.gmra.mxu2 %v2998_v34 }
 0x22d   : > { %v3877_v49 = vpop.xlane.xlu2 %1288 }
 0x22e   : > { %v1314_v34 = vsub.f32 %v3783_v28, %v3877_v49 }
 0x22f   : > { %1356 = vadd.xlane.f32.xlu2 %v3718_v39  ;;  %v1321_v39 = vsub.f32 %v3772_v26, %v1303_v5 }
 0x230   : > { %v1336_v7 = vmul.f32 1.442695, %v1314_v34 }
 0x231   : > { %v1350_v21 = vmul.f32 1.442695, %v1321_v39 }
 0x236   : > { %v922_v1 = vpop.permute.xlu0 %921 }
 0x237   : > { %1360 = vadd.xlane.f32.xlu2 %v2994_v59 }
 0x23d   : > { %v1305_v33 = vpop.xlane.xlu2 %1304 }
 0x24c   : > { %v1299_v36 = vpop.xlane.xlu1 %1298 }
 0x24d   : > { %v1319_v61 = vsub.f32 %v3808_v10, %v1299_v36  ;;  %v1322_v10 = vsub.f32 %v3795_v19, %v1305_v33 }
 0x24f   : > { %v1346_v46 = vmul.f32 1.442695, %v1319_v61  ;;  %v1352_v58 = vmul.f32 1.442695, %v1322_v10 }
 0x251   : > { %2999 = vpow2.f32 %v1346_v46 }
 0x252   : > { %3001 = vpow2.f32 %v1348_v47 }
 0x257   : > { %v3000_v9 = vpop.eup %2999  ;;  %v1307_v52 = vpop.xlane.xlu2 %1306 }
 0x258   : > { %v1323_v53 = vsub.f32 %v3821_v15, %v1307_v52  ;;  %1501 = vmatmul.f32.vlgmr.msra.gmra.mxu3 %v3000_v9  ;;  %v3002_v56 = vpop.eup %3001  ;;  %v1238_v15 = vmul.f32 0.2, %v1222_v14  ;;  %v1469_v52 = vpop.f32.mrf.mxu2 }
 0x25a   : > { %v1354_v55 = vmul.f32 1.442695, %v1323_v53  ;;  %v1254_v48 = vmax.f32 %v1222_v14, %v1238_v15 }
 0x25c   : > { %3003 = vpow2.f32 %v1354_v55 }
 0x25d   : > { %3005 = vpow2.f32 %v1350_v21 }
 0x25e   : > { %3007 = vpow2.f32 %v1352_v58 }
 0x25f   : > { %v1293_v20 = vpop.xlane.xlu2 %1292 }
 0x260   : > { %1504 = vmatmul.f32.gmra.mxu3 %v3002_v56  ;;  %v1316_v28 = vsub.f32 %v3834_v45, %v1293_v20  ;;  %v1472_v43 = vpop.f32.mrf.mxu2 }
 0x261   : > { %v1291_v36 = vpop.xlane.xlu0 %1290 }
 0x262   : > { %v3004_v59 = vpop.eup %3003  ;;  %v1340_v53 = vmul.f32 1.442695, %v1316_v28 }
 0x263   : > { %1386 = vadd.xlane.f32.xlu2 %v3004_v59  ;;  %v3006_v2 = vpop.eup %3005 }
 0x264   : > { %v794_v0 = vpop.permute.xlu1 %793  ;;  %v3008_v27 = vpop.eup %3007 }
 0x265   : > { %v960_v26 = vsel %vm949_vm10, -1e+30, %v794_v0 }
 0x268   : > { %1507 = vmatmul.f32.gmra.mxu3 %v3006_v2 }
 0x26b   : > { %1382 = vadd.xlane.f32.xlu2 %v3006_v2 }
 0x26c   : > { %v858_v12 = vpop.permute.xlu1 %857 }
 0x26d   : > { %v977_v62 = vsel %vm966_vm11, %v960_v26, %v858_v12 }
 0x26e   : > { %v3888_v19 = vsel %vm983_vm13, %v977_v62, %v922_v1 }
 0x26f   : > { %v3891_v50 = vadd.f32 %v1254_v48, %v3888_v19 }
 0x270   : > { %1510 = vmatmul.f32.gmra.mxu3 %v3008_v27 }
 0x271   : > { %1296 = vmax.xlane.f32.xlu1 %v3891_v50 }
 0x273   : > { %1378 = vadd.xlane.f32.xlu2 %v3000_v9 }
 0x278   : > { %1513 = vmatmul.f32.gmra.mxu3 %v3004_v59 }
 0x279   : > { %1358 = vadd.xlane.f32.xlu1 %v3731_v22  ;;  %v2841_v22 = vld [vmem:[%s4673_s2 + $0x20] sm:$0xff] }
 0x27a   : > { %1636 = vmatpush.msrb.mxu3 %v2841_v22 }
 0x281   : > { %1362 = vadd.xlane.f32.xlu1 %v3853_v17 }
 0x289   : > { %1384 = vadd.xlane.f32.xlu1 %v3008_v27 }
 0x291   : > { %1380 = vadd.xlane.f32.xlu1 %v3002_v56 }
 0x297   : > { %v1287_v17 = vpop.xlane.xlu1 %1286 }
 0x298   : > { %v1313_v60 = vsub.f32 %v3865_v25, %v1287_v17  ;;  %v1315_v25 = vsub.f32 %v3838_v3, %v1291_v36  ;;  %v3917_v3 = vld [vmem:[%s4674_s3 + $0x3] ss:$0 sm:$0xff]  ;;  %v1475_v34 = vpop.f32.mrf.mxu2 }
 0x29a   : > { %v1334_v31 = vmul.f32 1.442695, %v1313_v60  ;;  %v1295_v54 = vpop.xlane.xlu2 %1294  ;;  %v1338_v46 = vmul.f32 1.442695, %v1315_v25 }
 0x29b   : > { %v1317_v41 = vsub.f32 %v3873_v51, %v1295_v54 }
 0x29c   : > { %3009 = vpow2.f32 %v1334_v31 }
 0x29d   : > { %v1342_v5 = vmul.f32 1.442695, %v1317_v41  ;;  %v1365_v41 = vpop.xlane.xlu0 %1364 }
 0x29f   : > { %3011 = vpow2.f32 %v1342_v5 }
 0x2a2   : > { %v3010_v61 = vpop.eup %3009  ;;  %v1357_v11 = vpop.xlane.xlu2 %1356 }
 0x2a3   : > { %3013 = vrcp.f32 %v1357_v11  ;;  %1366 = vadd.xlane.f32.xlu0 %v3010_v61  ;;  %1483 = vmatmul.f32.gmra.mxu2 %v3010_v61 }
 0x2a4   : > { %3015 = vpow2.f32 %v1336_v7 }
 0x2a5   : > { %v3012_v33 = vpop.eup %3011  ;;  %3017 = vpow2.f32 %v1338_v46 }
 0x2a6   : > { %1374 = vadd.xlane.f32.xlu2 %v3012_v33  ;;  %3019 = vpow2.f32 %v1340_v53 }
 0x2a9   : > { %v3014_v51 = vpop.eup %3013 }
 0x2aa   : > { %v3016_v38 = vpop.eup %3015  ;;  %v1404_v47 = vmul.f32 %v3014_v51, %v1357_v11  ;;  %v1361_v59 = vpop.xlane.xlu2 %1360 }
 0x2ab   : > { %1368 = vadd.xlane.f32.xlu0 %v3016_v38  ;;  %1486 = vmatmul.f32.gmra.mxu2 %v3016_v38  ;;  %v3018_v55 = vpop.eup %3017  ;;  %3021 = vrcp.f32 %v1361_v59 }
 0x2ac   : > { %v1420_v49 = vsub.f32 2.0, %v1404_v47  ;;  %v3020_v56 = vpop.eup %3019 }
 0x2ae   : > { %v1436_v9 = vmul.f32 %v3014_v51, %v1420_v49 }
 0x2b0   : > { %v1517_v39 = vmul.f32 %v1469_v52, %v1436_v9 }
 0x2b1   : > { %v3022_v48 = vpop.eup %3021 }
 0x2b2   : > { %v3920_v21 = vadd.f32 %v3917_v3, %v1517_v39  ;;  %v1406_v24 = vmul.f32 %v3022_v48, %v1361_v59 }
 0x2b3   : > { %1370 = vadd.xlane.f32.xlu0 %v3018_v55  ;;  %1489 = vmatmul.f32.gmra.mxu2 %v3018_v55 }
 0x2b4   : > { %v1550_v45 = vmax.f32 %v3920_v21, 0.0  ;;  %v1422_v60 = vsub.f32 2.0, %v1406_v24 }
 0x2b6   : > { %2845 = vmatmul.msk.f32.vlgmr.msrb.gmra.mxu3 %vm949_vm10, %v1550_v45  ;;  %v1438_v61 = vmul.f32 %v3022_v48, %v1422_v60 }
 0x2b8   : > { %v1519_v9 = vmul.f32 %v1475_v34, %v1438_v61 }
 0x2bb   : > { %1492 = vmatmul.f32.gmra.mxu2 %v3020_v56 }
 0x2c3   : > { %1495 = vmatmul.f32.gmra.mxu2 %v3012_v33 }
 0x2d6   : > { %v1387_v58 = vpop.xlane.xlu2 %1386 }
 0x2d7   : > { %3023 = vrcp.f32 %v1387_v58 }
 0x2db   : > { %v3926_v10 = vpop.f32.mrf.mxu3 }
 0x2dd   : > { %v3024_v1 = vpop.eup %3023 }
 0x2de   : > { %v1383_v27 = vpop.xlane.xlu2 %1382  ;;  %v1419_v20 = vmul.f32 %v3024_v1, %v1387_v58  ;;  %v1478_v58 = vpop.f32.mrf.mxu2 }
 0x2e0   : > { %v1435_v31 = vsub.f32 2.0, %v1419_v20 }
 0x2e2   : > { %v1451_v25 = vmul.f32 %v3024_v1, %v1435_v31 }
 0x2e3   : > { %v3928_v0 = vpop.f32.mrf.mxu3 }
 0x2e4   : > { %v1297_v14 = vpop.xlane.xlu1 %1296 }
 0x2e5   : > { %v1318_v2 = vsub.f32 %v3891_v50, %v1297_v14 }
 0x2e6   : > { %v1379_v7 = vpop.xlane.xlu2 %1378  ;;  %v1481_v31 = vpop.f32.mrf.mxu2 }
 0x2e7   : > { %v1344_v15 = vmul.f32 1.442695, %v1318_v2 }
 0x2e9   : > { %3025 = vpow2.f32 %v1344_v15  ;;  %v3948_v15 = vadd.f32 %v3917_v3, %v1519_v9 }
 0x2eb   : > { %v3931_v26 = vpop.f32.mrf.mxu3 }
 0x2ec   : > { %v1359_v12 = vpop.xlane.xlu1 %1358 }
 0x2ed   : > { %3027 = vrcp.f32 %v1359_v12 }
 0x2ee   : > { %3029 = vrcp.f32 %v1383_v27 }
 0x2ef   : > { %v3026_v62 = vpop.eup %3025 }
 0x2f0   : > { %1376 = vadd.xlane.f32.xlu1 %v3026_v62  ;;  %1498 = vmatmul.f32.gmra.mxu2 %v3026_v62 }
 0x2f3   : > { %v3028_v29 = vpop.eup %3027  ;;  %v1511_v22 = vpop.f32.mrf.mxu3 }
 0x2f4   : > { %v1405_v50 = vmul.f32 %v3028_v29, %v1359_v12  ;;  %v1363_v17 = vpop.xlane.xlu1 %1362  ;;  %v3030_v36 = vpop.eup %3029 }
 0x2f5   : > { %3031 = vrcp.f32 %v1363_v17  ;;  %v1417_v49 = vmul.f32 %v3030_v36, %v1383_v27 }
 0x2f6   : > { %v1421_v54 = vsub.f32 2.0, %v1405_v50  ;;  %3033 = vrcp.f32 %v1365_v41 }
 0x2f7   : > { %3035 = vrcp.f32 %v1379_v7  ;;  %v1433_v59 = vsub.f32 2.0, %v1417_v49 }
 0x2f8   : > { %v1437_v5 = vmul.f32 %v3028_v29, %v1421_v54  ;;  %1372 = vadd.xlane.f32.xlu1 %v3020_v56  ;;  %v1552_v29 = vmax.f32 %v3948_v15, 0.0  ;;  %v1571_v15 = vld [vmem:[%s4674_s3 + $0x1] sm:$0x1] }
 0x2f9   : > { %v1449_v27 = vmul.f32 %v3030_v36, %v1433_v59 }
 0x2fa   : > { %v1518_v11 = vmul.f32 %v1472_v43, %v1437_v5 }
 0x2fb   : > { %v3032_v33 = vpop.eup %3031  ;;  %v1514_v46 = vpop.f32.mrf.mxu3  ;;  %v1530_v60 = vmul.f32 %v3931_v26, %v1449_v27 }
 0x2fc   : > { %v1407_v51 = vmul.f32 %v3032_v33, %v1363_v17  ;;  %v1532_v38 = vmul.f32 %v1514_v46, %v1451_v25  ;;  %v1385_v47 = vpop.xlane.xlu1 %1384  ;;  %v3934_v28 = vadd.f32 %v3917_v3, %v1518_v11  ;;  %v3034_v55 = vpop.eup %3033 }
 0x2fd   : > { %3037 = vrcp.f32 %v1385_v47  ;;  %v3036_v14 = vpop.eup %3035  ;;  %v1408_v48 = vmul.f32 %v3034_v55, %v1365_v41  ;;  %v3962_v25 = vadd.f32 %v3917_v3, %v1530_v60 }
 0x2fe   : > { %v1423_v52 = vsub.f32 2.0, %v1407_v51  ;;  %v3937_v53 = vadd.f32 %v3917_v3, %v1532_v38  ;;  %v1551_v39 = vmax.f32 %v3934_v28, 0.0  ;;  %v1415_v43 = vmul.f32 %v3036_v14, %v1379_v7 }
 0x2ff   : > { %v1424_v50 = vsub.f32 2.0, %v1408_v48  ;;  %v1563_v49 = vmax.f32 %v3962_v25, 0.0 }
 0x300   : > { %v4676_v56 = vmax.f32 %v3937_v53, 0.0  ;;  %2846 = vmatmul.msk.f32.gmra.mxu3 %vm949_vm10, %v1551_v39  ;;  %v1439_v2 = vmul.f32 %v3032_v33, %v1423_v52  ;;  %v1431_v54 = vsub.f32 2.0, %v1415_v43 }
 0x301   : > { %v1440_v7 = vmul.f32 %v3034_v55, %v1424_v50 }
 0x302   : > { %2861 = vmatpush.xpose.msk.msrb.mxu1 %vm949_vm10, %v4676_v56  ;;  %v1520_v24 = vmul.f32 %v1478_v58, %v1439_v2  ;;  %v1447_v33 = vmul.f32 %v3036_v14, %v1431_v54 }
 0x303   : > { %v3038_v12 = vpop.eup %3037  ;;  %v1521_v11 = vmul.f32 %v1481_v31, %v1440_v7 }
 0x304   : > { %v1418_v1 = vmul.f32 %v3038_v12, %v1385_v47  ;;  %v1381_v62 = vpop.xlane.xlu1 %1380  ;;  %v3956_v34 = vadd.f32 %v3917_v3, %v1520_v24  ;;  %v1528_v47 = vmul.f32 %v3926_v10, %v1447_v33 }
 0x305   : > { %3039 = vrcp.f32 %v1381_v62  ;;  %v3973_v38 = vadd.f32 %v3917_v3, %v1521_v11 }
 0x306   : > { %v1434_v20 = vsub.f32 2.0, %v1418_v1  ;;  %v1553_v26 = vmax.f32 %v3956_v34, 0.0  ;;  %v3987_v58 = vadd.f32 %v3917_v3, %v1528_v47 }
 0x307   : > { %v1554_v55 = vmax.f32 %v3973_v38, 0.0 }
 0x308   : > { %v1450_v17 = vmul.f32 %v3038_v12, %v1434_v20  ;;  %2847 = vmatmul.msk.f32.gmra.mxu3 %vm949_vm10, %v1552_v29  ;;  %v1561_v10 = vmax.f32 %v3987_v58, 0.0 }
 0x30a   : > { %v1531_v41 = vmul.f32 %v1511_v22, %v1450_v17 }
 0x30b   : > { %v3040_v5 = vpop.eup %3039 }
 0x30c   : > { %v1416_v36 = vmul.f32 %v3040_v5, %v1381_v62  ;;  %v3959_v61 = vadd.f32 %v3917_v3, %v1531_v41 }
 0x30e   : > { %v1432_v46 = vsub.f32 2.0, %v1416_v36  ;;  %v4677_v51 = vmax.f32 %v3959_v61, 0.0  ;;  %v4686_v28 = vmax.f32 %v3959_v61, 0.0 }
 0x310   : > { %v1448_v22 = vmul.f32 %v3040_v5, %v1432_v46  ;;  %2848 = vmatmul.msk.f32.gmra.mxu3 %vm949_vm10, %v1553_v26  ;;  %2862 = vmatpush.xpose.msk.msrb.mxu1 %vm949_vm10, %v4677_v51 }
 0x312   : > { %v1529_v9 = vmul.f32 %v3928_v0, %v1448_v22 }
 0x314   : > { %2863 = vmatpush.xpose.msk.msrb.mxu1 %vm949_vm10, %v1563_v49  ;;  %v3982_v52 = vadd.f32 %v3917_v3, %v1529_v9 }
 0x316   : > { %v1367_v59 = vpop.xlane.xlu0 %1366  ;;  %v1562_v14 = vmax.f32 %v3982_v52, 0.0 }
 0x317   : > { %3041 = vrcp.f32 %v1367_v59 }
 0x318   : > { %2849 = vmatmul.msk.f32.gmra.mxu3 %vm949_vm10, %v1554_v55  ;;  %2864 = vmatpush.xpose.msk.msrb.mxu1 %vm949_vm10, %v1562_v14 }
 0x31c   : > { %2865 = vmatpush.xpose.msk.msrb.mxu1 %vm949_vm10, %v1561_v10 }
 0x31d   : > { %v3042_v0 = vpop.eup %3041 }
 0x31e   : > { %v1409_v2 = vmul.f32 %v3042_v0, %v1367_v59  ;;  %v1369_v12 = vpop.xlane.xlu0 %1368 }
 0x31f   : > { %3043 = vrcp.f32 %v1369_v12 }
 0x320   : > { %v1425_v48 = vsub.f32 2.0, %v1409_v2 }
 0x322   : > { %v1441_v62 = vmul.f32 %v3042_v0, %v1425_v48  ;;  %v1375_v48 = vpop.xlane.xlu2 %1374 }
 0x325   : > { %v3044_v1 = vpop.eup %3043 }
 0x326   : > { %v1410_v27 = vmul.f32 %v3044_v1, %v1369_v12  ;;  %v1484_v43 = vpop.f32.mrf.mxu2  ;;  %v1371_v24 = vpop.xlane.xlu0 %1370 }
 0x327   : > { %v1522_v20 = vmul.f32 %v1484_v43, %v1441_v62  ;;  %3045 = vrcp.f32 %v1371_v24 }
 0x328   : > { %v1426_v50 = vsub.f32 2.0, %v1410_v27  ;;  %3047 = vrcp.f32 %v1375_v48 }
 0x329   : > { %v4000_v17 = vadd.f32 %v3917_v3, %v1522_v20 }
 0x32a   : > { %v1442_v54 = vmul.f32 %v3044_v1, %v1426_v50 }
 0x32b   : > { %v1555_v60 = vmax.f32 %v4000_v17, 0.0 }
 0x32d   : > { %v3046_v31 = vpop.eup %3045  ;;  %2850 = vmatmul.msk.f32.gmra.mxu3 %vm949_vm10, %v1555_v60 }
 0x32e   : > { %v1411_v41 = vmul.f32 %v3046_v31, %v1371_v24  ;;  %v1487_v5 = vpop.f32.mrf.mxu2  ;;  %v3048_v27 = vpop.eup %3047 }
 0x32f   : > { %v1523_v7 = vmul.f32 %v1487_v5, %v1442_v54  ;;  %v1413_v24 = vmul.f32 %v3048_v27, %v1375_v48 }
 0x330   : > { %v1427_v36 = vsub.f32 2.0, %v1411_v41 }
 0x331   : > { %v1540_v11 = vadd.f32 %v3917_v3, %v1523_v7  ;;  %v1429_v54 = vsub.f32 2.0, %v1413_v24 }
 0x332   : > { %v1443_v46 = vmul.f32 %v3046_v31, %v1427_v36 }
 0x333   : > { %v1556_v33 = vmax.f32 %v1540_v11, 0.0  ;;  %v1445_v7 = vmul.f32 %v3048_v27, %v1429_v54 }
 0x335   : > { %2851 = vmatmul.msk.f32.gmra.mxu3 %vm949_vm10, %v1556_v33 }
 0x336   : > { %v1490_v22 = vpop.f32.mrf.mxu2 }
 0x337   : > { %v1524_v47 = vmul.f32 %v1490_v22, %v1443_v46 }
 0x339   : > { %v1541_v9 = vadd.f32 %v3917_v3, %v1524_v47  ;;  %v4009_v59 = vpop.f32.mrf.mxu3 }
 0x33a   : > { %v1686_v0 = vmul.f32 %v3497_v44, %v4009_v59 }
 0x33b   : > { %v1557_v2 = vmax.f32 %v1541_v9, 0.0 }
 0x33c   : > { %v1702_v12 = vsel %vm1139_vm8, %v1686_v0, 0.0 }
 0x33d   : > { %1703 = vadd.xlane.f32.xlu0 %v1702_v12  ;;  %2852 = vmatmul.msk.f32.gmra.mxu3 %vm949_vm10, %v1557_v2 }
 0x33e   : > { %v1493_v1 = vpop.f32.mrf.mxu2 }
 0x346   : > { %v1496_v20 = vpop.f32.mrf.mxu2 }
 0x347   : > { %v1526_v22 = vmul.f32 %v1496_v20, %v1445_v7 }
 0x349   : > { %v1543_v56 = vadd.f32 %v3917_v3, %v1526_v22 }
 0x34b   : > { %v1559_v24 = vmax.f32 %v1543_v56, 0.0 }
 0x363   : > { %v1377_v62 = vpop.xlane.xlu1 %1376 }
 0x364   : > { %3049 = vrcp.f32 %v1377_v62 }
 0x36a   : > { %v3050_v43 = vpop.eup %3049 }
 0x36b   : > { %v1414_v50 = vmul.f32 %v3050_v43, %v1377_v62  ;;  %v1373_v31 = vpop.xlane.xlu1 %1372 }
 0x36c   : > { %3051 = vrcp.f32 %v1373_v31 }
 0x36d   : > { %v1430_v41 = vsub.f32 2.0, %v1414_v50 }
 0x36f   : > { %v1446_v36 = vmul.f32 %v3050_v43, %v1430_v41 }
 0x372   : > { %v3052_v5 = vpop.eup %3051 }
 0x373   : > { %v1412_v11 = vmul.f32 %v3052_v5, %v1373_v31  ;;  %v1499_v46 = vpop.f32.mrf.mxu2 }
 0x374   : > { %v1527_v47 = vmul.f32 %v1499_v46, %v1446_v36 }
 0x375   : > { %v1428_v9 = vsub.f32 2.0, %v1412_v11 }
 0x376   : > { %v1544_v0 = vadd.f32 %v3917_v3, %v1527_v47 }
 0x377   : > { %v1444_v12 = vmul.f32 %v3052_v5, %v1428_v9 }
 0x378   : > { %v1560_v48 = vmax.f32 %v1544_v0, 0.0 }
 0x379   : > { %v1525_v51 = vmul.f32 %v1493_v1, %v1444_v12 }
 0x37a   : > { %2866 = vmatpush.xpose.msk.msrb.mxu1 %vm949_vm10, %v1560_v48 }
 0x37b   : > { %v1542_v62 = vadd.f32 %v3917_v3, %v1525_v51 }
 0x37d   : > { %v1558_v50 = vmax.f32 %v1542_v62, 0.0 }
 0x37e   : > { %2867 = vmatpush.xpose.msk.msrb.mxu1 %vm949_vm10, %v1559_v24 }
 0x37f   : > { %2853 = vmatmul.msk.f32.gmra.mxu3 %vm949_vm10, %v1558_v50 }
 0x382   : > { %2868 = vmatpush.xpose.msk.msrb.mxu1 %vm949_vm10, %v1558_v50 }
 0x383   : > { %v4022_v27 = vpop.f32.mrf.mxu3 }
 0x384   : > { %v1687_v43 = vmul.f32 %v3497_v44, %v4022_v27 }
 0x386   : > { %2869 = vmatpush.xpose.msk.msrb.mxu1 %vm949_vm10, %v1557_v2  ;;  %v1705_v1 = vsel %vm1139_vm8, %v1687_v43, 0.0 }
 0x387   : > { %1706 = vadd.xlane.f32.xlu2 %v1705_v1  ;;  %2854 = vmatmul.msk.f32.gmra.mxu3 %vm949_vm10, %v1559_v24 }
 0x38a   : > { %2870 = vmatpush.xpose.msk.msrb.mxu1 %vm949_vm10, %v1556_v33 }
 0x38b   : > { %v4030_v3 = vpop.f32.mrf.mxu3 }
 0x38c   : > { %v1688_v56 = vmul.f32 %v3497_v44, %v4030_v3 }
 0x38e   : > { %2871 = vmatpush.xpose.msk.msrb.mxu1 %vm949_vm10, %v1555_v60  ;;  %v1708_v51 = vsel %vm1139_vm8, %v1688_v56, 0.0 }
 0x38f   : > { %1709 = vadd.xlane.f32.xlu1 %v1708_v51  ;;  %2855 = vmatmul.msk.f32.gmra.mxu3 %vm949_vm10, %v1560_v48 }
 0x392   : > { %2872 = vmatpush.xpose.msk.msrb.mxu1 %vm949_vm10, %v1554_v55 }
 0x393   : > { %v4042_v2 = vpop.f32.mrf.mxu3 }
 0x394   : > { %v1689_v33 = vmul.f32 %v3497_v44, %v4042_v2 }
 0x396   : > { %2873 = vmatpush.xpose.msk.msrb.mxu1 %vm949_vm10, %v1553_v26  ;;  %v1711_v17 = vsel %vm1139_vm8, %v1689_v33, 0.0 }
 0x397   : > { %1712 = vadd.xlane.f32.xlu0 %v1711_v17  ;;  %2856 = vmatmul.msk.f32.gmra.mxu3 %vm949_vm10, %v1561_v10 }
 0x39a   : > { %2874 = vmatpush.xpose.msk.msrb.mxu1 %vm949_vm10, %v1552_v29  ;;  %v4687_v29 = vmax.f32 %v3937_v53, 0.0 }
 0x39b   : > { %v4056_v38 = vpop.f32.mrf.mxu3 }
 0x39c   : > { %v1690_v55 = vmul.f32 %v3497_v44, %v4056_v38 }
 0x39e   : > { %2875 = vmatpush.xpose.msk.msrb.mxu1 %vm949_vm10, %v1551_v39  ;;  %v1714_v34 = vsel %vm1139_vm8, %v1690_v55, 0.0 }
 0x39f   : > { %1715 = vadd.xlane.f32.xlu2 %v1714_v34  ;;  %2857 = vmatmul.msk.f32.gmra.mxu3 %vm949_vm10, %v1562_v14 }
 0x3a2   : > { %2876 = vmatpush.xpose.msk.msrb.mxu1 %vm949_vm10, %v1550_v45 }
 0x3a5   : > { %2877 = vmatmul.msk.f32.vlgmr.msrb.gmra.mxu1 %vm949_vm10, %v1571_v15 }
 0x3a7   : > { %2858 = vmatmul.msk.f32.gmra.mxu3 %vm949_vm10, %v1563_v49 }
 0x3af   : > { %2859 = vmatmul.msk.f32.gmra.mxu3 %vm949_vm10, %v4686_v28 }
 0x3b0   : > { %v4080_v39 = vpop.f32.mrf.mxu3  ;;  %v1704_v54 = vpop.xlane.xlu0 %1703 }
 0x3b1   : > { %v1691_v21 = vmul.f32 %v3497_v44, %v4080_v39 }
 0x3b3   : > { %v1717_v45 = vsel %vm1139_vm8, %v1691_v21, 0.0 }
 0x3b4   : > { %1718 = vadd.xlane.f32.xlu1 %v1717_v45 }
 0x3b7   : > { %2860 = vmatmul.msk.f32.gmra.mxu3 %vm949_vm10, %v4687_v29 }
 0x3b8   : > { %v4088_v26 = vpop.f32.mrf.mxu3 }
 0x3b9   : > { %v1692_v25 = vmul.f32 %v3497_v44, %v4088_v26 }
 0x3bb   : > { %v1720_v61 = vsel %vm1139_vm8, %v1692_v25, 0.0 }
 0x3bc   : > { %1721 = vadd.xlane.f32.xlu0 %v1720_v61 }
 0x3c0   : > { %v4093_v49 = vpop.f32.mrf.mxu3 }
 0x3c1   : > { %v1693_v52 = vmul.f32 %v3497_v44, %v4093_v49 }
 0x3c3   : > { %v1723_v14 = vsel %vm1139_vm8, %v1693_v52, 0.0 }
 0x3c4   : > { %1724 = vadd.xlane.f32.xlu1 %v1723_v14 }
 0x3fa   : > { %v1707_v5 = vpop.xlane.xlu2 %1706 }
 0x402   : > { %v4098_v58 = vpop.f32.mrf.mxu3  ;;  %v1710_v7 = vpop.xlane.xlu1 %1709 }
 0x403   : > { %v1694_v55 = vmul.f32 %v3497_v44, %v4098_v58 }
 0x405   : > { %v1726_v25 = vsel %vm1139_vm8, %v1694_v55, 0.0 }
 0x40a   : > { %v4100_v53 = vpop.f32.mrf.mxu3  ;;  %v1713_v56 = vpop.xlane.xlu0 %1712 }
 0x40b   : > { %v1695_v28 = vmul.f32 %v3497_v44, %v4100_v53 }
 0x40d   : > { %v1729_v14 = vsel %vm1139_vm8, %v1695_v28, 0.0 }
 0x412   : > { %v4102_v10 = vpop.f32.mrf.mxu3  ;;  %v1716_v51 = vpop.xlane.xlu2 %1715 }
 0x413   : > { %v1696_v34 = vmul.f32 %v3497_v44, %v4102_v10 }
 0x415   : > { %v1732_v61 = vsel %vm1139_vm8, %v1696_v34, 0.0 }
 0x41a   : > { %v4104_v60 = vpop.f32.mrf.mxu3 }
 0x422   : > { %v1674_v20 = vpop.f32.mrf.mxu3  ;;  %v1770_v31 = vpop.f32.mrf.mxu1 }
 0x423   : > { %v4106_v41 = vperm.slane %v1770_v31, 0 }
 0x425   : > { %v1776_v36 = vadd.f32 %v4106_v41, %v1710_v7  ;;  %v1774_v11 = vadd.f32 %v4106_v41, %v1704_v54  ;;  %v1775_v46 = vadd.f32 %v4106_v41, %v1707_v5  ;;  %v1777_v17 = vadd.f32 %v4106_v41, %v1713_v56 }
 0x426   : > { %v1778_v15 = vadd.f32 %v4106_v41, %v1716_v51 }
 0x427   : > { %v1792_v22 = vmul.f32 0.2, %v1776_v36  ;;  %v1790_v47 = vmul.f32 0.2, %v1774_v11  ;;  %v1791_v9 = vmul.f32 0.2, %v1775_v46  ;;  %v1719_v1 = vpop.xlane.xlu1 %1718 }
 0x428   : > { %v1779_v33 = vadd.f32 %v4106_v41, %v1719_v1  ;;  %v1793_v29 = vmul.f32 0.2, %v1777_v17  ;;  %v1794_v52 = vmul.f32 0.2, %v1778_v15  ;;  %v1698_v1 = vmul.f32 %v3497_v44, %v1674_v20 }
 0x429   : > { %v1808_v0 = vmax.f32 %v1776_v36, %v1792_v22  ;;  %v1806_v12 = vmax.f32 %v1774_v11, %v1790_v47  ;;  %v1807_v48 = vmax.f32 %v1775_v46, %v1791_v9 }
 0x42a   : > { %v1677_v62 = vpop.f32.mrf.mxu3  ;;  %v1795_v45 = vmul.f32 0.2, %v1779_v33  ;;  %v1809_v54 = vmax.f32 %v1777_v17, %v1793_v29  ;;  %v1810_v5 = vmax.f32 %v1778_v15, %v1794_v52  ;;  %v1738_v55 = vsel %vm1139_vm8, %v1698_v1, 0.0 }
 0x42b   : > { %v4112_v24 = vadd.f32 %v1808_v0, %v3722_v40  ;;  %v4115_v50 = vadd.f32 %v1806_v12, %v3605_v4  ;;  %v4118_v43 = vadd.f32 %v1807_v48, %v3620_v30  ;;  %v1697_v0 = vmul.f32 %v3497_v44, %v4104_v60 }
 0x42c   : > { %v1811_v31 = vmax.f32 %v1779_v33, %v1795_v45  ;;  %v4136_v36 = vadd.f32 %v1809_v54, %v3690_v63  ;;  %v4142_v22 = vadd.f32 %v1810_v5, %v3743_v13  ;;  %v1699_v12 = vmul.f32 %v3497_v44, %v1677_v62 }
 0x42d   : > { %1842 = vmax.xlane.f32.xlu1 %v4112_v24  ;;  %1838 = vmax.xlane.f32.xlu2 %v4115_v50  ;;  %v1735_v33 = vsel %vm1139_vm8, %v1697_v0, 0.0 }
 0x42e   : > { %1840 = vmax.xlane.f32.xlu0 %v4118_v43  ;;  %v4139_v11 = vadd.f32 %v1811_v31, %v3861_v8  ;;  %v1741_v17 = vsel %vm1139_vm8, %v1699_v12, 0.0 }
 0x42f   : > { %v1722_v46 = vpop.xlane.xlu0 %1721 }
 0x430   : > { %v1780_v9 = vadd.f32 %v4106_v41, %v1722_v46 }
 0x432   : > { %v1680_v21 = vpop.f32.mrf.mxu3  ;;  %v1796_v56 = vmul.f32 0.2, %v1780_v9 }
 0x434   : > { %v1812_v34 = vmax.f32 %v1780_v9, %v1796_v56 }
 0x435   : > { %1727 = vadd.xlane.f32.xlu2 %v1726_v25  ;;  %1733 = vadd.xlane.f32.xlu1 %v1732_v61 }
 0x436   : > { %1730 = vadd.xlane.f32.xlu0 %v1729_v14 }
 0x437   : > { %v1725_v47 = vpop.xlane.xlu1 %1724 }
 0x438   : > { %v1781_v48 = vadd.f32 %v4106_v41, %v1725_v47 }
 0x43a   : > { %v1683_v7 = vpop.f32.mrf.mxu3  ;;  %v1797_v51 = vmul.f32 0.2, %v1781_v48 }
 0x43b   : > { %2014 = vmatpush.msrb.mxu0 %v1683_v7 }
 0x43d   : > { %1844 = vmax.xlane.f32.xlu2 %v4136_v36  ;;  %1848 = vmax.xlane.f32.xlu1 %v4139_v11 }
 0x43e   : > { %2015 = vmatpush.msrb.mxu0 %v1680_v21  ;;  %1846 = vmax.xlane.f32.xlu0 %v4142_v22 }
 0x440   : > { %2016 = vmatpush.msrb.mxu0 %v1677_v62  ;;  %v1813_v62 = vmax.f32 %v1781_v48, %v1797_v51 }
 0x442   : > { %2017 = vmatpush.msrb.mxu0 %v1674_v20  ;;  %v4161_v20 = vadd.f32 %v1812_v34, %v3780_v35 }
 0x444   : > { %2018 = vmatpush.msrb.mxu0 %v4104_v60  ;;  %v4165_v60 = vadd.f32 %v1813_v62, %v3831_v57 }
 0x445   : > { %1736 = vadd.xlane.f32.xlu2 %v1735_v33  ;;  %1742 = vadd.xlane.f32.xlu1 %v1741_v17 }
 0x446   : > { %2019 = vmatpush.msrb.mxu0 %v4102_v10  ;;  %1739 = vadd.xlane.f32.xlu0 %v1738_v55  ;;  %v1700_v10 = vmul.f32 %v3497_v44, %v1680_v21 }
 0x448   : > { %2020 = vmatpush.msrb.mxu0 %v4100_v53 }
 0x44a   : > { %2021 = vmatpush.msrb.mxu0 %v4098_v58  ;;  %v1701_v58 = vmul.f32 %v3497_v44, %v1683_v7 }
 0x44c   : > { %2022 = vmatpush.msrb.mxu0 %v4093_v49  ;;  %v1744_v49 = vsel %vm1139_vm8, %v1700_v10, 0.0  ;;  %v1747_v53 = vsel %vm1139_vm8, %v1701_v58, 0.0 }
 0x44d   : > { %1850 = vmax.xlane.f32.xlu2 %v4161_v20 }
 0x44e   : > { %2023 = vmatpush.msrb.mxu0 %v4088_v26  ;;  %1852 = vmax.xlane.f32.xlu0 %v4165_v60 }
 0x450   : > { %2024 = vmatpush.msrb.mxu0 %v4080_v39 }
 0x452   : > { %2025 = vmatpush.msrb.mxu0 %v4056_v38 }
 0x454   : > { %2026 = vmatpush.msrb.mxu0 %v4042_v2 }
 0x455   : > { %1745 = vadd.xlane.f32.xlu2 %v1744_v49 }
 0x456   : > { %2027 = vmatpush.msrb.mxu0 %v4030_v3  ;;  %1748 = vadd.xlane.f32.xlu0 %v1747_v53 }
 0x458   : > { %2028 = vmatpush.msrb.mxu0 %v4022_v27 }
 0x45a   : > { %2029 = vmatpush.msrb.mxu0 %v4009_v59 }
 0x4a0   : > { %v1843_v26 = vpop.xlane.xlu1 %1842  ;;  %v1839_v39 = vpop.xlane.xlu2 %1838 }
 0x4a1   : > { %v1841_v15 = vpop.xlane.xlu0 %1840  ;;  %v1870_v28 = vsub.f32 %v4115_v50, %v1839_v39  ;;  %v1872_v50 = vsub.f32 %v4112_v24, %v1843_v26 }
 0x4a2   : > { %v1871_v2 = vsub.f32 %v4118_v43, %v1841_v15 }
 0x4a3   : > { %v1886_v38 = vmul.f32 1.442695, %v1870_v28  ;;  %v1890_v0 = vmul.f32 1.442695, %v1872_v50 }
 0x4a4   : > { %v1888_v61 = vmul.f32 1.442695, %v1871_v2 }
 0x4a5   : > { %3053 = vpow2.f32 %v1886_v38 }
 0x4a6   : > { %3055 = vpow2.f32 %v1888_v61 }
 0x4a7   : > { %3057 = vpow2.f32 %v1890_v0 }
 0x4a8   : > { %v1734_v21 = vpop.xlane.xlu1 %1733  ;;  %v1728_v45 = vpop.xlane.xlu2 %1727 }
 0x4a9   : > { %v1731_v29 = vpop.xlane.xlu0 %1730  ;;  %v1782_v25 = vadd.f32 %v4106_v41, %v1728_v45  ;;  %v1784_v27 = vadd.f32 %v4106_v41, %v1734_v21 }
 0x4aa   : > { %v1783_v3 = vadd.f32 %v4106_v41, %v1731_v29 }
 0x4ab   : > { %v1798_v59 = vmul.f32 0.2, %v1782_v25  ;;  %v3054_v14 = vpop.eup %3053  ;;  %v1800_v43 = vmul.f32 0.2, %v1784_v27 }
 0x4ac   : > { %v1799_v52 = vmul.f32 0.2, %v1783_v3  ;;  %2030 = vmatmul.f32.vlgmr.msrb.gmra.mxu0 %v3054_v14  ;;  %v3056_v48 = vpop.eup %3055 }
 0x4ad   : > { %v1814_v31 = vmax.f32 %v1782_v25, %v1798_v59  ;;  %v1816_v12 = vmax.f32 %v1784_v27, %v1800_v43  ;;  %v3058_v53 = vpop.eup %3057 }
 0x4ae   : > { %v1815_v54 = vmax.f32 %v1783_v3, %v1799_v52 }
 0x4af   : > { %v4187_v5 = vadd.f32 %v1814_v31, %v3828_v37  ;;  %v4196_v1 = vadd.f32 %v1816_v12, %v3888_v19 }
 0x4b0   : > { %v1849_v7 = vpop.xlane.xlu1 %1848  ;;  %v1845_v46 = vpop.xlane.xlu2 %1844  ;;  %v4190_v47 = vadd.f32 %v1815_v54, %v3870_v23 }
 0x4b1   : > { %v1847_v9 = vpop.xlane.xlu0 %1846  ;;  %1854 = vmax.xlane.f32.xlu1 %v4187_v5  ;;  %v1873_v24 = vsub.f32 %v4136_v36, %v1845_v46  ;;  %v1875_v25 = vsub.f32 %v4139_v11, %v1849_v7 }
 0x4b2   : > { %1856 = vmax.xlane.f32.xlu2 %v4190_v47  ;;  %v1874_v15 = vsub.f32 %v4142_v22, %v1847_v9 }
 0x4b3   : > { %v1892_v62 = vmul.f32 1.442695, %v1873_v24  ;;  %v1896_v52 = vmul.f32 1.442695, %v1875_v25 }
 0x4b4   : > { %2033 = vmatmul.f32.gmra.mxu0 %v3056_v48  ;;  %v1894_v29 = vmul.f32 1.442695, %v1874_v15 }
 0x4b5   : > { %3059 = vpow2.f32 %v1892_v62 }
 0x4b6   : > { %3061 = vpow2.f32 %v1894_v29 }
 0x4b7   : > { %3063 = vpow2.f32 %v1896_v52 }
 0x4b8   : > { %v1743_v56 = vpop.xlane.xlu1 %1742  ;;  %v1737_v51 = vpop.xlane.xlu2 %1736 }
 0x4b9   : > { %v1787_v33 = vadd.f32 %v4106_v41, %v1743_v56  ;;  %v1740_v17 = vpop.xlane.xlu0 %1739  ;;  %v1785_v55 = vadd.f32 %v4106_v41, %v1737_v51  ;;  %1858 = vmax.xlane.f32.xlu1 %v4196_v1 }
 0x4ba   : > { %v1786_v34 = vadd.f32 %v4106_v41, %v1740_v17  ;;  %v2881_v17 = vld [vmem:[%s4673_s2 + $0x58] sm:$0xff] }
 0x4bb   : > { %v1803_v10 = vmul.f32 0.2, %v1787_v33  ;;  %v1801_v58 = vmul.f32 0.2, %v1785_v55  ;;  %v3060_v22 = vpop.eup %3059  ;;  %2195 = vmatpush.msra.mxu1 %v2881_v17 }
 0x4bc   : > { %v1802_v49 = vmul.f32 0.2, %v1786_v34  ;;  %2036 = vmatmul.f32.gmra.mxu0 %v3058_v53  ;;  %v3062_v50 = vpop.eup %3061 }
 0x4bd   : > { %v1819_v36 = vmax.f32 %v1787_v33, %v1803_v10  ;;  %v1817_v26 = vmax.f32 %v1785_v55, %v1801_v58 }
 0x4be   : > { %v1818_v39 = vmax.f32 %v1786_v34, %v1802_v49  ;;  %v2880_v34 = vld [vmem:[%s4673_s2 + $0x50] sm:$0xff] }
 0x4bf   : > { %v4204_v28 = vadd.f32 %v1819_v36, %v3766_v18  ;;  %v4207_v38 = vadd.f32 %v1817_v26, %v3805_v16  ;;  %2196 = vmatpush.msra.mxu1 %v2880_v34 }
 0x4c0   : > { %v1851_v2 = vpop.xlane.xlu2 %1850  ;;  %v4210_v21 = vadd.f32 %v1818_v39, %v3758_v6 }
 0x4c1   : > { %v1853_v45 = vpop.xlane.xlu0 %1852  ;;  %1864 = vmax.xlane.f32.xlu1 %v4204_v28  ;;  %1860 = vmax.xlane.f32.xlu0 %v4207_v38  ;;  %v1876_v9 = vsub.f32 %v4161_v20, %v1851_v2 }
 0x4c2   : > { %1862 = vmax.xlane.f32.xlu2 %v4210_v21  ;;  %v1877_v0 = vsub.f32 %v4165_v60, %v1853_v45 }
 0x4c4   : > { %2039 = vmatmul.f32.gmra.mxu0 %v3060_v22  ;;  %v1900_v12 = vmul.f32 1.442695, %v1877_v0 }
 0x4c8   : > { %v1746_v3 = vpop.xlane.xlu2 %1745 }
 0x4c9   : > { %v1749_v61 = vpop.xlane.xlu0 %1748  ;;  %v1788_v27 = vadd.f32 %v4106_v41, %v1746_v3  ;;  %1918 = vadd.xlane.f32.xlu1 %v3054_v14  ;;  %v3064_v14 = vpop.eup %3063 }
 0x4ca   : > { %v1789_v59 = vadd.f32 %v4106_v41, %v1749_v61  ;;  %v1898_v41 = vmul.f32 1.442695, %v1876_v9 }
 0x4cb   : > { %v1804_v31 = vmul.f32 0.2, %v1788_v27 }
 0x4cc   : > { %v1805_v54 = vmul.f32 0.2, %v1789_v59  ;;  %2042 = vmatmul.f32.gmra.mxu0 %v3062_v50  ;;  %3065 = vpow2.f32 %v1898_v41 }
 0x4cd   : > { %v1820_v43 = vmax.f32 %v1788_v27, %v1804_v31  ;;  %3067 = vpow2.f32 %v1900_v12 }
 0x4ce   : > { %v1821_v46 = vmax.f32 %v1789_v59, %v1805_v54 }
 0x4cf   : > { %v4220_v11 = vadd.f32 %v1820_v43, %v3792_v42 }
 0x4d0   : > { %v4223_v7 = vadd.f32 %v1821_v46, %v3817_v32 }
 0x4d1   : > { %1866 = vmax.xlane.f32.xlu0 %v4220_v11 }
 0x4d2   : > { %1868 = vmax.xlane.f32.xlu2 %v4223_v7  ;;  %v3066_v20 = vpop.eup %3065 }
 0x4d3   : > { %v4228_v24 = vpop.eup %3067 }
 0x4d4   : > { %2045 = vmatmul.f32.gmra.mxu0 %v3064_v14 }
 0x4d9   : > { %1920 = vadd.xlane.f32.xlu0 %v3056_v48 }
 0x4da   : > { %1922 = vadd.xlane.f32.xlu2 %v3058_v53 }
 0x4dc   : > { %2048 = vmatmul.f32.gmra.mxu0 %v3066_v20 }
 0x4e1   : > { %1924 = vadd.xlane.f32.xlu0 %v3060_v22 }
 0x4e4   : > { %2051 = vmatmul.f32.gmra.mxu0 %v4228_v24 }
 0x4e9   : > { %1926 = vadd.xlane.f32.xlu0 %v3062_v50 }
 0x4f1   : > { %1928 = vadd.xlane.f32.xlu0 %v3064_v14 }
 0x4f9   : > { %1930 = vadd.xlane.f32.xlu0 %v3066_v20 }
 0x524   : > { %v1855_v56 = vpop.xlane.xlu1 %1854 }
 0x525   : > { %v1878_v51 = vsub.f32 %v4187_v5, %v1855_v56  ;;  %v1857_v33 = vpop.xlane.xlu2 %1856  ;;  %v2879_v5 = vld [vmem:[%s4673_s2 + $0x48] sm:$0xff] }
 0x526   : > { %v1879_v48 = vsub.f32 %v4190_v47, %v1857_v33  ;;  %2197 = vmatpush.msra.mxu1 %v2879_v5  ;;  %v2878_v47 = vld [vmem:[%s4673_s2 + $0x40] sm:$0xff] }
 0x527   : > { %v1902_v60 = vmul.f32 1.442695, %v1878_v51 }
 0x528   : > { %v1904_v62 = vmul.f32 1.442695, %v1879_v48  ;;  %2198 = vmatpush.msra.mxu1 %v2878_v47 }
 0x529   : > { %3069 = vpow2.f32 %v1902_v60 }
 0x52a   : > { %3071 = vpow2.f32 %v1904_v62 }
 0x52c   : > { %v1859_v55 = vpop.xlane.xlu1 %1858 }
 0x52d   : > { %v1880_v58 = vsub.f32 %v4196_v1, %v1859_v55  ;;  %v2031_v1 = vpop.f32.mrf.mxu0 }
 0x52f   : > { %v4242_v10 = vpop.eup %3069  ;;  %v1906_v53 = vmul.f32 1.442695, %v1880_v58 }
 0x530   : > { %2054 = vmatmul.f32.gmra.mxu0 %v4242_v10  ;;  %v4249_v26 = vpop.eup %3071 }
 0x531   : > { %3073 = vpow2.f32 %v1906_v53 }
 0x534   : > { %v1865_v49 = vpop.xlane.xlu1 %1864  ;;  %v1861_v36 = vpop.xlane.xlu0 %1860 }
 0x535   : > { %v1881_v39 = vsub.f32 %v4207_v38, %v1861_v36  ;;  %v1863_v45 = vpop.xlane.xlu2 %1862  ;;  %v1883_v9 = vsub.f32 %v4204_v28, %v1865_v49 }
 0x536   : > { %v1882_v22 = vsub.f32 %v4210_v21, %v1863_v45  ;;  %v4262_v21 = vld [vmem:[%s4674_s3 + $0x4] ss:$0 sm:$0xff] }
 0x537   : > { %v1908_v2 = vmul.f32 1.442695, %v1881_v39  ;;  %v4253_v29 = vpop.eup %3073  ;;  %v1912_v20 = vmul.f32 1.442695, %v1883_v9 }
 0x538   : > { %2057 = vmatmul.f32.gmra.mxu0 %v4249_v26  ;;  %v1910_v3 = vmul.f32 1.442695, %v1882_v22 }
 0x53c   : > { %v1919_v15 = vpop.xlane.xlu1 %1918 }
 0x53d   : > { %3075 = vrcp.f32 %v1919_v15 }
 0x53e   : > { %3077 = vpow2.f32 %v1908_v2 }
 0x53f   : > { %3079 = vpow2.f32 %v1910_v3 }
 0x540   : > { %2060 = vmatmul.f32.gmra.mxu0 %v4253_v29 }
 0x543   : > { %v3076_v25 = vpop.eup %3075 }
 0x544   : > { %v1966_v61 = vmul.f32 %v3076_v25, %v1919_v15  ;;  %v1867_v27 = vpop.xlane.xlu0 %1866  ;;  %v3078_v54 = vpop.eup %3077 }
 0x545   : > { %v1884_v59 = vsub.f32 %v4220_v11, %v1867_v27  ;;  %v1869_v52 = vpop.xlane.xlu2 %1868  ;;  %v2034_v11 = vpop.f32.mrf.mxu0 }
 0x546   : > { %v1982_v38 = vsub.f32 2.0, %v1966_v61  ;;  %v1885_v31 = vsub.f32 %v4223_v7, %v1869_v52  ;;  %v3080_v12 = vpop.eup %3079 }
 0x547   : > { %v1914_v50 = vmul.f32 1.442695, %v1884_v59 }
 0x548   : > { %v1998_v43 = vmul.f32 %v3076_v25, %v1982_v38  ;;  %v1916_v46 = vmul.f32 1.442695, %v1885_v31  ;;  %2063 = vmatmul.f32.gmra.mxu0 %v3078_v54 }
 0x549   : > { %3081 = vpow2.f32 %v1914_v50 }
 0x54a   : > { %v2079_v41 = vmul.f32 %v2031_v1, %v1998_v43  ;;  %3083 = vpow2.f32 %v1916_v46 }
 0x54c   : > { %v4266_v14 = vadd.f32 %v4262_v21, %v2079_v41  ;;  %v1921_v7 = vpop.xlane.xlu0 %1920 }
 0x54d   : > { %3085 = vrcp.f32 %v1921_v7  ;;  %v1923_v0 = vpop.xlane.xlu2 %1922  ;;  %v2037_v55 = vpop.f32.mrf.mxu0 }
 0x54e   : > { %v4678_v56 = vmax.f32 %v4266_v14, 0.0  ;;  %3087 = vrcp.f32 %v1923_v0 }
 0x54f   : > { %v3082_v51 = vpop.eup %3081  ;;  %3089 = vpow2.f32 %v1912_v20 }
 0x550   : > { %v3084_v33 = vpop.eup %3083  ;;  %2882 = vmatmul.msk.f32.vlgmr.msra.gmra.mxu1 %vm949_vm10, %v4678_v56  ;;  %1946 = vadd.xlane.f32.xlu2 %v3082_v51 }
 0x551   : > { %2066 = vmatmul.f32.gmra.mxu0 %v3080_v12  ;;  %1948 = vadd.xlane.f32.xlu1 %v3084_v33 }
 0x553   : > { %v3086_v28 = vpop.eup %3085 }
 0x554   : > { %v3088_v60 = vpop.eup %3087  ;;  %v1967_v48 = vmul.f32 %v3086_v28, %v1921_v7  ;;  %v1925_v17 = vpop.xlane.xlu0 %1924 }
 0x555   : > { %v1968_v34 = vmul.f32 %v3088_v60, %v1923_v0  ;;  %3091 = vrcp.f32 %v1925_v17  ;;  %v3090_v47 = vpop.eup %3089  ;;  %v2040_v25 = vpop.f32.mrf.mxu0 }
 0x556   : > { %v1983_v62 = vsub.f32 2.0, %v1967_v48 }
 0x557   : > { %v1984_v5 = vsub.f32 2.0, %v1968_v34 }
 0x558   : > { %v1999_v58 = vmul.f32 %v3086_v28, %v1983_v62  ;;  %1942 = vadd.xlane.f32.xlu2 %v3080_v12 }
 0x559   : > { %2069 = vmatmul.f32.gmra.mxu0 %v3090_v47  ;;  %1944 = vadd.xlane.f32.xlu1 %v3090_v47  ;;  %v2000_v53 = vmul.f32 %v3088_v60, %v1984_v5 }
 0x55a   : > { %v2080_v49 = vmul.f32 %v2034_v11, %v1999_v58 }
 0x55b   : > { %v3092_v36 = vpop.eup %3091  ;;  %v2081_v45 = vmul.f32 %v2037_v55, %v2000_v53 }
 0x55c   : > { %v1969_v39 = vmul.f32 %v3092_v36, %v1925_v17  ;;  %v1927_v15 = vpop.xlane.xlu0 %1926  ;;  %v4273_v2 = vadd.f32 %v4262_v21, %v2080_v49 }
 0x55d   : > { %3093 = vrcp.f32 %v1927_v15  ;;  %v4281_v61 = vadd.f32 %v4262_v21, %v2081_v45 }
 0x55e   : > { %v1985_v22 = vsub.f32 2.0, %v1969_v39  ;;  %v4679_v1 = vmax.f32 %v4273_v2, 0.0 }
 0x55f   : > { %v4680_v50 = vmax.f32 %v4281_v61, 0.0 }
 0x560   : > { %2883 = vmatmul.msk.f32.gmra.mxu1 %vm949_vm10, %v4679_v1  ;;  %1938 = vadd.xlane.f32.xlu2 %v4253_v29  ;;  %v2001_v3 = vmul.f32 %v3092_v36, %v1985_v22  ;;  %v2043_v29 = vpop.f32.mrf.mxu0 }
 0x561   : > { %2072 = vmatmul.f32.gmra.mxu0 %v3082_v51  ;;  %1940 = vadd.xlane.f32.xlu1 %v3078_v54 }
 0x562   : > { %v2082_v38 = vmul.f32 %v2040_v25, %v2001_v3 }
 0x563   : > { %v3094_v27 = vpop.eup %3093 }
 0x564   : > { %v1970_v59 = vmul.f32 %v3094_v27, %v1927_v15  ;;  %v1929_v52 = vpop.xlane.xlu0 %1928  ;;  %v4290_v43 = vadd.f32 %v4262_v21, %v2082_v38 }
 0x565   : > { %3095 = vrcp.f32 %v1929_v52 }
 0x566   : > { %v1986_v31 = vsub.f32 2.0, %v1970_v59 }
 0x568   : > { %1934 = vadd.xlane.f32.xlu2 %v4242_v10  ;;  %2884 = vmatmul.msk.f32.gmra.mxu1 %vm949_vm10, %v4680_v50  ;;  %v2002_v54 = vmul.f32 %v3094_v27, %v1986_v31  ;;  %v4681_v10 = vmax.f32 %v4290_v43, 0.0  ;;  %v2046_v20 = vpop.f32.mrf.mxu0 }
 0x569   : > { %1936 = vadd.xlane.f32.xlu1 %v4249_v26  ;;  %2075 = vmatmul.f32.gmra.mxu0 %v3084_v33 }
 0x56a   : > { %v2083_v11 = vmul.f32 %v2043_v29, %v2002_v54 }
 0x56b   : > { %v3096_v46 = vpop.eup %3095 }
 0x56c   : > { %v1971_v9 = vmul.f32 %v3096_v46, %v1929_v52  ;;  %v1931_v41 = vpop.xlane.xlu0 %1930  ;;  %v4298_v0 = vadd.f32 %v4262_v21, %v2083_v11 }
 0x56d   : > { %3097 = vrcp.f32 %v1931_v41 }
 0x56e   : > { %v1987_v7 = vsub.f32 2.0, %v1971_v9  ;;  %v4682_v60 = vmax.f32 %v4298_v0, 0.0 }
 0x570   : > { %2885 = vmatmul.msk.f32.gmra.mxu1 %vm949_vm10, %v4681_v10  ;;  %v2003_v26 = vmul.f32 %v3096_v46, %v1987_v7 }
 0x571   : > { %1932 = vadd.xlane.f32.xlu1 %v4228_v24  ;;  %v2049_v24 = vpop.f32.mrf.mxu0 }
 0x572   : > { %v2084_v33 = vmul.f32 %v2046_v20, %v2003_v26 }
 0x573   : > { %v3098_v12 = vpop.eup %3097 }
 0x574   : > { %v1972_v51 = vmul.f32 %v3098_v12, %v1931_v41  ;;  %v4305_v17 = vadd.f32 %v4262_v21, %v2084_v33 }
 0x576   : > { %v1988_v28 = vsub.f32 2.0, %v1972_v51  ;;  %v4683_v34 = vmax.f32 %v4305_v17, 0.0 }
 0x578   : > { %2886 = vmatmul.msk.f32.gmra.mxu1 %vm949_vm10, %v4682_v60  ;;  %v2004_v48 = vmul.f32 %v3098_v12, %v1988_v28 }
 0x579   : > { %v4318_v47 = vpop.f32.mrf.mxu0 }
 0x57a   : > { %v2085_v55 = vmul.f32 %v2049_v24, %v2004_v48 }
 0x57c   : > { %v4312_v62 = vadd.f32 %v4262_v21, %v2085_v55 }
 0x57e   : > { %v2118_v5 = vmax.f32 %v4312_v62, 0.0  ;;  %v4691_v62 = vmax.f32 %v4281_v61, 0.0 }
 0x580   : > { %2887 = vmatmul.msk.f32.gmra.mxu1 %vm949_vm10, %v4683_v34 }
 0x588   : > { %2888 = vmatmul.msk.f32.gmra.mxu1 %vm949_vm10, %v2118_v5 }
 0x5ad   : > { %v4320_v58 = vpop.f32.mrf.mxu0 }
 0x5b5   : > { %v4322_v49 = vpop.f32.mrf.mxu0 }
 0x5bd   : > { %v4324_v53 = vpop.f32.mrf.mxu0 }
 0x5c3   : > { %v1947_v36 = vpop.xlane.xlu2 %1946 }
 0x5c4   : > { %v1949_v39 = vpop.xlane.xlu1 %1948  ;;  %3099 = vrcp.f32 %v1947_v36 }
 0x5c5   : > { %v4326_v15 = vpop.f32.mrf.mxu0  ;;  %3101 = vrcp.f32 %v1949_v39 }
 0x5ca   : > { %v3100_v29 = vpop.eup %3099 }
 0x5cb   : > { %v1943_v45 = vpop.xlane.xlu2 %1942  ;;  %v3102_v54 = vpop.eup %3101  ;;  %v1980_v11 = vmul.f32 %v3100_v29, %v1947_v36 }
 0x5cc   : > { %v1945_v22 = vpop.xlane.xlu1 %1944  ;;  %v1981_v41 = vmul.f32 %v3102_v54, %v1949_v39 }
 0x5cd   : > { %v4328_v25 = vpop.f32.mrf.mxu1  ;;  %3103 = vrcp.f32 %v1945_v22  ;;  %v1996_v24 = vsub.f32 2.0, %v1980_v11 }
 0x5ce   : > { %v2067_v3 = vpop.f32.mrf.mxu0  ;;  %v2248_v27 = vmul.f32 %v3497_v44, %v4328_v25  ;;  %3105 = vrcp.f32 %v1943_v45  ;;  %v1997_v48 = vsub.f32 2.0, %v1981_v41 }
 0x5cf   : > { %v2012_v56 = vmul.f32 %v3100_v29, %v1996_v24 }
 0x5d0   : > { %v2264_v59 = vsel %vm1139_vm8, %v2248_v27, 0.0 }
 0x5d1   : > { %2265 = vadd.xlane.f32.xlu0 %v2264_v59 }
 0x5d3   : > { %v1939_v38 = vpop.xlane.xlu2 %1938  ;;  %v3104_v46 = vpop.eup %3103 }
 0x5d4   : > { %v1941_v52 = vpop.xlane.xlu1 %1940  ;;  %v3106_v26 = vpop.eup %3105  ;;  %v1979_v12 = vmul.f32 %v3104_v46, %v1945_v22  ;;  %v2013_v22 = vmul.f32 %v3102_v54, %v1997_v48 }
 0x5d5   : > { %3107 = vrcp.f32 %v1941_v52  ;;  %v1978_v55 = vmul.f32 %v3106_v26, %v1943_v45 }
 0x5d6   : > { %v2070_v31 = vpop.f32.mrf.mxu0  ;;  %v1995_v27 = vsub.f32 2.0, %v1979_v12 }
 0x5d7   : > { %v1994_v59 = vsub.f32 2.0, %v1978_v55 }
 0x5d8   : > { %v2011_v50 = vmul.f32 %v3104_v46, %v1995_v27 }
 0x5d9   : > { %v2010_v34 = vmul.f32 %v3106_v26, %v1994_v59 }
 0x5da   : > { %v2092_v54 = vmul.f32 %v2070_v31, %v2011_v50 }
 0x5db   : > { %v1935_v20 = vpop.xlane.xlu2 %1934  ;;  %v3108_v36 = vpop.eup %3107 }
 0x5dc   : > { %v1937_v9 = vpop.xlane.xlu1 %1936  ;;  %3109 = vrcp.f32 %v1935_v20  ;;  %v1977_v45 = vmul.f32 %v3108_v36, %v1941_v52  ;;  %v4356_v50 = vadd.f32 %v4262_v21, %v2092_v54 }
 0x5dd   : > { %v4333_v7 = vpop.f32.mrf.mxu1  ;;  %3111 = vrcp.f32 %v1939_v38 }
 0x5de   : > { %v2073_v51 = vpop.f32.mrf.mxu0  ;;  %v2249_v33 = vmul.f32 %v3497_v44, %v4333_v7  ;;  %v1993_v24 = vsub.f32 2.0, %v1977_v45 }
 0x5e0   : > { %v2267_v28 = vsel %vm1139_vm8, %v2249_v33, 0.0  ;;  %v2093_v33 = vmul.f32 %v2073_v51, %v2012_v56  ;;  %v2091_v51 = vmul.f32 %v2067_v3, %v2010_v34 }
 0x5e1   : > { %2268 = vadd.xlane.f32.xlu2 %v2267_v28 }
 0x5e2   : > { %v3110_v11 = vpop.eup %3109  ;;  %v4347_v27 = vadd.f32 %v4262_v21, %v2093_v33 }
 0x5e3   : > { %v3112_v12 = vpop.eup %3111  ;;  %v1974_v48 = vmul.f32 %v3110_v11, %v1935_v20  ;;  %v2009_v20 = vmul.f32 %v3108_v36, %v1993_v24  ;;  %v2125_v36 = vmax.f32 %v4356_v50, 0.0 }
 0x5e4   : > { %v1933_v39 = vpop.xlane.xlu1 %1932  ;;  %v1976_v55 = vmul.f32 %v3112_v12, %v1939_v38 }
 0x5e5   : > { %3113 = vrcp.f32 %v1933_v39  ;;  %v4338_v1 = vpop.f32.mrf.mxu1 }
 0x5e6   : > { %3115 = vrcp.f32 %v1937_v9  ;;  %v2076_v10 = vpop.f32.mrf.mxu0  ;;  %v2250_v41 = vmul.f32 %v3497_v44, %v4338_v1  ;;  %v1992_v59 = vsub.f32 2.0, %v1976_v55 }
 0x5e7   : > { %v2094_v28 = vmul.f32 %v2076_v10, %v2013_v22 }
 0x5e8   : > { %v2270_v60 = vsel %vm1139_vm8, %v2250_v41, 0.0  ;;  %v2108_v41 = vadd.f32 %v4262_v21, %v2091_v51  ;;  %v2008_v54 = vmul.f32 %v3112_v12, %v1992_v59 }
 0x5e9   : > { %v4344_v29 = vadd.f32 %v4262_v21, %v2094_v28  ;;  %2271 = vadd.xlane.f32.xlu1 %v2270_v60  ;;  %v1990_v60 = vsub.f32 2.0, %v1974_v48  ;;  %v2090_v28 = vmul.f32 %v4326_v15, %v2009_v20 }
 0x5eb   : > { %v3114_v46 = vpop.eup %3113  ;;  %v2127_v52 = vmax.f32 %v4344_v29, 0.0  ;;  %v2006_v45 = vmul.f32 %v3110_v11, %v1990_v60  ;;  %v2107_v12 = vadd.f32 %v4262_v21, %v2090_v28 }
 0x5ec   : > { %v3116_v56 = vpop.eup %3115  ;;  %v1973_v10 = vmul.f32 %v3114_v46, %v1933_v39  ;;  %v2126_v39 = vmax.f32 %v4347_v27, 0.0  ;;  %v2124_v27 = vmax.f32 %v2108_v41, 0.0  ;;  %v4689_v41 = vmax.f32 %v4298_v0, 0.0 }
 0x5ed   : > { %2898 = vmatpush.xpose.msk.msra.mxu3 %vm949_vm10, %v2127_v52  ;;  %v4353_v26 = vpop.f32.mrf.mxu1  ;;  %v1975_v22 = vmul.f32 %v3116_v56, %v1937_v9  ;;  %v2087_v24 = vmul.f32 %v4320_v58, %v2006_v45  ;;  %v2123_v50 = vmax.f32 %v2107_v12, 0.0  ;;  %v4690_v45 = vmax.f32 %v4290_v43, 0.0  ;;  %v2133_v43 = vld [vmem:[%s4674_s3 + $0x2] sm:$0x1] }
 0x5ee   : > { %v1989_v31 = vsub.f32 2.0, %v1973_v10  ;;  %v2251_v38 = vmul.f32 %v3497_v44, %v4353_v26  ;;  %v4693_v0 = vmax.f32 %v4266_v14, 0.0 }
 0x5ef   : > { %v1991_v48 = vsub.f32 2.0, %v1975_v22  ;;  %v2104_v51 = vadd.f32 %v4262_v21, %v2087_v24 }
 0x5f0   : > { %v2005_v34 = vmul.f32 %v3114_v46, %v1989_v31  ;;  %v2273_v3 = vsel %vm1139_vm8, %v2251_v38, 0.0 }
 0x5f1   : > { %2899 = vmatpush.xpose.msk.msra.mxu3 %vm949_vm10, %v2126_v39  ;;  %2274 = vadd.xlane.f32.xlu0 %v2273_v3  ;;  %v2007_v15 = vmul.f32 %v3116_v56, %v1991_v48  ;;  %v2120_v31 = vmax.f32 %v2104_v51, 0.0 }
 0x5f2   : > { %v2086_v33 = vmul.f32 %v4318_v47, %v2005_v34  ;;  %v2089_v47 = vmul.f32 %v4324_v53, %v2008_v54 }
 0x5f3   : > { %v2088_v58 = vmul.f32 %v4322_v49, %v2007_v15 }
 0x5f4   : > { %v2103_v9 = vadd.f32 %v4262_v21, %v2086_v33  ;;  %v2106_v60 = vadd.f32 %v4262_v21, %v2089_v47 }
 0x5f5   : > { %2900 = vmatpush.xpose.msk.msra.mxu3 %vm949_vm10, %v2125_v36  ;;  %v4369_v46 = vpop.f32.mrf.mxu1  ;;  %v2105_v20 = vadd.f32 %v4262_v21, %v2088_v58  ;;  %v4688_v21 = vmax.f32 %v4305_v17, 0.0  ;;  %v4692_v17 = vmax.f32 %v4273_v2, 0.0 }
 0x5f6   : > { %v2252_v55 = vmul.f32 %v3497_v44, %v4369_v46  ;;  %v2119_v11 = vmax.f32 %v2103_v9, 0.0  ;;  %v2122_v38 = vmax.f32 %v2106_v60, 0.0 }
 0x5f7   : > { %v2121_v49 = vmax.f32 %v2105_v20, 0.0 }
 0x5f8   : > { %2889 = vmatmul.msk.f32.gmra.mxu1 %vm949_vm10, %v2119_v11  ;;  %v2276_v10 = vsel %vm1139_vm8, %v2252_v55, 0.0 }
 0x5f9   : > { %2901 = vmatpush.xpose.msk.msra.mxu3 %vm949_vm10, %v2124_v27  ;;  %2277 = vadd.xlane.f32.xlu2 %v2276_v10 }
 0x5fd   : > { %2902 = vmatpush.xpose.msk.msra.mxu3 %vm949_vm10, %v2123_v50  ;;  %v4383_v53 = vpop.f32.mrf.mxu1 }
 0x5fe   : > { %v2253_v56 = vmul.f32 %v3497_v44, %v4383_v53 }
 0x600   : > { %2890 = vmatmul.msk.f32.gmra.mxu1 %vm949_vm10, %v2120_v31  ;;  %v2279_v59 = vsel %vm1139_vm8, %v2253_v56, 0.0 }
 0x601   : > { %2903 = vmatpush.xpose.msk.msra.mxu3 %vm949_vm10, %v2122_v38  ;;  %2280 = vadd.xlane.f32.xlu1 %v2279_v59 }
 0x605   : > { %2904 = vmatpush.xpose.msk.msra.mxu3 %vm949_vm10, %v2121_v49  ;;  %v4392_v22 = vpop.f32.mrf.mxu1 }
 0x606   : > { %v2254_v34 = vmul.f32 %v3497_v44, %v4392_v22 }
 0x608   : > { %2891 = vmatmul.msk.f32.gmra.mxu1 %vm949_vm10, %v2121_v49  ;;  %v2282_v3 = vsel %vm1139_vm8, %v2254_v34, 0.0 }
 0x609   : > { %2905 = vmatpush.xpose.msk.msra.mxu3 %vm949_vm10, %v2120_v31  ;;  %2283 = vadd.xlane.f32.xlu0 %v2282_v3 }
 0x60d   : > { %2906 = vmatpush.xpose.msk.msra.mxu3 %vm949_vm10, %v2119_v11 }
 0x610   : > { %2892 = vmatmul.msk.f32.gmra.mxu1 %vm949_vm10, %v2122_v38 }
 0x611   : > { %2907 = vmatpush.xpose.msk.msra.mxu3 %vm949_vm10, %v2118_v5 }
 0x615   : > { %2908 = vmatpush.xpose.msk.msra.mxu3 %vm949_vm10, %v4688_v21 }
 0x618   : > { %2893 = vmatmul.msk.f32.gmra.mxu1 %vm949_vm10, %v2123_v50 }
 0x619   : > { %2909 = vmatpush.xpose.msk.msra.mxu3 %vm949_vm10, %v4689_v41 }
 0x61d   : > { %2910 = vmatpush.xpose.msk.msra.mxu3 %vm949_vm10, %v4690_v45 }
 0x620   : > { %2894 = vmatmul.msk.f32.gmra.mxu1 %vm949_vm10, %v2124_v27 }
 0x621   : > { %2911 = vmatpush.xpose.msk.msra.mxu3 %vm949_vm10, %v4691_v62 }
 0x625   : > { %2912 = vmatpush.xpose.msk.msra.mxu3 %vm949_vm10, %v4692_v17 }
 0x628   : > { %2895 = vmatmul.msk.f32.gmra.mxu1 %vm949_vm10, %v2125_v36 }
 0x629   : > { %2913 = vmatpush.xpose.msk.msra.mxu3 %vm949_vm10, %v4693_v0 }
 0x62c   : > { %2914 = vmatmul.msk.f32.vlgmr.msra.gmra.mxu3 %vm949_vm10, %v2133_v43 }
 0x630   : > { %2896 = vmatmul.msk.f32.gmra.mxu1 %vm949_vm10, %v2126_v39 }
 0x638   : > { %2897 = vmatmul.msk.f32.gmra.mxu1 %vm949_vm10, %v2127_v52 }
 0x644   : > { %v2266_v9 = vpop.xlane.xlu0 %2265 }
 0x654   : > { %v2269_v24 = vpop.xlane.xlu2 %2268 }
 0x65c   : > { %v2272_v55 = vpop.xlane.xlu1 %2271 }
 0x664   : > { %v2275_v20 = vpop.xlane.xlu0 %2274 }
 0x66c   : > { %v2278_v49 = vpop.xlane.xlu2 %2277 }
 0x674   : > { %v2281_v59 = vpop.xlane.xlu1 %2280 }
 0x675   : > { %v2221_v2 = vpop.f32.mrf.mxu1 }
 0x676   : > { %v2255_v61 = vmul.f32 %v3497_v44, %v2221_v2 }
 0x678   : > { %v2285_v5 = vsel %vm1139_vm8, %v2255_v61, 0.0 }
 0x679   : > { %2286 = vadd.xlane.f32.xlu1 %v2285_v5 }
 0x67d   : > { %v2224_v14 = vpop.f32.mrf.mxu1 }
 0x685   : > { %v2227_v33 = vpop.f32.mrf.mxu1 }
 0x686   : > { %v2257_v21 = vmul.f32 %v3497_v44, %v2227_v33 }
 0x688   : > { %v2291_v43 = vsel %vm1139_vm8, %v2257_v21, 0.0 }
 0x68d   : > { %v2230_v28 = vpop.f32.mrf.mxu1 }
 0x695   : > { %v4435_v54 = vpop.f32.mrf.mxu1 }
 0x69d   : > { %v4437_v36 = vpop.f32.mrf.mxu1 }
 0x6a5   : > { %v4439_v48 = vpop.f32.mrf.mxu1 }
 0x6ad   : > { %v4441_v39 = vpop.f32.mrf.mxu1 }
 0x6af   : > { %v2332_v29 = vpop.f32.mrf.mxu3 }
 0x6b0   : > { %v4443_v52 = vperm.slane %v2332_v29, 0 }
 0x6b2   : > { %v2338_v11 = vadd.f32 %v4443_v52, %v2272_v55  ;;  %v2336_v27 = vadd.f32 %v4443_v52, %v2266_v9  ;;  %v2337_v47 = vadd.f32 %v4443_v52, %v2269_v24  ;;  %v2341_v34 = vadd.f32 %v4443_v52, %v2281_v59 }
 0x6b3   : > { %v2340_v3 = vadd.f32 %v4443_v52, %v2278_v49 }
 0x6b4   : > { %v2354_v15 = vmul.f32 0.2, %v2338_v11  ;;  %v2352_v12 = vmul.f32 0.2, %v2336_v27  ;;  %v2353_v10 = vmul.f32 0.2, %v2337_v47 }
 0x6b5   : > { %v4448_v51 = vpop.f32.mrf.mxu1  ;;  %v2357_v45 = vmul.f32 0.2, %v2341_v34  ;;  %v2356_v0 = vmul.f32 0.2, %v2340_v3 }
 0x6b6   : > { %2576 = vmatpush.msrb.mxu2 %v4448_v51  ;;  %v2370_v58 = vmax.f32 %v2338_v11, %v2354_v15  ;;  %v2368_v50 = vmax.f32 %v2336_v27, %v2352_v12  ;;  %v2369_v60 = vmax.f32 %v2337_v47, %v2353_v10 }
 0x6b7   : > { %v2373_v5 = vmax.f32 %v2341_v34, %v2357_v45  ;;  %v2372_v29 = vmax.f32 %v2340_v3, %v2356_v0 }
 0x6b8   : > { %2577 = vmatpush.msrb.mxu2 %v4441_v39  ;;  %v4453_v56 = vadd.f32 %v2370_v58, %v3722_v40  ;;  %v4456_v31 = vadd.f32 %v2368_v50, %v3605_v4  ;;  %v4459_v38 = vadd.f32 %v2369_v60, %v3620_v30  ;;  %v2339_v40 = vadd.f32 %v4443_v52, %v2275_v20 }
 0x6b9   : > { %v2256_v4 = vmul.f32 %v3497_v44, %v2224_v14  ;;  %v2258_v30 = vmul.f32 %v3497_v44, %v2230_v28  ;;  %v4484_v24 = vadd.f32 %v2372_v29, %v3743_v13  ;;  %v2260_v13 = vmul.f32 %v3497_v44, %v4437_v36 }
 0x6ba   : > { %2404 = vmax.xlane.f32.xlu1 %v4453_v56  ;;  %2400 = vmax.xlane.f32.xlu2 %v4456_v31  ;;  %v2355_v41 = vmul.f32 0.2, %v2339_v40 }
 0x6bb   : > { %2578 = vmatpush.msrb.mxu2 %v4439_v48  ;;  %2402 = vmax.xlane.f32.xlu0 %v4459_v38  ;;  %v2288_v62 = vsel %vm1139_vm8, %v2256_v4, 0.0  ;;  %v2294_v17 = vsel %vm1139_vm8, %v2258_v30, 0.0 }
 0x6bc   : > { %v2371_v61 = vmax.f32 %v2339_v40, %v2355_v41 }
 0x6bd   : > { %2579 = vmatpush.msrb.mxu2 %v4437_v36 }
 0x6be   : > { %v4477_v9 = vadd.f32 %v2371_v61, %v3690_v63 }
 0x6bf   : > { %2580 = vmatpush.msrb.mxu2 %v4435_v54 }
 0x6c1   : > { %2581 = vmatpush.msrb.mxu2 %v2230_v28  ;;  %v4480_v28 = vadd.f32 %v2373_v5, %v3861_v8  ;;  %v2259_v8 = vmul.f32 %v3497_v44, %v4435_v54  ;;  %v2300_v54 = vsel %vm1139_vm8, %v2260_v13, 0.0 }
 0x6c2   : > { %2289 = vadd.xlane.f32.xlu2 %v2288_v62  ;;  %2295 = vadd.xlane.f32.xlu1 %v2294_v17 }
 0x6c3   : > { %2582 = vmatpush.msrb.mxu2 %v2227_v33  ;;  %2292 = vadd.xlane.f32.xlu0 %v2291_v43  ;;  %v2284_v33 = vpop.xlane.xlu0 %2283 }
 0x6c4   : > { %v2342_v63 = vadd.f32 %v4443_v52, %v2284_v33 }
 0x6c5   : > { %2583 = vmatpush.msrb.mxu2 %v2224_v14 }
 0x6c7   : > { %2584 = vmatpush.msrb.mxu2 %v2221_v2  ;;  %v2358_v2 = vmul.f32 0.2, %v2342_v63 }
 0x6c9   : > { %2585 = vmatpush.msrb.mxu2 %v4392_v22  ;;  %v2261_v22 = vmul.f32 %v3497_v44, %v4439_v48 }
 0x6ca   : > { %2406 = vmax.xlane.f32.xlu2 %v4477_v9  ;;  %2410 = vmax.xlane.f32.xlu1 %v4480_v28 }
 0x6cb   : > { %2586 = vmatpush.msrb.mxu2 %v4383_v53  ;;  %2408 = vmax.xlane.f32.xlu0 %v4484_v24  ;;  %v2297_v53 = vsel %vm1139_vm8, %v2259_v8, 0.0  ;;  %v2303_v14 = vsel %vm1139_vm8, %v2261_v22, 0.0 }
 0x6cd   : > { %2587 = vmatpush.msrb.mxu2 %v4369_v46  ;;  %v2374_v46 = vmax.f32 %v2342_v63, %v2358_v2 }
 0x6cf   : > { %2588 = vmatpush.msrb.mxu2 %v4353_v26  ;;  %v4506_v36 = vadd.f32 %v2374_v46, %v3780_v35  ;;  %v2263_v35 = vmul.f32 %v3497_v44, %v4448_v51 }
 0x6d1   : > { %2589 = vmatpush.msrb.mxu2 %v4338_v1  ;;  %v2262_v1 = vmul.f32 %v3497_v44, %v4441_v39 }
 0x6d2   : > { %2298 = vadd.xlane.f32.xlu2 %v2297_v53  ;;  %2304 = vadd.xlane.f32.xlu1 %v2303_v14 }
 0x6d3   : > { %2590 = vmatpush.msrb.mxu2 %v4333_v7  ;;  %2301 = vadd.xlane.f32.xlu0 %v2300_v54  ;;  %v2306_v26 = vsel %vm1139_vm8, %v2262_v1, 0.0 }
 0x6d5   : > { %2591 = vmatpush.msrb.mxu2 %v4328_v25  ;;  %v2309_v25 = vsel %vm1139_vm8, %v2263_v35, 0.0 }
 0x6da   : > { %2412 = vmax.xlane.f32.xlu2 %v4506_v36 }
 0x6e2   : > { %2307 = vadd.xlane.f32.xlu2 %v2306_v26 }
 0x6ec   : > { %v2287_v48 = vpop.xlane.xlu1 %2286 }
 0x6ed   : > { %v2343_v55 = vadd.f32 %v4443_v52, %v2287_v48 }
 0x6ef   : > { %v2359_v11 = vmul.f32 0.2, %v2343_v55 }
 0x6f1   : > { %v2375_v7 = vmax.f32 %v2343_v55, %v2359_v11 }
 0x6f3   : > { %v4514_v27 = vadd.f32 %v2375_v7, %v3831_v57 }
 0x6f5   : > { %2414 = vmax.xlane.f32.xlu0 %v4514_v27 }
 0x6fd   : > { %2310 = vadd.xlane.f32.xlu0 %v2309_v25 }
 0x72d   : > { %v2405_v39 = vpop.xlane.xlu1 %2404  ;;  %v2401_v47 = vpop.xlane.xlu2 %2400 }
 0x72e   : > { %v2403_v15 = vpop.xlane.xlu0 %2402  ;;  %v2432_v12 = vsub.f32 %v4456_v31, %v2401_v47  ;;  %v2434_v31 = vsub.f32 %v4453_v56, %v2405_v39 }
 0x72f   : > { %v2433_v58 = vsub.f32 %v4459_v38, %v2403_v15 }
 0x730   : > { %v2448_v10 = vmul.f32 1.442695, %v2432_v12  ;;  %v2452_v17 = vmul.f32 1.442695, %v2434_v31 }
 0x731   : > { %v2450_v44 = vmul.f32 1.442695, %v2433_v58 }
 0x732   : > { %3117 = vpow2.f32 %v2448_v10 }
 0x733   : > { %3119 = vpow2.f32 %v2450_v44 }
 0x734   : > { %3121 = vpow2.f32 %v2452_v17 }
 0x735   : > { %v2296_v50 = vpop.xlane.xlu1 %2295  ;;  %v2290_v57 = vpop.xlane.xlu2 %2289 }
 0x736   : > { %v2293_v60 = vpop.xlane.xlu0 %2292  ;;  %v2344_v20 = vadd.f32 %v4443_v52, %v2290_v57  ;;  %v2346_v51 = vadd.f32 %v4443_v52, %v2296_v50 }
 0x737   : > { %v2345_v59 = vadd.f32 %v4443_v52, %v2293_v60 }
 0x738   : > { %v2360_v49 = vmul.f32 0.2, %v2344_v20  ;;  %v3118_v34 = vpop.eup %3117  ;;  %v2362_v38 = vmul.f32 0.2, %v2346_v51 }
 0x739   : > { %v2361_v40 = vmul.f32 0.2, %v2345_v59  ;;  %2592 = vmatmul.f32.vlgmr.msrb.gmra.mxu2 %v3118_v34  ;;  %v3120_v43 = vpop.eup %3119 }
 0x73a   : > { %v2376_v4 = vmax.f32 %v2344_v20, %v2360_v49  ;;  %v2378_v0 = vmax.f32 %v2346_v51, %v2362_v38  ;;  %v3122_v53 = vpop.eup %3121 }
 0x73b   : > { %v2377_v30 = vmax.f32 %v2345_v59, %v2361_v40 }
 0x73c   : > { %v4527_v3 = vadd.f32 %v2376_v4, %v3828_v37  ;;  %v4536_v37 = vadd.f32 %v2378_v0, %v3888_v19 }
 0x73d   : > { %v2411_v21 = vpop.xlane.xlu1 %2410  ;;  %v2407_v41 = vpop.xlane.xlu2 %2406  ;;  %v4530_v45 = vadd.f32 %v2377_v30, %v3870_v23 }
 0x73e   : > { %v2409_v62 = vpop.xlane.xlu0 %2408  ;;  %2416 = vmax.xlane.f32.xlu1 %v4527_v3  ;;  %v2435_v56 = vsub.f32 %v4477_v9, %v2407_v41 }
 0x73f   : > { %2418 = vmax.xlane.f32.xlu2 %v4530_v45  ;;  %v2436_v54 = vsub.f32 %v4484_v24, %v2409_v62  ;;  %v2437_v24 = vsub.f32 %v4480_v28, %v2411_v21 }
 0x740   : > { %v2454_v8 = vmul.f32 1.442695, %v2435_v56 }
 0x741   : > { %2595 = vmatmul.f32.gmra.mxu2 %v3120_v43  ;;  %v2456_v55 = vmul.f32 1.442695, %v2436_v54 }
 0x742   : > { %3123 = vpow2.f32 %v2454_v8 }
 0x743   : > { %3125 = vpow2.f32 %v2456_v55 }
 0x745   : > { %v2305_v61 = vpop.xlane.xlu1 %2304  ;;  %v2299_v5 = vpop.xlane.xlu2 %2298 }
 0x746   : > { %v2349_v23 = vadd.f32 %v4443_v52, %v2305_v61  ;;  %v2302_v29 = vpop.xlane.xlu0 %2301  ;;  %v2347_v33 = vadd.f32 %v4443_v52, %v2299_v5  ;;  %2420 = vmax.xlane.f32.xlu1 %v4536_v37 }
 0x747   : > { %v2348_v63 = vadd.f32 %v4443_v52, %v2302_v29 }
 0x748   : > { %v2365_v22 = vmul.f32 0.2, %v2349_v23  ;;  %v2363_v13 = vmul.f32 0.2, %v2347_v33  ;;  %v3124_v11 = vpop.eup %3123 }
 0x749   : > { %v2364_v2 = vmul.f32 0.2, %v2348_v63  ;;  %2598 = vmatmul.f32.gmra.mxu2 %v3122_v53  ;;  %v3126_v25 = vpop.eup %3125 }
 0x74a   : > { %v2381_v9 = vmax.f32 %v2349_v23, %v2365_v22  ;;  %v2379_v14 = vmax.f32 %v2347_v33, %v2363_v13 }
 0x74b   : > { %v2380_v19 = vmax.f32 %v2348_v63, %v2364_v2 }
 0x74c   : > { %v4544_v46 = vadd.f32 %v2381_v9, %v3766_v18  ;;  %v4547_v1 = vadd.f32 %v2379_v14, %v3805_v16 }
 0x74d   : > { %v2413_v26 = vpop.xlane.xlu2 %2412  ;;  %v4550_v48 = vadd.f32 %v2380_v19, %v3758_v6  ;;  %v2458_v6 = vmul.f32 1.442695, %v2437_v24  ;;  %v4581_v19 = vld [vmem:[%s4674_s3 + $0x5] ss:$0 sm:$0xff] }
 0x74e   : > { %2426 = vmax.xlane.f32.xlu1 %v4544_v46  ;;  %2422 = vmax.xlane.f32.xlu0 %v4547_v1  ;;  %v2438_v7 = vsub.f32 %v4506_v36, %v2413_v26 }
 0x74f   : > { %2424 = vmax.xlane.f32.xlu2 %v4550_v48  ;;  %3127 = vpow2.f32 %v2458_v6 }
 0x750   : > { %v2460_v47 = vmul.f32 1.442695, %v2438_v7 }
 0x751   : > { %2601 = vmatmul.f32.gmra.mxu2 %v3124_v11 }
 0x752   : > { %3129 = vpow2.f32 %v2460_v47 }
 0x755   : > { %v2308_v18 = vpop.xlane.xlu2 %2307  ;;  %v3128_v28 = vpop.eup %3127 }
 0x756   : > { %v2350_v16 = vadd.f32 %v4443_v52, %v2308_v18  ;;  %2480 = vadd.xlane.f32.xlu1 %v3118_v34 }
 0x758   : > { %v2366_v35 = vmul.f32 0.2, %v2350_v16  ;;  %v3130_v12 = vpop.eup %3129 }
 0x759   : > { %2604 = vmatmul.f32.gmra.mxu2 %v3126_v25 }
 0x75a   : > { %v2382_v39 = vmax.f32 %v2350_v16, %v2366_v35 }
 0x75c   : > { %v4559_v15 = vadd.f32 %v2382_v39, %v3792_v42 }
 0x75e   : > { %2486 = vadd.xlane.f32.xlu1 %v3124_v11  ;;  %2428 = vmax.xlane.f32.xlu0 %v4559_v15 }
 0x761   : > { %2607 = vmatmul.f32.gmra.mxu2 %v3128_v28 }
 0x766   : > { %2492 = vadd.xlane.f32.xlu1 %v3130_v12  ;;  %2482 = vadd.xlane.f32.xlu0 %v3120_v43 }
 0x768   : > { %v2415_v36 = vpop.xlane.xlu0 %2414 }
 0x769   : > { %v2439_v10 = vsub.f32 %v4514_v27, %v2415_v36  ;;  %2610 = vmatmul.f32.gmra.mxu2 %v3130_v12 }
 0x76b   : > { %v2462_v58 = vmul.f32 1.442695, %v2439_v10 }
 0x76d   : > { %3131 = vpow2.f32 %v2462_v58 }
 0x76e   : > { %2488 = vadd.xlane.f32.xlu0 %v3126_v25 }
 0x770   : > { %v2311_v50 = vpop.xlane.xlu0 %2310 }
 0x771   : > { %v2351_v42 = vadd.f32 %v4443_v52, %v2311_v50 }
 0x773   : > { %v3132_v57 = vpop.eup %3131  ;;  %v2367_v60 = vmul.f32 0.2, %v2351_v42 }
 0x774   : > { %2613 = vmatmul.f32.gmra.mxu2 %v3132_v57 }
 0x775   : > { %v2383_v20 = vmax.f32 %v2351_v42, %v2367_v60 }
 0x776   : > { %2494 = vadd.xlane.f32.xlu0 %v3132_v57 }
 0x777   : > { %v4565_v59 = vadd.f32 %v2383_v20, %v3817_v32 }
 0x779   : > { %2430 = vmax.xlane.f32.xlu2 %v4565_v59 }
 0x781   : > { %2484 = vadd.xlane.f32.xlu2 %v3122_v53 }
 0x789   : > { %2490 = vadd.xlane.f32.xlu2 %v3128_v28 }
 0x7b1   : > { %v2417_v27 = vpop.xlane.xlu1 %2416 }
 0x7b2   : > { %v2440_v44 = vsub.f32 %v4527_v3, %v2417_v27  ;;  %v2419_v51 = vpop.xlane.xlu2 %2418 }
 0x7b3   : > { %v2441_v49 = vsub.f32 %v4530_v45, %v2419_v51 }
 0x7b4   : > { %v2464_v40 = vmul.f32 1.442695, %v2440_v44 }
 0x7b5   : > { %v2466_v52 = vmul.f32 1.442695, %v2441_v49 }
 0x7b6   : > { %3133 = vpow2.f32 %v2464_v40 }
 0x7b7   : > { %3135 = vpow2.f32 %v2466_v52 }
 0x7b9   : > { %v2421_v34 = vpop.xlane.xlu1 %2420 }
 0x7ba   : > { %v2442_v4 = vsub.f32 %v4536_v37, %v2421_v34 }
 0x7bc   : > { %v3134_v30 = vpop.eup %3133  ;;  %v2468_v32 = vmul.f32 1.442695, %v2442_v4  ;;  %v2593_v38 = vpop.f32.mrf.mxu2 }
 0x7bd   : > { %v3136_v31 = vpop.eup %3135  ;;  %2496 = vadd.xlane.f32.xlu2 %v3134_v30  ;;  %2616 = vmatmul.f32.gmra.mxu2 %v3134_v30 }
 0x7be   : > { %3137 = vpow2.f32 %v2468_v32  ;;  %2498 = vadd.xlane.f32.xlu1 %v3136_v31 }
 0x7c1   : > { %v2427_v21 = vpop.xlane.xlu1 %2426  ;;  %v2423_v3 = vpop.xlane.xlu0 %2422 }
 0x7c2   : > { %v2445_v41 = vsub.f32 %v4544_v46, %v2427_v21  ;;  %v2443_v45 = vsub.f32 %v4547_v1, %v2423_v3  ;;  %v2425_v62 = vpop.xlane.xlu2 %2424 }
 0x7c3   : > { %v2444_v17 = vsub.f32 %v4550_v48, %v2425_v62 }
 0x7c4   : > { %v3138_v0 = vpop.eup %3137  ;;  %v2474_v43 = vmul.f32 1.442695, %v2445_v41  ;;  %v2470_v56 = vmul.f32 1.442695, %v2443_v45  ;;  %v2596_v61 = vpop.f32.mrf.mxu2 }
 0x7c5   : > { %v2472_v37 = vmul.f32 1.442695, %v2444_v17  ;;  %2500 = vadd.xlane.f32.xlu0 %v3138_v0  ;;  %2619 = vmatmul.f32.gmra.mxu2 %v3136_v31 }
 0x7c6   : > { %3139 = vpow2.f32 %v2474_v43 }
 0x7c7   : > { %3141 = vpow2.f32 %v2470_v56 }
 0x7c8   : > { %3143 = vpow2.f32 %v2472_v37 }
 0x7c9   : > { %v2481_v5 = vpop.xlane.xlu1 %2480 }
 0x7ca   : > { %3145 = vrcp.f32 %v2481_v5 }
 0x7cc   : > { %v3140_v23 = vpop.eup %3139  ;;  %v4574_v63 = vpop.f32.mrf.mxu2 }
 0x7cd   : > { %v3142_v29 = vpop.eup %3141  ;;  %2506 = vadd.xlane.f32.xlu0 %v3140_v23  ;;  %2622 = vmatmul.f32.gmra.mxu2 %v3138_v0 }
 0x7ce   : > { %v3144_v33 = vpop.eup %3143  ;;  %2502 = vadd.xlane.f32.xlu2 %v3142_v29 }
 0x7cf   : > { %2504 = vadd.xlane.f32.xlu1 %v3144_v33 }
 0x7d0   : > { %v3146_v8 = vpop.eup %3145 }
 0x7d1   : > { %v2528_v22 = vmul.f32 %v3146_v8, %v2481_v5  ;;  %v2487_v13 = vpop.xlane.xlu1 %2486  ;;  %v2429_v2 = vpop.xlane.xlu0 %2428 }
 0x7d2   : > { %3147 = vrcp.f32 %v2487_v13  ;;  %v2446_v53 = vsub.f32 %v4559_v15, %v2429_v2 }
 0x7d3   : > { %v2544_v9 = vsub.f32 2.0, %v2528_v22 }
 0x7d4   : > { %v2476_v14 = vmul.f32 1.442695, %v2446_v53  ;;  %v2602_v46 = vpop.f32.mrf.mxu2 }
 0x7d5   : > { %v2560_v54 = vmul.f32 %v3146_v8, %v2544_v9  ;;  %2625 = vmatmul.f32.gmra.mxu2 %v3142_v29 }
 0x7d6   : > { %3149 = vpow2.f32 %v2476_v14 }
 0x7d7   : > { %v2641_v1 = vmul.f32 %v2593_v38, %v2560_v54 }
 0x7d8   : > { %v3148_v26 = vpop.eup %3147 }
 0x7d9   : > { %v2658_v48 = vadd.f32 %v4581_v19, %v2641_v1  ;;  %v2531_v55 = vmul.f32 %v3148_v26, %v2487_v13  ;;  %v2493_v11 = vpop.xlane.xlu1 %2492  ;;  %v2483_v24 = vpop.xlane.xlu0 %2482 }
 0x7da   : > { %3151 = vrcp.f32 %v2483_v24 }
 0x7db   : > { %v2674_v18 = vmax.f32 %v2658_v48, 0.0  ;;  %v2547_v16 = vsub.f32 2.0, %v2531_v55  ;;  %3153 = vrcp.f32 %v2493_v11 }
 0x7dc   : > { %v3150_v7 = vpop.eup %3149  ;;  %v2605_v35 = vpop.f32.mrf.mxu2 }
 0x7dd   : > { %2690 = vst.msk [vmem:[%s4586_s13] sm:$0xff] %vm949_vm10, %v2674_v18  ;;  %v2563_v6 = vmul.f32 %v3148_v26, %v2547_v16  ;;  %2508 = vadd.xlane.f32.xlu2 %v3150_v7  ;;  %2628 = vmatmul.f32.gmra.mxu2 %v3144_v33 }
 0x7df   : > { %v2644_v25 = vmul.f32 %v2602_v46, %v2563_v6 }
 0x7e0   : > { %v3152_v39 = vpop.eup %3151 }
 0x7e1   : > { %v2661_v47 = vadd.f32 %v4581_v19, %v2644_v25  ;;  %v2489_v15 = vpop.xlane.xlu0 %2488  ;;  %v3154_v28 = vpop.eup %3153  ;;  %v2529_v12 = vmul.f32 %v3152_v39, %v2483_v24 }
 0x7e2   : > { %3155 = vrcp.f32 %v2489_v15  ;;  %v2534_v58 = vmul.f32 %v3154_v28, %v2493_v11 }
 0x7e3   : > { %v2677_v36 = vmax.f32 %v2661_v47, 0.0  ;;  %v2545_v10 = vsub.f32 2.0, %v2529_v12 }
 0x7e4   : > { %v2608_v42 = vpop.f32.mrf.mxu2  ;;  %v2550_v20 = vsub.f32 2.0, %v2534_v58 }
 0x7e5   : > { %2693 = vst.msk [vmem:[%s4586_s13 + $0x18] sm:$0xff] %vm949_vm10, %v2677_v36  ;;  %2631 = vmatmul.f32.gmra.mxu2 %v3140_v23  ;;  %v2561_v50 = vmul.f32 %v3152_v39, %v2545_v10 }
 0x7e6   : > { %v2566_v4 = vmul.f32 %v3154_v28, %v2550_v20 }
 0x7e7   : > { %v2642_v60 = vmul.f32 %v2596_v61, %v2561_v50 }
 0x7e8   : > { %v3156_v57 = vpop.eup %3155 }
 0x7e9   : > { %v2532_v27 = vmul.f32 %v3156_v57, %v2489_v15  ;;  %v2495_v44 = vpop.xlane.xlu0 %2494  ;;  %v2659_v51 = vadd.f32 %v4581_v19, %v2642_v60 }
 0x7ea   : > { %3157 = vrcp.f32 %v2495_v44 }
 0x7eb   : > { %v2548_v49 = vsub.f32 2.0, %v2532_v27  ;;  %v2675_v40 = vmax.f32 %v2659_v51, 0.0 }
 0x7ec   : > { %v2431_v52 = vpop.xlane.xlu2 %2430  ;;  %v2611_v32 = vpop.f32.mrf.mxu2 }
 0x7ed   : > { %v2564_v34 = vmul.f32 %v3156_v57, %v2548_v49  ;;  %v2447_v30 = vsub.f32 %v4565_v59, %v2431_v52  ;;  %2634 = vmatmul.f32.gmra.mxu2 %v3150_v7  ;;  %2691 = vst.msk [vmem:[%s4586_s13 + $0x8] sm:$0xff] %vm949_vm10, %v2675_v40  ;;  %v2647_v38 = vmul.f32 %v2611_v32, %v2566_v4 }
 0x7ef   : > { %v2645_v31 = vmul.f32 %v2605_v35, %v2564_v34  ;;  %v2478_v21 = vmul.f32 1.442695, %v2447_v30  ;;  %v2664_v62 = vadd.f32 %v4581_v19, %v2647_v38 }
 0x7f0   : > { %v3158_v3 = vpop.eup %3157 }
 0x7f1   : > { %v2662_v41 = vadd.f32 %v4581_v19, %v2645_v31  ;;  %v2535_v45 = vmul.f32 %v3158_v3, %v2495_v44  ;;  %3159 = vpow2.f32 %v2478_v21  ;;  %v2680_v43 = vmax.f32 %v2664_v62, 0.0 }
 0x7f3   : > { %v2678_v17 = vmax.f32 %v2662_v41, 0.0  ;;  %v2551_v0 = vsub.f32 2.0, %v2535_v45  ;;  %2696 = vst.msk [vmem:[%s4586_s13 + $0x30] sm:$0xff] %vm949_vm10, %v2680_v43 }
 0x7f4   : > { %v2485_v59 = vpop.xlane.xlu2 %2484 }
 0x7f5   : > { %2694 = vst.msk [vmem:[%s4586_s13 + $0x20] sm:$0xff] %vm949_vm10, %v2678_v17  ;;  %3161 = vrcp.f32 %v2485_v59  ;;  %v2567_v56 = vmul.f32 %v3158_v3, %v2551_v0 }
 0x7f7   : > { %v3160_v37 = vpop.eup %3159  ;;  %v2614_v61 = vpop.f32.mrf.mxu2 }
 0x7f8   : > { %v2648_v5 = vmul.f32 %v2614_v61, %v2567_v56  ;;  %2510 = vadd.xlane.f32.xlu1 %v3160_v37  ;;  %2637 = vmatmul.f32.gmra.mxu2 %v3160_v37 }
 0x7fa   : > { %v2665_v23 = vadd.f32 %v4581_v19, %v2648_v5 }
 0x7fb   : > { %v3162_v29 = vpop.eup %3161 }
 0x7fc   : > { %v2530_v33 = vmul.f32 %v3162_v29, %v2485_v59  ;;  %v2681_v8 = vmax.f32 %v2665_v23, 0.0  ;;  %v2491_v22 = vpop.xlane.xlu2 %2490 }
 0x7fd   : > { %3163 = vrcp.f32 %v2491_v22 }
 0x7fe   : > { %v2546_v13 = vsub.f32 2.0, %v2530_v33  ;;  %2697 = vst.msk [vmem:[%s4586_s13 + $0x38] sm:$0xff] %vm949_vm10, %v2681_v8 }
 0x800   : > { %v2562_v2 = vmul.f32 %v3162_v29, %v2546_v13 }
 0x802   : > { %v2643_v53 = vmul.f32 %v4574_v63, %v2562_v2 }
 0x803   : > { %v3164_v9 = vpop.eup %3163 }
 0x804   : > { %v2660_v14 = vadd.f32 %v4581_v19, %v2643_v53  ;;  %v2533_v54 = vmul.f32 %v3164_v9, %v2491_v22 }
 0x806   : > { %v2676_v46 = vmax.f32 %v2660_v14, 0.0  ;;  %v2549_v1 = vsub.f32 2.0, %v2533_v54 }
 0x808   : > { %2692 = vst.msk [vmem:[%s4586_s13 + $0x10] sm:$0xff] %vm949_vm10, %v2676_v46  ;;  %v2565_v26 = vmul.f32 %v3164_v9, %v2549_v1 }
 0x80a   : > { %v2646_v48 = vmul.f32 %v2608_v42, %v2565_v26 }
 0x80c   : > { %v2663_v55 = vadd.f32 %v4581_v19, %v2646_v48 }
 0x80e   : > { %v2679_v11 = vmax.f32 %v2663_v55, 0.0 }
 0x810   : > { %2695 = vst.msk [vmem:[%s4586_s13 + $0x28] sm:$0xff] %vm949_vm10, %v2679_v11 }
 0x830   : > { %v2497_v24 = vpop.xlane.xlu2 %2496 }
 0x831   : > { %3165 = vrcp.f32 %v2497_v24  ;;  %v2499_v18 = vpop.xlane.xlu1 %2498 }
 0x832   : > { %3167 = vrcp.f32 %v2499_v18 }
 0x837   : > { %v3166_v63 = vpop.eup %3165 }
 0x838   : > { %v2536_v16 = vmul.f32 %v3166_v63, %v2497_v24  ;;  %v2501_v6 = vpop.xlane.xlu0 %2500  ;;  %v3168_v35 = vpop.eup %3167 }
 0x839   : > { %3169 = vrcp.f32 %v2501_v6  ;;  %v2537_v25 = vmul.f32 %v3168_v35, %v2499_v18 }
 0x83a   : > { %v2552_v7 = vsub.f32 2.0, %v2536_v16 }
 0x83b   : > { %v2553_v28 = vsub.f32 2.0, %v2537_v25 }
 0x83c   : > { %v2568_v39 = vmul.f32 %v3166_v63, %v2552_v7 }
 0x83d   : > { %v2569_v42 = vmul.f32 %v3168_v35, %v2553_v28 }
 0x83f   : > { %v3170_v10 = vpop.eup %3169 }
 0x840   : > { %v2617_v47 = vpop.f32.mrf.mxu2  ;;  %v2538_v50 = vmul.f32 %v3170_v10, %v2501_v6  ;;  %v2507_v30 = vpop.xlane.xlu0 %2506 }
 0x841   : > { %v2649_v15 = vmul.f32 %v2617_v47, %v2568_v39  ;;  %v2503_v36 = vpop.xlane.xlu2 %2502 }
 0x842   : > { %3171 = vrcp.f32 %v2503_v36  ;;  %v2554_v20 = vsub.f32 2.0, %v2538_v50  ;;  %v2505_v27 = vpop.xlane.xlu1 %2504 }
 0x843   : > { %v2666_v12 = vadd.f32 %v4581_v19, %v2649_v15  ;;  %3173 = vrcp.f32 %v2505_v27 }
 0x844   : > { %v2570_v52 = vmul.f32 %v3170_v10, %v2554_v20  ;;  %3175 = vrcp.f32 %v2507_v30 }
 0x845   : > { %v2682_v58 = vmax.f32 %v2666_v12, 0.0 }
 0x847   : > { %2698 = vst.msk [vmem:[%s4586_s13 + $0x40] sm:$0xff] %vm949_vm10, %v2682_v58 }
 0x848   : > { %v2620_v57 = vpop.f32.mrf.mxu2  ;;  %v3172_v51 = vpop.eup %3171 }
 0x849   : > { %v2650_v60 = vmul.f32 %v2620_v57, %v2569_v42  ;;  %v2539_v40 = vmul.f32 %v3172_v51, %v2503_v36  ;;  %v3174_v38 = vpop.eup %3173 }
 0x84a   : > { %v2540_v3 = vmul.f32 %v3174_v38, %v2505_v27  ;;  %v3176_v59 = vpop.eup %3175 }
 0x84b   : > { %v2667_v44 = vadd.f32 %v4581_v19, %v2650_v60  ;;  %v2555_v32 = vsub.f32 2.0, %v2539_v40  ;;  %v2541_v37 = vmul.f32 %v3176_v59, %v2507_v30 }
 0x84c   : > { %v2556_v17 = vsub.f32 2.0, %v2540_v3 }
 0x84d   : > { %v2683_v49 = vmax.f32 %v2667_v44, 0.0  ;;  %v2571_v41 = vmul.f32 %v3172_v51, %v2555_v32  ;;  %v2557_v29 = vsub.f32 2.0, %v2541_v37 }
 0x84e   : > { %v2572_v61 = vmul.f32 %v3174_v38, %v2556_v17 }
 0x84f   : > { %2699 = vst.msk [vmem:[%s4586_s13 + $0x48] sm:$0xff] %vm949_vm10, %v2683_v49  ;;  %v2573_v2 = vmul.f32 %v3176_v59, %v2557_v29 }
 0x850   : > { %v2623_v34 = vpop.f32.mrf.mxu2  ;;  %v2509_v0 = vpop.xlane.xlu2 %2508 }
 0x851   : > { %v2651_v4 = vmul.f32 %v2623_v34, %v2570_v52  ;;  %3177 = vrcp.f32 %v2509_v0 }
 0x853   : > { %v2668_v31 = vadd.f32 %v4581_v19, %v2651_v4 }
 0x855   : > { %v2684_v21 = vmax.f32 %v2668_v31, 0.0 }
 0x857   : > { %2700 = vst.msk [vmem:[%s4586_s13 + $0x50] sm:$0xff] %vm949_vm10, %v2684_v21  ;;  %v3178_v8 = vpop.eup %3177 }
 0x858   : > { %v2626_v45 = vpop.f32.mrf.mxu2  ;;  %v2542_v13 = vmul.f32 %v3178_v8, %v2509_v0 }
 0x859   : > { %v2652_v62 = vmul.f32 %v2626_v45, %v2571_v41 }
 0x85a   : > { %v2558_v14 = vsub.f32 2.0, %v2542_v13 }
 0x85b   : > { %v2669_v43 = vadd.f32 %v4581_v19, %v2652_v62 }
 0x85c   : > { %v2574_v26 = vmul.f32 %v3178_v8, %v2558_v14 }
 0x85d   : > { %v2685_v56 = vmax.f32 %v2669_v43, 0.0 }
 0x85f   : > { %2701 = vst.msk [vmem:[%s4586_s13 + $0x58] sm:$0xff] %vm949_vm10, %v2685_v56 }
 0x860   : > { %v2629_v5 = vpop.f32.mrf.mxu2 }
 0x861   : > { %v2653_v23 = vmul.f32 %v2629_v5, %v2572_v61 }
 0x863   : > { %v2670_v33 = vadd.f32 %v4581_v19, %v2653_v23 }
 0x865   : > { %v2686_v22 = vmax.f32 %v2670_v33, 0.0 }
 0x867   : > { %2702 = vst.msk [vmem:[%s4586_s13 + $0x60] sm:$0xff] %vm949_vm10, %v2686_v22 }
 0x868   : > { %v2632_v53 = vpop.f32.mrf.mxu2 }
 0x869   : > { %v2654_v9 = vmul.f32 %v2632_v53, %v2573_v2 }
 0x86b   : > { %v2671_v54 = vadd.f32 %v4581_v19, %v2654_v9  ;;  %v2511_v46 = vpop.xlane.xlu1 %2510 }
 0x86c   : > { %3179 = vrcp.f32 %v2511_v46 }
 0x86d   : > { %v2687_v1 = vmax.f32 %v2671_v54, 0.0 }
 0x86f   : > { %2703 = vst.msk [vmem:[%s4586_s13 + $0x68] sm:$0xff] %vm949_vm10, %v2687_v1 }
 0x870   : > { %v2635_v48 = vpop.f32.mrf.mxu2 }
 0x871   : > { %v2655_v55 = vmul.f32 %v2635_v48, %v2574_v26 }
 0x872   : > { %v3180_v11 = vpop.eup %3179 }
 0x873   : > { %v2543_v24 = vmul.f32 %v3180_v11, %v2511_v46  ;;  %v2672_v18 = vadd.f32 %v4581_v19, %v2655_v55 }
 0x875   : > { %v2688_v63 = vmax.f32 %v2672_v18, 0.0  ;;  %v2559_v16 = vsub.f32 2.0, %v2543_v24 }
 0x877   : > { %2704 = vst.msk [vmem:[%s4586_s13 + $0x70] sm:$0xff] %vm949_vm10, %v2688_v63  ;;  %v2575_v7 = vmul.f32 %v3180_v11, %v2559_v16 }
 0x87b   : > { %v2638_v6 = vpop.f32.mrf.mxu2 }
 0x87c   : > { %v2656_v35 = vmul.f32 %v2638_v6, %v2575_v7 }
 0x87e   : > { %v2673_v25 = vadd.f32 %v4581_v19, %v2656_v35 }
 0x880   : > { %v2689_v39 = vmax.f32 %v2673_v25, 0.0 }
 0x882   : > { %2705 = vst.msk [vmem:[%s4586_s13 + $0x78] sm:$0xff] %vm949_vm10, %v2689_v39 }
 0x883   : > { %3208 = shalt.err (!%p3205_p3)
}
 0x884   : > { %s3250_s9 = smov 128   ;;  %s3251_s11 = smov 8  }
 0x885   : > { %2940 = dma.vmem_to_hbm [thread:$0]  (%p3315_p5), %s2721_s27, 2048, %s2723_s28, %s2707_s29, %s3250_s9, %s3250_s9, %s3251_s11  }
 0x886 PF: > { %p2946_p4 = scmp.ge.s32.totalorder %s3243_s18, 2  ;;  %s2737_s12 = sand.u32 1, %s3231_s15  }
 0x887   : > { %s2738_s13 = scalar_lea.sflag [#allocation3], %s2737_s12 }
 0x888   : > { %p2943_p7 = pnand %p2946_p4, %p3319_p6 }
 0x88a   : > { %p2944_p8 = pneg %p2943_p7 }
 0x88c   : > { %3226 = dma.done.wait (%p2944_p8), %s2738_s13, 2048  }
 0x88d   : > { %3228 = vsyncadd (%p2944_p8), %s2738_s13, 4294965248  ;;  %p14_p9 = scmp.ge.s32.totalorder %s3302_s21, 4   ;;  %s4694_s15 = smov %s3235_s16 }
 0x88e   : > { %s4695_s16 = smov %s3239_s17  ;;  %s4696_s17 = smov %s3313_s24 }
 0x88f   : > { %s4697_s18 = smov %s3302_s21  ;;  %16 = sbr.rel (!%p14_p9) target bundleno = 3 (0x3), region = 76 }
 0x894   :  { %2744 = vsyncpa [#allocation3], 1 }
 0x895   :  { %2746 = vsyncpa [#allocation3 + $0x1], 1 }

</bundles_post_ra>
